<compile_context>
chip_gen: v6e
topology: v6e:2x2x1
jax: 0.10.0
libtpu: 0.0.40
codegen_flags: <defaults>
</compile_context>

<pallas_src>
import jax
import jax.numpy as jnp
from jax import lax
from jax.experimental import pallas as pl
from jax.experimental.pallas import tpu as pltpu

# ----------------------------- config ---------------------------------------
VOCAB = 50
B = 2          # batch (only batch 0 contributes to the module's output)
S = 128        # sequence length
H = 128        # hidden size
F = 256        # ffn size
N_LAYERS = 12  # -> 13 hidden states (embeddings + 12 layers)


# -------------------------- fused Pallas kernel ------------------------------
def fused_kernel(x0_ref, bias_ref, wqkv_ref, wo_ref, w1_ref, w2_ref, out_ref):
    # x0_ref:   (S, H)        f32   batch-0 embeddings
    # bias_ref: (1, S)        f32   additive attention bias (0 or -1e9), lane-dense
    # wqkv_ref: (L, H, 3H)    bf16  fused QKV weights (all layers, VMEM resident)
    # wo_ref:   (L, H, H)     bf16  output projections
    # w1_ref:   (L, H, F)     bf16  FFN up
    # w2_ref:   (L, F, H)     bf16  FFN down
    # out_ref:  (S, H)        f32   sum of last-4 hidden states (batch 0)
    bias = bias_ref[...]                                   # (1, S)
    scale = 1.0 / jnp.sqrt(jnp.float32(H))

    def layer_body(l, x):
        # x: (S, H) f32 -> x_new: (S, H) f32
        xb = x.astype(jnp.bfloat16)

        # fused QKV: (S,H) x (H,3H), bf16 operands, f32 accumulation
        qkv = jnp.dot(xb, wqkv_ref[l], preferred_element_type=jnp.float32)
        q = qkv[:, 0 * H:1 * H] * scale                    # scale in f32
        k = qkv[:, 1 * H:2 * H]
        v = qkv[:, 2 * H:3 * H]

        # scores = q @ k^T via transposed-operand matmul (no XLU transpose)
        scores = lax.dot_general(
            q.astype(jnp.bfloat16), k.astype(jnp.bfloat16),
            dimension_numbers=(((1,), (1,)), ((), ())),
            preferred_element_type=jnp.float32)            # (S, S)
        scores = scores + bias                             # (1,S) broadcast

        # exact softmax (f32 on VPU/EUP)
        smax = jnp.max(scores, axis=-1, keepdims=True)
        p = jnp.exp(scores - smax)
        denom = jnp.sum(p, axis=-1, keepdims=True)
        p = p * (1.0 / denom)

        attn = jnp.dot(p.astype(jnp.bfloat16), v.astype(jnp.bfloat16),
                       preferred_element_type=jnp.float32)  # (S, H)
        h = x + jnp.dot(attn.astype(jnp.bfloat16), wo_ref[l],
                        preferred_element_type=jnp.float32)

        # FFN with GELU (tanh approximation, as in HF Longformer), f32 math
        z = jnp.dot(h.astype(jnp.bfloat16), w1_ref[l],
                    preferred_element_type=jnp.float32)     # (S, F)
        g = 0.5 * z * (1.0 + jnp.tanh(0.7978845608028654 *
                                      (z + 0.044715 * z * z * z)))
        x_new = h + jnp.dot(g.astype(jnp.bfloat16), w2_ref[l],
                            preferred_element_type=jnp.float32)
        return x_new

    # layers whose hidden states are NOT part of the last-4 sum
    x = lax.fori_loop(0, N_LAYERS - 4, layer_body, x0_ref[...])

    # last 4 layers: accumulate their hidden states in the carry
    def last4_body(l, carry):
        x_cur, acc = carry
        x_new = layer_body(l, x_cur)
        return x_new, acc + x_new

    _, acc = lax.fori_loop(N_LAYERS - 4, N_LAYERS, last4_body,
                           (x, jnp.zeros((S, H), jnp.float32)))
    out_ref[...] = acc


def run_fused_stack(x0, bias, wqkv_all, wo_all, w1_all, w2_all):
    vmem = pltpu.MemorySpace.VMEM
    return pl.pallas_call(
        fused_kernel,
        out_shape=jax.ShapeDtypeStruct((S, H), jnp.float32),
        in_specs=[
            pl.BlockSpec(memory_space=vmem),   # x0        (S, H)      f32
            pl.BlockSpec(memory_space=vmem),   # bias      (1, S)      f32
            pl.BlockSpec(memory_space=vmem),   # wqkv_all  (L, H, 3H)  bf16
            pl.BlockSpec(memory_space=vmem),   # wo_all    (L, H, H)   bf16
            pl.BlockSpec(memory_space=vmem),   # w1_all    (L, H, F)   bf16
            pl.BlockSpec(memory_space=vmem),   # w2_all    (L, F, H)   bf16
        ],
        out_specs=pl.BlockSpec(memory_space=vmem),
    )(x0, bias, wqkv_all, wo_all, w1_all, w2_all)


# ----------------------------- Token_Embedding -------------------------------
def init_params(key):
    ks = jax.random.split(key, 5)
    emb = jax.random.normal(ks[0], (VOCAB, H), jnp.float32) * 0.02
    # weight stacks stored in bf16 (MXU-native operands, half the HBM traffic)
    wqkv = (jax.random.normal(ks[1], (N_LAYERS, H, 3 * H), jnp.float32)
            * 0.02).astype(jnp.bfloat16)
    wo = (jax.random.normal(ks[2], (N_LAYERS, H, H), jnp.float32)
          * 0.02).astype(jnp.bfloat16)
    w1 = (jax.random.normal(ks[3], (N_LAYERS, H, F), jnp.float32)
          * 0.02).astype(jnp.bfloat16)
    w2 = (jax.random.normal(ks[4], (N_LAYERS, F, H), jnp.float32)
          * 0.02).astype(jnp.bfloat16)
    return emb, wqkv, wo, w1, w2


@jax.jit
def token_embedding_forward(input_ids, attention_mask, emb_table,
                            wqkv_all, wo_all, w1_all, w2_all):
    # The module output is hidden_states[:, 0, :, :] (batch index 0 only) and
    # attention/FFN never mix batches -> slice batch 0 before the kernel.
    x0 = jnp.take(emb_table, input_ids[0], axis=0)                        # (S, H)
    bias = (attention_mask[0].astype(jnp.float32) - 1.0)[None, :] * 1e9   # (1, S)

    # single fused pallas_call: 12 layers + sum of last-4 hidden states
    token_embeddings = run_fused_stack(x0, bias, wqkv_all, wo_all,
                                       w1_all, w2_all)
    return token_embeddings                                               # (S, H)


# ---------------------------------- main --------------------------------------
if __name__ == "__main__":
    key = jax.random.PRNGKey(0)
    k_param, k_ids = jax.random.split(key)

    emb_table, wqkv_all, wo_all, w1_all, w2_all = init_params(k_param)

    input_ids = jax.random.randint(k_ids, (B, S), 0, VOCAB, dtype=jnp.int32)
    # attention_mask: last 16 tokens of each sequence are padding
    attention_mask = jnp.concatenate(
        [jnp.ones((B, S - 16), jnp.int32), jnp.zeros((B, 16), jnp.int32)], axis=1
    )

    out = token_embedding_forward(input_ids, attention_mask, emb_table,
                                  wqkv_all, wo_all, w1_all, w2_all)
    out = jax.block_until_ready(out)
    assert out.shape == (S, H) and out.dtype == jnp.float32
    assert bool(jnp.all(jnp.isfinite(out)))

    print("KERNEL_OK")
</pallas_src>

<mosaic_0001>
module attributes {stable_mosaic.version = 11 : i64} {
  func.func @fused_kernel(%arg0: memref<128x128xf32, #tpu.memory_space<vmem>>, %arg1: memref<1x128xf32, #tpu.memory_space<vmem>>, %arg2: memref<12x128x384xbf16, #tpu.memory_space<vmem>>, %arg3: memref<12x128x128xbf16, #tpu.memory_space<vmem>>, %arg4: memref<12x128x256xbf16, #tpu.memory_space<vmem>>, %arg5: memref<12x256x128xbf16, #tpu.memory_space<vmem>>, %arg6: memref<128x128xf32, #tpu.memory_space<vmem>>) attributes {dimension_semantics = [], scalar_prefetch = 0 : i64, scratch_operands = 0 : i64, tpu.core_type = #tpu.core_type<tc>} {
    %c0 = arith.constant 0 : index
    %c0_0 = arith.constant 0 : index
    %0 = vector.load %arg1[%c0, %c0_0] : memref<1x128xf32, #tpu.memory_space<vmem>>, vector<1x128xf32>
    %cst = arith.constant 1.280000e+02 : f32
    %1 = math.sqrt %cst : f32
    %cst_1 = arith.constant 1.000000e+00 : f32
    %2 = arith.divf %cst_1, %1 : f32
    %c0_2 = arith.constant 0 : index
    %c0_3 = arith.constant 0 : index
    %3 = vector.load %arg0[%c0_2, %c0_3] : memref<128x128xf32, #tpu.memory_space<vmem>>, vector<128x128xf32>
    %c0_i32 = arith.constant 0 : i32
    %c8_i32 = arith.constant 8 : i32
    %4 = arith.addi %c0_i32, %c8_i32 : i32
    %c1_i32 = arith.constant 1 : i32
    %5 = scf.for %arg7 = %c0_i32 to %4 step %c1_i32 iter_args(%arg8 = %3) -> (vector<128x128xf32>)  : i32 {
      %10 = arith.truncf %arg8 : vector<128x128xf32> to vector<128x128xbf16>
      %11 = arith.index_cast %arg7 : i32 to index
      %c0_11 = arith.constant 0 : index
      %c0_12 = arith.constant 0 : index
      %12 = vector.load %arg2[%11, %c0_11, %c0_12] : memref<12x128x384xbf16, #tpu.memory_space<vmem>>, vector<1x128x384xbf16>
      %13 = vector.shape_cast %12 : vector<1x128x384xbf16> to vector<128x384xbf16>
      %cst_13 = arith.constant dense<0.000000e+00> : vector<128x384xf32>
      %14 = tpu.matmul %10, %13, %cst_13 {dimension_numbers = #tpu.dot_dimension_numbers<[1], [0], [0], [1], [0, 0, 1, 1], [], []>} : vector<128x128xbf16>, vector<128x384xbf16>, vector<128x384xf32> -> vector<128x384xf32>
      %15 = vector.extract_strided_slice %14 {offsets = [0, 0], sizes = [128, 128], strides = [1, 1]} : vector<128x384xf32> to vector<128x128xf32>
      %16 = vector.broadcast %2 : f32 to vector<128x128xf32>
      %17 = arith.mulf %15, %16 : vector<128x128xf32>
      %18 = vector.extract_strided_slice %14 {offsets = [0, 128], sizes = [128, 128], strides = [1, 1]} : vector<128x384xf32> to vector<128x128xf32>
      %19 = vector.extract_strided_slice %14 {offsets = [0, 256], sizes = [128, 128], strides = [1, 1]} : vector<128x384xf32> to vector<128x128xf32>
      %20 = arith.truncf %17 : vector<128x128xf32> to vector<128x128xbf16>
      %21 = arith.truncf %18 : vector<128x128xf32> to vector<128x128xbf16>
      %cst_14 = arith.constant dense<0.000000e+00> : vector<128x128xf32>
      %22 = tpu.matmul %20, %21, %cst_14 {dimension_numbers = #tpu.dot_dimension_numbers<[1], [1], [0], [0], [0, 0, 1, 0], [], []>} : vector<128x128xbf16>, vector<128x128xbf16>, vector<128x128xf32> -> vector<128x128xf32>
      %23 = vector.broadcast %0 : vector<1x128xf32> to vector<128x128xf32>
      %24 = arith.addf %22, %23 : vector<128x128xf32>
      %cst_15 = arith.constant dense<0xFF800000> : vector<128xf32>
      %25 = vector.multi_reduction <maximumf>, %24, %cst_15 [1] : vector<128x128xf32> to vector<128xf32>
      %26 = vector.shape_cast %25 : vector<128xf32> to vector<128x1xf32>
      %27 = vector.broadcast %26 : vector<128x1xf32> to vector<128x128xf32>
      %28 = arith.subf %24, %27 : vector<128x128xf32>
      %29 = math.exp %28 : vector<128x128xf32>
      %cst_16 = arith.constant dense<0.000000e+00> : vector<128xf32>
      %30 = vector.multi_reduction <add>, %29, %cst_16 [1] : vector<128x128xf32> to vector<128xf32>
      %31 = vector.shape_cast %30 : vector<128xf32> to vector<128x1xf32>
      %cst_17 = arith.constant 1.000000e+00 : f32
      %32 = vector.broadcast %cst_17 : f32 to vector<128x1xf32>
      %33 = arith.divf %32, %31 : vector<128x1xf32>
      %34 = vector.broadcast %33 : vector<128x1xf32> to vector<128x128xf32>
      %35 = arith.mulf %29, %34 : vector<128x128xf32>
      %36 = arith.truncf %35 : vector<128x128xf32> to vector<128x128xbf16>
      %37 = arith.truncf %19 : vector<128x128xf32> to vector<128x128xbf16>
      %cst_18 = arith.constant dense<0.000000e+00> : vector<128x128xf32>
      %38 = tpu.matmul %36, %37, %cst_18 {dimension_numbers = #tpu.dot_dimension_numbers<[1], [0], [0], [1], [0, 0, 1, 1], [], []>} : vector<128x128xbf16>, vector<128x128xbf16>, vector<128x128xf32> -> vector<128x128xf32>
      %39 = arith.truncf %38 : vector<128x128xf32> to vector<128x128xbf16>
      %40 = arith.index_cast %arg7 : i32 to index
      %c0_19 = arith.constant 0 : index
      %c0_20 = arith.constant 0 : index
      %41 = vector.load %arg3[%40, %c0_19, %c0_20] : memref<12x128x128xbf16, #tpu.memory_space<vmem>>, vector<1x128x128xbf16>
      %42 = vector.shape_cast %41 : vector<1x128x128xbf16> to vector<128x128xbf16>
      %cst_21 = arith.constant dense<0.000000e+00> : vector<128x128xf32>
      %43 = tpu.matmul %39, %42, %cst_21 {dimension_numbers = #tpu.dot_dimension_numbers<[1], [0], [0], [1], [0, 0, 1, 1], [], []>} : vector<128x128xbf16>, vector<128x128xbf16>, vector<128x128xf32> -> vector<128x128xf32>
      %44 = arith.addf %arg8, %43 : vector<128x128xf32>
      %45 = arith.truncf %44 : vector<128x128xf32> to vector<128x128xbf16>
      %46 = arith.index_cast %arg7 : i32 to index
      %c0_22 = arith.constant 0 : index
      %c0_23 = arith.constant 0 : index
      %47 = vector.load %arg4[%46, %c0_22, %c0_23] : memref<12x128x256xbf16, #tpu.memory_space<vmem>>, vector<1x128x256xbf16>
      %48 = vector.shape_cast %47 : vector<1x128x256xbf16> to vector<128x256xbf16>
      %cst_24 = arith.constant dense<0.000000e+00> : vector<128x256xf32>
      %49 = tpu.matmul %45, %48, %cst_24 {dimension_numbers = #tpu.dot_dimension_numbers<[1], [0], [0], [1], [0, 0, 1, 1], [], []>} : vector<128x128xbf16>, vector<128x256xbf16>, vector<128x256xf32> -> vector<128x256xf32>
      %cst_25 = arith.constant 5.000000e-01 : f32
      %50 = vector.broadcast %cst_25 : f32 to vector<128x256xf32>
      %51 = arith.mulf %50, %49 : vector<128x256xf32>
      %cst_26 = arith.constant 4.471500e-02 : f32
      %52 = vector.broadcast %cst_26 : f32 to vector<128x256xf32>
      %53 = arith.mulf %52, %49 : vector<128x256xf32>
      %54 = arith.mulf %53, %49 : vector<128x256xf32>
      %55 = arith.mulf %54, %49 : vector<128x256xf32>
      %56 = arith.addf %49, %55 : vector<128x256xf32>
      %cst_27 = arith.constant 0.797884583 : f32
      %57 = vector.broadcast %cst_27 : f32 to vector<128x256xf32>
      %58 = arith.mulf %57, %56 : vector<128x256xf32>
      %59 = math.tanh %58 : vector<128x256xf32>
      %cst_28 = arith.constant 1.000000e+00 : f32
      %60 = vector.broadcast %cst_28 : f32 to vector<128x256xf32>
      %61 = arith.addf %60, %59 : vector<128x256xf32>
      %62 = arith.mulf %51, %61 : vector<128x256xf32>
      %63 = arith.truncf %62 : vector<128x256xf32> to vector<128x256xbf16>
      %64 = arith.index_cast %arg7 : i32 to index
      %c0_29 = arith.constant 0 : index
      %c0_30 = arith.constant 0 : index
      %65 = vector.load %arg5[%64, %c0_29, %c0_30] : memref<12x256x128xbf16, #tpu.memory_space<vmem>>, vector<1x256x128xbf16>
      %66 = vector.shape_cast %65 : vector<1x256x128xbf16> to vector<256x128xbf16>
      %cst_31 = arith.constant dense<0.000000e+00> : vector<128x128xf32>
      %67 = tpu.matmul %63, %66, %cst_31 {dimension_numbers = #tpu.dot_dimension_numbers<[1], [0], [0], [1], [0, 0, 1, 1], [], []>} : vector<128x256xbf16>, vector<256x128xbf16>, vector<128x128xf32> -> vector<128x128xf32>
      %68 = arith.addf %44, %67 : vector<128x128xf32>
      scf.yield %68 : vector<128x128xf32>
    }
    %c8_i32_4 = arith.constant 8 : i32
    %cst_5 = arith.constant 0.000000e+00 : f32
    %6 = vector.broadcast %cst_5 : f32 to vector<128x128xf32>
    %c8_i32_6 = arith.constant 8 : i32
    %c4_i32 = arith.constant 4 : i32
    %7 = arith.addi %c8_i32_6, %c4_i32 : i32
    %c1_i32_7 = arith.constant 1 : i32
    %8:2 = scf.for %arg7 = %c8_i32_6 to %7 step %c1_i32_7 iter_args(%arg8 = %5, %arg9 = %6) -> (vector<128x128xf32>, vector<128x128xf32>)  : i32 {
      %10 = arith.truncf %arg8 : vector<128x128xf32> to vector<128x128xbf16>
      %11 = arith.index_cast %arg7 : i32 to index
      %c0_11 = arith.constant 0 : index
      %c0_12 = arith.constant 0 : index
      %12 = vector.load %arg2[%11, %c0_11, %c0_12] : memref<12x128x384xbf16, #tpu.memory_space<vmem>>, vector<1x128x384xbf16>
      %13 = vector.shape_cast %12 : vector<1x128x384xbf16> to vector<128x384xbf16>
      %cst_13 = arith.constant dense<0.000000e+00> : vector<128x384xf32>
      %14 = tpu.matmul %10, %13, %cst_13 {dimension_numbers = #tpu.dot_dimension_numbers<[1], [0], [0], [1], [0, 0, 1, 1], [], []>} : vector<128x128xbf16>, vector<128x384xbf16>, vector<128x384xf32> -> vector<128x384xf32>
      %15 = vector.extract_strided_slice %14 {offsets = [0, 0], sizes = [128, 128], strides = [1, 1]} : vector<128x384xf32> to vector<128x128xf32>
      %16 = vector.broadcast %2 : f32 to vector<128x128xf32>
      %17 = arith.mulf %15, %16 : vector<128x128xf32>
      %18 = vector.extract_strided_slice %14 {offsets = [0, 128], sizes = [128, 128], strides = [1, 1]} : vector<128x384xf32> to vector<128x128xf32>
      %19 = vector.extract_strided_slice %14 {offsets = [0, 256], sizes = [128, 128], strides = [1, 1]} : vector<128x384xf32> to vector<128x128xf32>
      %20 = arith.truncf %17 : vector<128x128xf32> to vector<128x128xbf16>
      %21 = arith.truncf %18 : vector<128x128xf32> to vector<128x128xbf16>
      %cst_14 = arith.constant dense<0.000000e+00> : vector<128x128xf32>
      %22 = tpu.matmul %20, %21, %cst_14 {dimension_numbers = #tpu.dot_dimension_numbers<[1], [1], [0], [0], [0, 0, 1, 0], [], []>} : vector<128x128xbf16>, vector<128x128xbf16>, vector<128x128xf32> -> vector<128x128xf32>
      %23 = vector.broadcast %0 : vector<1x128xf32> to vector<128x128xf32>
      %24 = arith.addf %22, %23 : vector<128x128xf32>
      %cst_15 = arith.constant dense<0xFF800000> : vector<128xf32>
      %25 = vector.multi_reduction <maximumf>, %24, %cst_15 [1] : vector<128x128xf32> to vector<128xf32>
      %26 = vector.shape_cast %25 : vector<128xf32> to vector<128x1xf32>
      %27 = vector.broadcast %26 : vector<128x1xf32> to vector<128x128xf32>
      %28 = arith.subf %24, %27 : vector<128x128xf32>
      %29 = math.exp %28 : vector<128x128xf32>
      %cst_16 = arith.constant dense<0.000000e+00> : vector<128xf32>
      %30 = vector.multi_reduction <add>, %29, %cst_16 [1] : vector<128x128xf32> to vector<128xf32>
      %31 = vector.shape_cast %30 : vector<128xf32> to vector<128x1xf32>
      %cst_17 = arith.constant 1.000000e+00 : f32
      %32 = vector.broadcast %cst_17 : f32 to vector<128x1xf32>
      %33 = arith.divf %32, %31 : vector<128x1xf32>
      %34 = vector.broadcast %33 : vector<128x1xf32> to vector<128x128xf32>
      %35 = arith.mulf %29, %34 : vector<128x128xf32>
      %36 = arith.truncf %35 : vector<128x128xf32> to vector<128x128xbf16>
      %37 = arith.truncf %19 : vector<128x128xf32> to vector<128x128xbf16>
      %cst_18 = arith.constant dense<0.000000e+00> : vector<128x128xf32>
      %38 = tpu.matmul %36, %37, %cst_18 {dimension_numbers = #tpu.dot_dimension_numbers<[1], [0], [0], [1], [0, 0, 1, 1], [], []>} : vector<128x128xbf16>, vector<128x128xbf16>, vector<128x128xf32> -> vector<128x128xf32>
      %39 = arith.truncf %38 : vector<128x128xf32> to vector<128x128xbf16>
      %40 = arith.index_cast %arg7 : i32 to index
      %c0_19 = arith.constant 0 : index
      %c0_20 = arith.constant 0 : index
      %41 = vector.load %arg3[%40, %c0_19, %c0_20] : memref<12x128x128xbf16, #tpu.memory_space<vmem>>, vector<1x128x128xbf16>
      %42 = vector.shape_cast %41 : vector<1x128x128xbf16> to vector<128x128xbf16>
      %cst_21 = arith.constant dense<0.000000e+00> : vector<128x128xf32>
      %43 = tpu.matmul %39, %42, %cst_21 {dimension_numbers = #tpu.dot_dimension_numbers<[1], [0], [0], [1], [0, 0, 1, 1], [], []>} : vector<128x128xbf16>, vector<128x128xbf16>, vector<128x128xf32> -> vector<128x128xf32>
      %44 = arith.addf %arg8, %43 : vector<128x128xf32>
      %45 = arith.truncf %44 : vector<128x128xf32> to vector<128x128xbf16>
      %46 = arith.index_cast %arg7 : i32 to index
      %c0_22 = arith.constant 0 : index
      %c0_23 = arith.constant 0 : index
      %47 = vector.load %arg4[%46, %c0_22, %c0_23] : memref<12x128x256xbf16, #tpu.memory_space<vmem>>, vector<1x128x256xbf16>
      %48 = vector.shape_cast %47 : vector<1x128x256xbf16> to vector<128x256xbf16>
      %cst_24 = arith.constant dense<0.000000e+00> : vector<128x256xf32>
      %49 = tpu.matmul %45, %48, %cst_24 {dimension_numbers = #tpu.dot_dimension_numbers<[1], [0], [0], [1], [0, 0, 1, 1], [], []>} : vector<128x128xbf16>, vector<128x256xbf16>, vector<128x256xf32> -> vector<128x256xf32>
      %cst_25 = arith.constant 5.000000e-01 : f32
      %50 = vector.broadcast %cst_25 : f32 to vector<128x256xf32>
      %51 = arith.mulf %50, %49 : vector<128x256xf32>
      %cst_26 = arith.constant 4.471500e-02 : f32
      %52 = vector.broadcast %cst_26 : f32 to vector<128x256xf32>
      %53 = arith.mulf %52, %49 : vector<128x256xf32>
      %54 = arith.mulf %53, %49 : vector<128x256xf32>
      %55 = arith.mulf %54, %49 : vector<128x256xf32>
      %56 = arith.addf %49, %55 : vector<128x256xf32>
      %cst_27 = arith.constant 0.797884583 : f32
      %57 = vector.broadcast %cst_27 : f32 to vector<128x256xf32>
      %58 = arith.mulf %57, %56 : vector<128x256xf32>
      %59 = math.tanh %58 : vector<128x256xf32>
      %cst_28 = arith.constant 1.000000e+00 : f32
      %60 = vector.broadcast %cst_28 : f32 to vector<128x256xf32>
      %61 = arith.addf %60, %59 : vector<128x256xf32>
      %62 = arith.mulf %51, %61 : vector<128x256xf32>
      %63 = arith.truncf %62 : vector<128x256xf32> to vector<128x256xbf16>
      %64 = arith.index_cast %arg7 : i32 to index
      %c0_29 = arith.constant 0 : index
      %c0_30 = arith.constant 0 : index
      %65 = vector.load %arg5[%64, %c0_29, %c0_30] : memref<12x256x128xbf16, #tpu.memory_space<vmem>>, vector<1x256x128xbf16>
      %66 = vector.shape_cast %65 : vector<1x256x128xbf16> to vector<256x128xbf16>
      %cst_31 = arith.constant dense<0.000000e+00> : vector<128x128xf32>
      %67 = tpu.matmul %63, %66, %cst_31 {dimension_numbers = #tpu.dot_dimension_numbers<[1], [0], [0], [1], [0, 0, 1, 1], [], []>} : vector<128x256xbf16>, vector<256x128xbf16>, vector<128x128xf32> -> vector<128x128xf32>
      %68 = arith.addf %44, %67 : vector<128x128xf32>
      %69 = arith.addf %arg9, %68 : vector<128x128xf32>
      scf.yield %68, %69 : vector<128x128xf32>, vector<128x128xf32>
    }
    %c4_i32_8 = arith.constant 4 : i32
    %c0_9 = arith.constant 0 : index
    %c0_10 = arith.constant 0 : index
    %9 = vector.load %arg6[%c0_9, %c0_10] : memref<128x128xf32, #tpu.memory_space<vmem>>, vector<128x128xf32>
    tpu.vector_store %arg6[%c0_9, %c0_10], %8#1 {strides = array<i32>} : memref<128x128xf32, #tpu.memory_space<vmem>>, vector<128x128xf32>,
    return
  }
}

</mosaic_0001>

<bundles_post_ra>
// kernel: token_embedding_forward.1
= control target key start
LH: loop header
LB: loop body
LE: loop exit
PB: predicated region body
PF: predicated region fallthrough
CT: control target
= control target key end

     0   :  { %11 = vsyncpa [#allocation3], 0  ;;  %s7640_s0 = inlined_call_operand.vmem [shape: f32[128,128], index: 0, kind: input, shape index: {}]   ;;  %s7641_s1 = inlined_call_operand.vmem [shape: f32[1,128], index: 1, kind: input, shape index: {}]   ;;  %s7642_s2 = inlined_call_operand.hbm [shape: bf16[12,128,384], index: 2, kind: input, shape index: {}]   ;;  %s7643_s3 = inlined_call_operand.hbm [shape: bf16[12,128,128], index: 3, kind: input, shape index: {}]   ;;  %s7644_s4 = inlined_call_operand.hbm [shape: bf16[12,128,256], index: 4, kind: input, shape index: {}]   ;;  %s7645_s5 = inlined_call_operand.hbm [shape: bf16[12,256,128], index: 5, kind: input, shape index: {}]   ;;  %s7646_s6 = inlined_call_operand.hbm [shape: f32[128,128], index: 6, kind: output, shape index: {}]  }
   0x1   :  { %12 = vsyncpa [#allocation6], 0 }
   0x2   :  { %13 = vsyncpa [#allocation9], 0 }
   0x3   :  { %14 = vsyncpa [#allocation4], 0  ;;  %s5864_s21 = smov [#allocation5]  }
   0x4   :  { %s36_s22 = sshll.u32 %s5864_s21, 4  ;;  %s37_s22 = int_to_ptr.vmem [resolvable:$true] %s36_s22 }
   0x5   :  { %s5364_s23 = scalar_lea.vmem %s37_s22, 12288  ;;  %p5369_p1 = scmp.lt.s32.totalorder %s37_s22, %s37_s22 }
   0x6   :  { %p5365_p0 = scmp.ne.s32.totalorder %s37_s22, %s5364_s23  ;;  %p5370_p2 = scmp.lt.s32.totalorder %s5364_s23, %s5364_s23 }
   0x8   :  { %p5371_p3 = por %p5370_p2, %p5369_p1 }
   0xa   :  { %p5372_p4 = pnand %p5371_p3, %p5365_p0 }
   0xc   :  { %5375 = shalt.err (!%p5372_p4)
}
   0xd   :  { %s5865_s24 = smov 64   ;;  %s5866_s25 = smov 4  }
   0xe   :  { %42 = dma.hbm_to_vmem [thread:$0]  %s7643_s3, 12288, %s37_s22, [#allocation6], %s5865_s24, %s5865_s24, %s5866_s25  }
   0xf   :  { %s5867_s28 = smov [#allocation2]  }
  0x10   :  { %s24_s29 = sshll.u32 %s5867_s28, 4  ;;  %s25_s29 = int_to_ptr.vmem [resolvable:$true] %s24_s29 }
  0x11   :  { %s5384_s30 = scalar_lea.vmem %s25_s29, 36864  ;;  %p5389_p6 = scmp.lt.s32.totalorder %s25_s29, %s25_s29 }
  0x12   :  { %p5385_p5 = scmp.ne.s32.totalorder %s25_s29, %s5384_s30  ;;  %p5390_p7 = scmp.lt.s32.totalorder %s5384_s30, %s5384_s30 }
  0x14   :  { %p5391_p8 = por %p5390_p7, %p5389_p6 }
  0x16   :  { %p5392_p9 = pnand %p5391_p8, %p5385_p5 }
  0x18   :  { %5395 = shalt.err (!%p5392_p9)
}
  0x19   :  { %s5868_s7 = smov 192   ;;  %s5869_s8 = smov 12  }
  0x1a   :  { %30 = dma.hbm_to_vmem [thread:$0]  %s7642_s2, 36864, %s25_s29, [#allocation3], %s5868_s7, %s5868_s7, %s5869_s8  }
  0x1b   :  { %s5870_s11 = smov [#allocation7]  }
  0x1c   :  { %s48_s12 = sshll.u32 %s5870_s11, 4  ;;  %s49_s12 = int_to_ptr.vmem [resolvable:$true] %s48_s12 }
  0x1d   :  { %s5404_s3 = scalar_lea.vmem %s49_s12, 24576  ;;  %p5409_p11 = scmp.lt.s32.totalorder %s49_s12, %s49_s12 }
  0x1e   :  { %p5405_p10 = scmp.ne.s32.totalorder %s49_s12, %s5404_s3  ;;  %p5410_p12 = scmp.lt.s32.totalorder %s5404_s3, %s5404_s3 }
  0x20   :  { %p5411_p13 = por %p5410_p12, %p5409_p11 }
  0x22   :  { %p5412_p0 = pnand %p5411_p13, %p5405_p10 }
  0x24   :  { %5415 = shalt.err (!%p5412_p0)
}
  0x25   :  { %s5871_s13 = smov 128   ;;  %s5872_s14 = smov 8  }
  0x26   :  { %54 = dma.hbm_to_vmem [thread:$0]  %s7644_s4, 24576, %s49_s12, [#allocation6], %s5871_s13, %s5871_s13, %s5872_s14  }
  0x27   :  { %s5873_s2 = smov [#allocation8]  }
  0x28   :  { %s60_s17 = sshll.u32 %s5873_s2, 4  ;;  %s61_s17 = int_to_ptr.vmem [resolvable:$true] %s60_s17 }
  0x29   :  { %s5424_s18 = scalar_lea.vmem %s61_s17, 24576  ;;  %p5429_p2 = scmp.lt.s32.totalorder %s61_s17, %s61_s17 }
  0x2a   :  { %p5425_p1 = scmp.ne.s32.totalorder %s61_s17, %s5424_s18  ;;  %p5430_p3 = scmp.lt.s32.totalorder %s5424_s18, %s5424_s18 }
  0x2c   :  { %p5431_p4 = por %p5430_p3, %p5429_p2 }
  0x2e   :  { %p5432_p5 = pnand %p5431_p4, %p5425_p1 }
  0x30   :  { %5435 = shalt.err (!%p5432_p5)
}
  0x31   :  { %66 = dma.hbm_to_vmem [thread:$0]  %s7645_s5, 24576, %s61_s17, [#allocation9], %s5865_s24, %s5865_s24, %s5866_s25  }
  0x32   :  { %5656 = dma.done.wait [#allocation3], 36864  }
  0x33   :  { %5657 = vsyncadd [#allocation3], 4294930432 }
  0x34   :  { %5658 = dma.done.wait [#allocation6], 36864  }
  0x35   :  { %5659 = vsyncadd [#allocation6], 4294930432 }
  0x36   :  { %5660 = dma.done.wait [#allocation9], 24576  }
  0x37   :  { %5661 = vsyncadd [#allocation9], 4294942720  ;;  %v5936_v0 = vld [vmem:[%s7641_s1] ss:$0 sm:$0xff]  ;;  %v82_v2 = vld [vmem:[%s7640_s0 + $0x8] sm:$0xff]  }
  0x38   :  { %7651 = vst [vmem:[#allocation15_spill] sm:$0xff] %v5936_v0  ;;  %v81_v1 = vld [vmem:[%s7640_s0] sm:$0xff]   ;;  %v83_v3 = vld [vmem:[%s7640_s0 + $0x10] sm:$0xff]   ;;  %v84_v4 = vld [vmem:[%s7640_s0 + $0x18] sm:$0xff]  }
  0x39   :  { %v85_v5 = vld [vmem:[%s7640_s0 + $0x20] sm:$0xff]   ;;  %v86_v6 = vld [vmem:[%s7640_s0 + $0x28] sm:$0xff]   ;;  %v87_v7 = vld [vmem:[%s7640_s0 + $0x30] sm:$0xff]  }
  0x3a   :  { %v88_v8 = vld [vmem:[%s7640_s0 + $0x38] sm:$0xff]   ;;  %v89_v9 = vld [vmem:[%s7640_s0 + $0x40] sm:$0xff]   ;;  %v90_v10 = vld [vmem:[%s7640_s0 + $0x48] sm:$0xff]  }
  0x3b   :  { %v91_v11 = vld [vmem:[%s7640_s0 + $0x50] sm:$0xff]   ;;  %v92_v12 = vld [vmem:[%s7640_s0 + $0x58] sm:$0xff]   ;;  %v93_v13 = vld [vmem:[%s7640_s0 + $0x60] sm:$0xff]  }
  0x3c   :  { %v94_v14 = vld [vmem:[%s7640_s0 + $0x68] sm:$0xff]   ;;  %v95_v15 = vld [vmem:[%s7640_s0 + $0x70] sm:$0xff]   ;;  %v96_v16 = vld [vmem:[%s7640_s0 + $0x78] sm:$0xff]   ;;  %s6018_s0 = smov 0  }
  0x3d LB: > { %v5874_v17 = vmov 0   ;;  %s4006_s24 = smul.u32 192, %s5730_s0  ;;  %v119_v18 = vpack.c.bf16 %v5722_v2, %v5726_v1  ;;  %v6096_v35 = vpack.c.bf16 %v5714_v4, %v5718_v3  ;;  %v6102_v36 = vpack.c.bf16 %v5706_v6, %v5710_v5  ;;  %s4007_s28 = sshll.u32 %s5730_s0, 6  ;;  %s5730_s0 = sphi %s6018_s0, %s102_s0   ;;  %v5726_v1 = vphi %v81_v1, %v7674_v1   ;;  %v5722_v2 = vphi %v82_v2, %v7673_v2   ;;  %v5718_v3 = vphi %v83_v3, %v7672_v3   ;;  %v5714_v4 = vphi %v84_v4, %v7671_v4   ;;  %v5710_v5 = vphi %v85_v5, %v7670_v5   ;;  %v5706_v6 = vphi %v86_v6, %v7669_v6   ;;  %v5702_v7 = vphi %v87_v7, %v7668_v7   ;;  %v5698_v8 = vphi %v88_v8, %v7667_v8   ;;  %v5694_v9 = vphi %v89_v9, %v7666_v9   ;;  %v5690_v10 = vphi %v90_v10, %v7665_v10   ;;  %v5686_v11 = vphi %v91_v11, %v7664_v11   ;;  %v5682_v12 = vphi %v92_v12, %v7663_v12   ;;  %v5678_v13 = vphi %v93_v13, %v7662_v13   ;;  %v5674_v14 = vphi %v94_v14, %v7661_v14   ;;  %v5670_v15 = vphi %v95_v15, %v7660_v15   ;;  %v5666_v16 = vphi %v96_v16, %v7659_v16  }
  0x3e   : > { %322 = vmatprep.mubr.bf16.mxu0 %v5874_v17  ;;  %v6108_v37 = vpack.c.bf16 %v5698_v8, %v5702_v7  ;;  %v6114_v38 = vpack.c.bf16 %v5690_v10, %v5694_v9  ;;  %v6120_v39 = vpack.c.bf16 %v5682_v12, %v5686_v11  ;;  %v6126_v40 = vpack.c.bf16 %v5674_v14, %v5678_v13  ;;  %s6316_s29 = scalar_lea.vmem [#allocation5], %s4007_s28  ;;  %s4008_s30 = sshll.u32 %s5730_s0, 7 }
  0x3f   : > { %4287 = vmatprep.mubr.bf16.mxu1 %v119_v18  ;;  %s6075_s25 = scalar_lea.vmem [#allocation2], %s4006_s24  ;;  %v6132_v41 = vpack.c.bf16 %v5666_v16, %v5670_v15  ;;  %s6343_s1 = scalar_lea.vmem [#allocation7], %s4008_s30 }
  0x40   : > { %v4940_v19 = vld [vmem:[%s6075_s25 + $0xac] ss:$12 sps:$4 sm:$0xff]   ;;  %v4942_v20 = vld [vmem:[%s6075_s25 + $0xa8] ss:$12 sps:$4 sm:$0xff]   ;;  %v4945_v22 = vld [vmem:[%s6075_s25 + $0x90] ss:$12 sps:$4 sm:$0xff]  }
  0x41   : > { %290 = vmatprep.subr.bf16.mxu0 %v4940_v19  ;;  %v4943_v21 = vld [vmem:[%s6075_s25 + $0x94] ss:$12 sps:$4 sm:$0xff]   ;;  %v4946_v23 = vld [vmem:[%s6075_s25 + $0x7c] ss:$12 sps:$4 sm:$0xff]   ;;  %v4948_v24 = vld [vmem:[%s6075_s25 + $0x78] ss:$12 sps:$4 sm:$0xff]  }
  0x42   : > { %291 = vmatpush1.bf16.msra.mxu0 %v4942_v20  ;;  %v4949_v25 = vld [vmem:[%s6075_s25 + $0x64] ss:$12 sps:$4 sm:$0xff]   ;;  %v4951_v26 = vld [vmem:[%s6075_s25 + $0x60] ss:$12 sps:$4 sm:$0xff]   ;;  %v4954_v28 = vld [vmem:[%s6075_s25 + $0x48] ss:$12 sps:$4 sm:$0xff]  }
  0x43   : > { %292 = vmatprep.subr.bf16.mxu0 %v4943_v21  ;;  %v4952_v27 = vld [vmem:[%s6075_s25 + $0x4c] ss:$12 sps:$4 sm:$0xff]   ;;  %v4955_v29 = vld [vmem:[%s6075_s25 + $0x34] ss:$12 sps:$4 sm:$0xff]   ;;  %v4957_v30 = vld [vmem:[%s6075_s25 + $0x30] ss:$12 sps:$4 sm:$0xff]  }
  0x44   : > { %v4958_v31 = vld [vmem:[%s6075_s25 + $0x1c] ss:$12 sps:$4 sm:$0xff]   ;;  %v4960_v32 = vld [vmem:[%s6075_s25 + $0x18] ss:$12 sps:$4 sm:$0xff]   ;;  %v4963_v34 = vld [vmem:[%s6075_s25] ss:$12 sps:$4 sm:$0xff]  }
  0x45   : > { %v4961_v33 = vld [vmem:[%s6075_s25 + $0x4] ss:$12 sps:$4 sm:$0xff]   ;;  %s6352_s7 = scalar_lea.vmem [#allocation8], %s4008_s30  ;;  %s102_s0 = sadd.s32 1, %s5730_s0  }
  0x46   : > { %293 = vmatpush1.bf16.msra.mxu0 %v4945_v22  ;;  %v4964_v21 = vld [vmem:[%s6075_s25 + $0xb0] ss:$12 sps:$4 sm:$0xff]   ;;  %v4965_v22 = vld [vmem:[%s6075_s25 + $0x98] ss:$12 sps:$4 sm:$0xff]   ;;  %p6664_p6 = scmp.ge.s32.totalorder %s102_s0, 8  }
  0x47   : > { %294 = vmatprep.subr.bf16.mxu0 %v4946_v23  ;;  %4271 = vmatprep.subr.bf16.mxu1 %v4964_v21  ;;  %s6788_s9 = smov (%p6664_p6), 8  }
  0x48   : > { %4272 = vmatpush3.bf16.msra.mxu1 %v4964_v21 }
  0x49   : > { %4273 = vmatprep.subr.bf16.mxu1 %v4965_v22 }
  0x4a   : > { %295 = vmatpush1.bf16.msra.mxu0 %v4948_v24 }
  0x4b   : > { %296 = vmatprep.subr.bf16.mxu0 %v4949_v25 }
  0x4c   : > { %4274 = vmatpush3.bf16.msra.mxu1 %v4965_v22 }
  0x4e   : > { %297 = vmatpush1.bf16.msra.mxu0 %v4951_v26 }
  0x4f   : > { %298 = vmatprep.subr.bf16.mxu0 %v4952_v27  ;;  %v4966_v27 = vld [vmem:[%s6075_s25 + $0x80] ss:$12 sps:$4 sm:$0xff]  }
  0x50   : > { %4275 = vmatprep.subr.bf16.mxu1 %v4966_v27 }
  0x51   : > { %4276 = vmatpush3.bf16.msra.mxu1 %v4966_v27 }
  0x52   : > { %299 = vmatpush1.bf16.msra.mxu0 %v4954_v28 }
  0x53   : > { %300 = vmatprep.subr.bf16.mxu0 %v4955_v29 }
  0x56   : > { %301 = vmatpush1.bf16.msra.mxu0 %v4957_v30 }
  0x57   : > { %302 = vmatprep.subr.bf16.mxu0 %v4958_v31  ;;  %v4967_v31 = vld [vmem:[%s6075_s25 + $0x68] ss:$12 sps:$4 sm:$0xff]  }
  0x58   : > { %4277 = vmatprep.subr.bf16.mxu1 %v4967_v31 }
  0x59   : > { %4278 = vmatpush3.bf16.msra.mxu1 %v4967_v31 }
  0x5a   : > { %303 = vmatpush1.bf16.msra.mxu0 %v4960_v32 }
  0x5b   : > { %304 = vmatprep.subr.bf16.mxu0 %v4961_v33 }
  0x5e   : > { %305 = vmatpush1.bf16.msra.mxu0 %v4963_v34 }
  0x61   : > { %323 = vmatmul.mubr.bf16.vlgmr.msra.gmra.mxu0 %v119_v18 }
  0x62   : > { %332 = vmatprep.mubr.bf16.mxu0 %v5874_v17 }
  0x69   : > { %333 = vmatmul.mubr.bf16.gmra.mxu0 %v6096_v35 }
  0x6a   : > { %342 = vmatprep.mubr.bf16.mxu0 %v5874_v17 }
  0x71   : > { %343 = vmatmul.mubr.bf16.gmra.mxu0 %v6102_v36 }
  0x72   : > { %352 = vmatprep.mubr.bf16.mxu0 %v5874_v17 }
  0x79   : > { %353 = vmatmul.mubr.bf16.gmra.mxu0 %v6108_v37 }
  0x7a   : > { %362 = vmatprep.mubr.bf16.mxu0 %v5874_v17 }
  0x81   : > { %363 = vmatmul.mubr.bf16.gmra.mxu0 %v6114_v38 }
  0x82   : > { %372 = vmatprep.mubr.bf16.mxu0 %v5874_v17 }
  0x89   : > { %373 = vmatmul.mubr.bf16.gmra.mxu0 %v6120_v39 }
  0x8a   : > { %382 = vmatprep.mubr.bf16.mxu0 %v5874_v17 }
  0x91   : > { %383 = vmatmul.mubr.bf16.gmra.mxu0 %v6126_v40 }
  0x92   : > { %392 = vmatprep.mubr.bf16.mxu0 %v5874_v17 }
  0x99   : > { %393 = vmatmul.mubr.bf16.gmra.mxu0 %v6132_v41 }
 0x121   : > { %v324_v42 = vpop.f32.mrf.mxu0 }
 0x122   : > { %v500_v45 = vmul.f32 0.088388346, %v324_v42 }
 0x123   : > { %v326_v43 = vpop.f32.mrf.mxu0 }
 0x125   : > { %v328_v44 = vpop.f32.mrf.mxu0 }
 0x126   : > { %v501_v46 = vmul.f32 0.088388346, %v328_v44 }
 0x127   : > { %v330_v47 = vpop.f32.mrf.mxu0 }
 0x128   : > { %v516_v48 = vpack.c.bf16 %v501_v46, %v500_v45  ;;  %v6135_v49 = vpack.c.bf16 %v330_v47, %v326_v43  ;;  %v4968_v43 = vld [vmem:[%s6075_s25 + $0x50] ss:$12 sps:$4 sm:$0xff]  }
 0x129   : > { %v334_v50 = vpop.f32.mrf.mxu0  ;;  %4279 = vmatprep.subr.bf16.mxu1 %v4968_v43 }
 0x12a   : > { %4319 = vmatprep.mubr.bf16.mxu0 %v516_v48  ;;  %v6137_v53 = vmul.f32 0.088388346, %v334_v50  ;;  %4280 = vmatpush3.bf16.msra.mxu1 %v4968_v43 }
 0x12b   : > { %v336_v51 = vpop.f32.mrf.mxu0 }
 0x12d   : > { %v338_v52 = vpop.f32.mrf.mxu0 }
 0x12e   : > { %v6139_v54 = vmul.f32 0.088388346, %v338_v52 }
 0x12f   : > { %v340_v55 = vpop.f32.mrf.mxu0 }
 0x130   : > { %v517_v56 = vpack.c.bf16 %v6139_v54, %v6137_v53  ;;  %v6143_v57 = vpack.c.bf16 %v340_v55, %v336_v51 }
 0x131   : > { %v344_v58 = vpop.f32.mrf.mxu0 }
 0x132   : > { %v6145_v61 = vmul.f32 0.088388346, %v344_v58 }
 0x133   : > { %v346_v59 = vpop.f32.mrf.mxu0 }
 0x135   : > { %v348_v60 = vpop.f32.mrf.mxu0 }
 0x136   : > { %v6147_v62 = vmul.f32 0.088388346, %v348_v60 }
 0x137   : > { %v350_v63 = vpop.f32.mrf.mxu0 }
 0x138   : > { %v518_v18 = vpack.c.bf16 %v6147_v62, %v6145_v61  ;;  %v6151_v19 = vpack.c.bf16 %v350_v63, %v346_v59 }
 0x139   : > { %v354_v20 = vpop.f32.mrf.mxu0 }
 0x13a   : > { %v6155_v25 = vmul.f32 0.088388346, %v354_v20 }
 0x13b   : > { %v356_v23 = vpop.f32.mrf.mxu0 }
 0x13d   : > { %v358_v24 = vpop.f32.mrf.mxu0 }
 0x13e   : > { %v6157_v26 = vmul.f32 0.088388346, %v358_v24 }
 0x13f   : > { %v360_v28 = vpop.f32.mrf.mxu0 }
 0x140   : > { %v519_v29 = vpack.c.bf16 %v6157_v26, %v6155_v25 }
 0x141   : > { %v364_v30 = vpop.f32.mrf.mxu0 }
 0x142   : > { %v508_v34 = vmul.f32 0.088388346, %v364_v30 }
 0x143   : > { %v366_v32 = vpop.f32.mrf.mxu0 }
 0x145   : > { %v368_v33 = vpop.f32.mrf.mxu0 }
 0x146   : > { %v509_v42 = vmul.f32 0.088388346, %v368_v33 }
 0x147   : > { %v370_v44 = vpop.f32.mrf.mxu0 }
 0x148   : > { %v520_v45 = vpack.c.bf16 %v509_v42, %v508_v34 }
 0x149   : > { %v374_v46 = vpop.f32.mrf.mxu0 }
 0x14a   : > { %v510_v50 = vmul.f32 0.088388346, %v374_v46  ;;  %v528_v46 = vpack.c.bf16 %v370_v44, %v366_v32 }
 0x14b   : > { %v376_v47 = vpop.f32.mrf.mxu0 }
 0x14d   : > { %v378_v48 = vpop.f32.mrf.mxu0 }
 0x14e   : > { %v511_v51 = vmul.f32 0.088388346, %v378_v48  ;;  %v527_v48 = vpack.c.bf16 %v360_v28, %v356_v23 }
 0x14f   : > { %v380_v52 = vpop.f32.mrf.mxu0 }
 0x150   : > { %v521_v55 = vpack.c.bf16 %v511_v51, %v510_v50  ;;  %v529_v43 = vpack.c.bf16 %v380_v52, %v376_v47 }
 0x151   : > { %v384_v58 = vpop.f32.mrf.mxu0 }
 0x152   : > { %v512_v63 = vmul.f32 0.088388346, %v384_v58 }
 0x153   : > { %v386_v59 = vpop.f32.mrf.mxu0 }
 0x155   : > { %v388_v60 = vpop.f32.mrf.mxu0 }
 0x156   : > { %v513_v20 = vmul.f32 0.088388346, %v388_v60 }
 0x157   : > { %v390_v21 = vpop.f32.mrf.mxu0 }
 0x158   : > { %v522_v22 = vpack.c.bf16 %v513_v20, %v512_v63  ;;  %v530_v42 = vpack.c.bf16 %v390_v21, %v386_v59 }
 0x159   : > { %v394_v24 = vpop.f32.mrf.mxu0 }
 0x15a   : > { %v514_v27 = vmul.f32 0.088388346, %v394_v24 }
 0x15b   : > { %v396_v25 = vpop.f32.mrf.mxu0 }
 0x15d   : > { %v398_v26 = vpop.f32.mrf.mxu0 }
 0x15e   : > { %v515_v30 = vmul.f32 0.088388346, %v398_v26 }
 0x15f   : > { %v400_v31 = vpop.f32.mrf.mxu0 }
 0x160   : > { %v523_v33 = vpack.c.bf16 %v515_v30, %v514_v27  ;;  %v531_v34 = vpack.c.bf16 %v400_v31, %v396_v25 }
 0x162   : > { %4303 = vmatprep.subr.bf16.mxu0 %v531_v34 }
 0x163   : > { %4304 = vmatpush3.bf16.xpose.msra.mxu0 %v531_v34 }
 0x164   : > { %4305 = vmatprep.subr.bf16.mxu0 %v530_v42 }
 0x16b   : > { %4306 = vmatpush3.bf16.xpose.msra.mxu0 %v530_v42 }
 0x16c   : > { %4307 = vmatprep.subr.bf16.mxu0 %v529_v43 }
 0x173   : > { %4308 = vmatpush3.bf16.xpose.msra.mxu0 %v529_v43 }
 0x174   : > { %4309 = vmatprep.subr.bf16.mxu0 %v528_v46 }
 0x17b   : > { %4310 = vmatpush3.bf16.xpose.msra.mxu0 %v528_v46 }
 0x17c   : > { %4311 = vmatprep.subr.bf16.mxu0 %v527_v48 }
 0x183   : > { %4312 = vmatpush3.bf16.xpose.msra.mxu0 %v527_v48 }
 0x184   : > { %4313 = vmatprep.subr.bf16.mxu0 %v6151_v19 }
 0x18b   : > { %4314 = vmatpush3.bf16.xpose.msra.mxu0 %v6151_v19  ;;  %v4970_v19 = vld [vmem:[%s6075_s25 + $0x20] ss:$12 sps:$4 sm:$0xff]  }
 0x18c   : > { %4315 = vmatprep.subr.bf16.mxu0 %v6143_v57 }
 0x193   : > { %4316 = vmatpush3.bf16.xpose.msra.mxu0 %v6143_v57  ;;  %v4969_v57 = vld [vmem:[%s6075_s25 + $0x38] ss:$12 sps:$4 sm:$0xff]  }
 0x194   : > { %4317 = vmatprep.subr.bf16.mxu0 %v6135_v49  ;;  %4281 = vmatprep.subr.bf16.mxu1 %v4969_v57 }
 0x195   : > { %4282 = vmatpush3.bf16.msra.mxu1 %v4969_v57 }
 0x196   : > { %4283 = vmatprep.subr.bf16.mxu1 %v4970_v19 }
 0x199   : > { %4284 = vmatpush3.bf16.msra.mxu1 %v4970_v19 }
 0x19b   : > { %4318 = vmatpush3.bf16.xpose.msra.mxu0 %v6135_v49  ;;  %v4971_v49 = vld [vmem:[%s6075_s25 + $0x8] ss:$12 sps:$4 sm:$0xff]  }
 0x19c   : > { %4285 = vmatprep.subr.bf16.mxu1 %v4971_v49 }
 0x19d   : > { %4286 = vmatpush3.bf16.msra.mxu1 %v4971_v49 }
 0x1a0   : > { %4288 = vmatmul.mubr.bf16.vlgmr.msra.gmra.mxu1 %v6096_v35 }
 0x1a1   : > { %4291 = vmatprep.mubr.bf16.mxu1 %v6102_v36 }
 0x1a2   : > { %4320 = vmatmul.mubr.bf16.vlgmr.msra.gmra.mxu0 %v517_v56 }
 0x1a3   : > { %4323 = vmatprep.mubr.bf16.mxu0 %v518_v18 }
 0x1a8   : > { %4292 = vmatmul.mubr.bf16.gmra.mxu1 %v6108_v37 }
 0x1a9   : > { %4295 = vmatprep.mubr.bf16.mxu1 %v6114_v38 }
 0x1aa   : > { %4324 = vmatmul.mubr.bf16.gmra.mxu0 %v519_v29 }
 0x1ab   : > { %4327 = vmatprep.mubr.bf16.mxu0 %v520_v45 }
 0x1b0   : > { %4296 = vmatmul.mubr.bf16.gmra.mxu1 %v6120_v39 }
 0x1b1   : > { %4299 = vmatprep.mubr.bf16.mxu1 %v6126_v40 }
 0x1b2   : > { %4328 = vmatmul.mubr.bf16.gmra.mxu0 %v521_v55 }
 0x1b3   : > { %4331 = vmatprep.mubr.bf16.mxu0 %v522_v22 }
 0x1b8   : > { %4300 = vmatmul.mubr.bf16.gmra.mxu1 %v6132_v41 }
 0x1ba   : > { %4332 = vmatmul.mubr.bf16.gmra.mxu0 %v523_v33 }
 0x1bb   : > { %1235 = vmatprep.mubr.bf16.mxu0 %v5874_v17 }
 0x260   : > { %v4289_v25 = vpop.f32.mrf.mxu1 }
 0x262   : > { %v4321_v53 = vpop.f32.mrf.mxu0  ;;  %v437_v26 = vpop.f32.mrf.mxu1 }
 0x263   : > { %v6188_v54 = vadd.f32 %v4321_v53, %v5936_v0 }
 0x264   : > { %v572_v56 = vpop.f32.mrf.mxu0  ;;  %v4290_v27 = vpop.f32.mrf.mxu1 }
 0x265   : > { %v6191_v61 = vadd.f32 %v5936_v0, %v572_v56  ;;  %639 = vmax.xlane.f32.xlu1 %v6188_v54 }
 0x266   : > { %v4322_v35 = vpop.f32.mrf.mxu0  ;;  %v440_v30 = vpop.f32.mrf.mxu1 }
 0x267   : > { %v6195_v36 = vadd.f32 %v4322_v35, %v5936_v0  ;;  %635 = vmax.xlane.f32.xlu0 %v6191_v61 }
 0x268   : > { %v575_v37 = vpop.f32.mrf.mxu0  ;;  %v4293_v31 = vpop.f32.mrf.mxu1 }
 0x269   : > { %v6199_v38 = vadd.f32 %v5936_v0, %v575_v37  ;;  %641 = vmax.xlane.f32.xlu1 %v6195_v36 }
 0x26a   : > { %v4325_v39 = vpop.f32.mrf.mxu0  ;;  %v453_v33 = vpop.f32.mrf.mxu1 }
 0x26b   : > { %637 = vmax.xlane.f32.xlu0 %v6199_v38  ;;  %v6208_v23 = vadd.f32 %v4325_v39, %v5936_v0 }
 0x26c   : > { %v588_v40 = vpop.f32.mrf.mxu0  ;;  %v4294_v34 = vpop.f32.mrf.mxu1 }
 0x26d   : > { %v6204_v41 = vadd.f32 %v5936_v0, %v588_v40 }
 0x26e   : > { %v4326_v62 = vpop.f32.mrf.mxu0  ;;  %v456_v42 = vpop.f32.mrf.mxu1 }
 0x26f   : > { %643 = vmax.xlane.f32.xlu0 %v6204_v41  ;;  %v6216_v44 = vadd.f32 %v4326_v62, %v5936_v0  ;;  %v806_v62 = vpack.c.bf16 %v4294_v34, %v4293_v31 }
 0x270   : > { %v591_v18 = vpop.f32.mrf.mxu0  ;;  %v4297_v43 = vpop.f32.mrf.mxu1 }
 0x271   : > { %v6211_v28 = vadd.f32 %v5936_v0, %v591_v18  ;;  %v805_v18 = vpack.c.bf16 %v456_v42, %v453_v33 }
 0x272   : > { %v4329_v29 = vpop.f32.mrf.mxu0  ;;  %v469_v46 = vpop.f32.mrf.mxu1 }
 0x273   : > { %645 = vmax.xlane.f32.xlu1 %v6211_v28  ;;  %647 = vmax.xlane.f32.xlu0 %v6208_v23  ;;  %v6224_v51 = vadd.f32 %v4329_v29, %v5936_v0  ;;  %v804_v29 = vpack.c.bf16 %v4290_v27, %v4289_v25 }
 0x274   : > { %v604_v32 = vpop.f32.mrf.mxu0  ;;  %v4298_v48 = vpop.f32.mrf.mxu1 }
 0x275   : > { %v6219_v45 = vadd.f32 %v5936_v0, %v604_v32  ;;  %v808_v39 = vpack.c.bf16 %v4298_v48, %v4297_v43  ;;  %v803_v32 = vpack.c.bf16 %v440_v30, %v437_v26 }
 0x276   : > { %v4330_v47 = vpop.f32.mrf.mxu0  ;;  %v472_v57 = vpop.f32.mrf.mxu1 }
 0x277   : > { %649 = vmax.xlane.f32.xlu1 %v6216_v44  ;;  %651 = vmax.xlane.f32.xlu0 %v6219_v45  ;;  %v6232_v59 = vadd.f32 %v4330_v47, %v5936_v0  ;;  %v807_v40 = vpack.c.bf16 %v472_v57, %v469_v46 }
 0x278   : > { %v607_v50 = vpop.f32.mrf.mxu0  ;;  %v4301_v19 = vpop.f32.mrf.mxu1 }
 0x279   : > { %v6227_v52 = vadd.f32 %v5936_v0, %v607_v50 }
 0x27a   : > { %v4333_v55 = vpop.f32.mrf.mxu0  ;;  %v485_v49 = vpop.f32.mrf.mxu1 }
 0x27b   : > { %653 = vmax.xlane.f32.xlu1 %v6227_v52  ;;  %655 = vmax.xlane.f32.xlu0 %v6224_v51  ;;  %v6240_v21 = vadd.f32 %v4333_v55, %v5936_v0 }
 0x27c   : > { %v620_v58 = vpop.f32.mrf.mxu0  ;;  %v4302_v53 = vpop.f32.mrf.mxu1 }
 0x27d   : > { %v6235_v60 = vadd.f32 %v5936_v0, %v620_v58  ;;  %v810_v56 = vpack.c.bf16 %v4302_v53, %v4301_v19 }
 0x27e   : > { %v4334_v63 = vpop.f32.mrf.mxu0  ;;  %v488_v35 = vpop.f32.mrf.mxu1 }
 0x27f   : > { %657 = vmax.xlane.f32.xlu1 %v6232_v59  ;;  %659 = vmax.xlane.f32.xlu0 %v6235_v60  ;;  %v6248_v24 = vadd.f32 %v4334_v63, %v5936_v0  ;;  %v809_v37 = vpack.c.bf16 %v488_v35, %v485_v49 }
 0x280   : > { %v623_v20 = vpop.f32.mrf.mxu0  ;;  %4335 = vmatprep.subr.bf16.mxu1 %v810_v56 }
 0x281   : > { %v6243_v22 = vadd.f32 %v5936_v0, %v623_v20  ;;  %4336 = vmatpush3.bf16.msra.mxu1 %v810_v56 }
 0x282   : > { %4337 = vmatprep.subr.bf16.mxu1 %v809_v37 }
 0x283   : > { %661 = vmax.xlane.f32.xlu1 %v6243_v22  ;;  %663 = vmax.xlane.f32.xlu0 %v6240_v21 }
 0x285   : > { %4338 = vmatpush3.bf16.msra.mxu1 %v809_v37 }
 0x286   : > { %4339 = vmatprep.subr.bf16.mxu1 %v808_v39 }
 0x287   : > { %665 = vmax.xlane.f32.xlu1 %v6248_v24 }
 0x289   : > { %4340 = vmatpush3.bf16.msra.mxu1 %v808_v39 }
 0x28a   : > { %4341 = vmatprep.subr.bf16.mxu1 %v807_v40 }
 0x28d   : > { %4342 = vmatpush3.bf16.msra.mxu1 %v807_v40 }
 0x28e   : > { %4343 = vmatprep.subr.bf16.mxu1 %v806_v62 }
 0x291   : > { %4344 = vmatpush3.bf16.msra.mxu1 %v806_v62 }
 0x292   : > { %4345 = vmatprep.subr.bf16.mxu1 %v805_v18 }
 0x295   : > { %4346 = vmatpush3.bf16.msra.mxu1 %v805_v18 }
 0x296   : > { %4347 = vmatprep.subr.bf16.mxu1 %v804_v29 }
 0x299   : > { %4348 = vmatpush3.bf16.msra.mxu1 %v804_v29 }
 0x29a   : > { %4349 = vmatprep.subr.bf16.mxu1 %v803_v32 }
 0x29d   : > { %4350 = vmatpush3.bf16.msra.mxu1 %v803_v32 }
 0x2ee   : > { %v640_v47 = vpop.xlane.xlu1 %639 }
 0x2ef   : > { %v669_v50 = vsub.f32 %v6188_v54, %v640_v47 }
 0x2f0   : > { %v636_v55 = vpop.xlane.xlu0 %635 }
 0x2f1   : > { %v667_v58 = vsub.f32 %v6191_v61, %v636_v55  ;;  %v687_v31 = vmul.f32 1.442695, %v669_v50 }
 0x2f2   : > { %v642_v63 = vpop.xlane.xlu1 %641 }
 0x2f3   : > { %v683_v20 = vmul.f32 1.442695, %v667_v58  ;;  %v670_v33 = vsub.f32 %v6195_v36, %v642_v63 }
 0x2f4   : > { %v638_v34 = vpop.xlane.xlu0 %637 }
 0x2f5   : > { %5020 = vpow2.f32 %v683_v20  ;;  %v668_v25 = vsub.f32 %v6199_v38, %v638_v34  ;;  %v689_v27 = vmul.f32 1.442695, %v670_v33 }
 0x2f6   : > { %5022 = vpow2.f32 %v687_v31 }
 0x2f7   : > { %v685_v26 = vmul.f32 1.442695, %v668_v25 }
 0x2f8   : > { %v644_v30 = vpop.xlane.xlu0 %643 }
 0x2f9   : > { %5024 = vpow2.f32 %v685_v26  ;;  %v671_v42 = vsub.f32 %v6204_v41, %v644_v30 }
 0x2fa   : > { %5026 = vpow2.f32 %v689_v27 }
 0x2fb   : > { %v691_v54 = vmul.f32 1.442695, %v671_v42 }
 0x2fc   : > { %v646_v43 = vpop.xlane.xlu1 %645  ;;  %v648_v61 = vpop.xlane.xlu0 %647 }
 0x2fd   : > { %5028 = vpow2.f32 %v691_v54  ;;  %v672_v46 = vsub.f32 %v6211_v28, %v646_v43  ;;  %v673_v36 = vsub.f32 %v6208_v23, %v648_v61 }
 0x2ff   : > { %v693_v48 = vmul.f32 1.442695, %v672_v46  ;;  %v695_v57 = vmul.f32 1.442695, %v673_v36  ;;  %v4972_v36 = vld [vmem:[%s6316_s29 + $0x38] sm:$0xff]  }
 0x300   : > { %v650_v19 = vpop.xlane.xlu1 %649  ;;  %v652_v38 = vpop.xlane.xlu0 %651  ;;  %4367 = vmatprep.subr.bf16.mxu1 %v4972_v36 }
 0x301   : > { %5030 = vpow2.f32 %v693_v48  ;;  %v674_v49 = vsub.f32 %v6216_v44, %v650_v19  ;;  %v675_v53 = vsub.f32 %v6219_v45, %v652_v38 }
 0x302   : > { %v6260_v56 = vpop.eup %5020  ;;  %5032 = vpow2.f32 %v695_v57 }
 0x303   : > { %v697_v41 = vmul.f32 1.442695, %v674_v49  ;;  %v699_v35 = vmul.f32 1.442695, %v675_v53  ;;  %715 = vadd.xlane.f32.xlu0 %v6260_v56  ;;  %v6263_v39 = vpop.eup %5022 }
 0x304   : > { %v654_v37 = vpop.xlane.xlu1 %653  ;;  %v656_v28 = vpop.xlane.xlu0 %655 }
 0x305   : > { %5034 = vpow2.f32 %v697_v41  ;;  %v676_v23 = vsub.f32 %v6227_v52, %v654_v37  ;;  %v677_v40 = vsub.f32 %v6224_v51, %v656_v28 }
 0x306   : > { %v6267_v62 = vpop.eup %5024  ;;  %5036 = vpow2.f32 %v699_v35 }
 0x307   : > { %v701_v44 = vmul.f32 1.442695, %v676_v23  ;;  %v703_v45 = vmul.f32 1.442695, %v677_v40  ;;  %719 = vadd.xlane.f32.xlu0 %v6263_v39  ;;  %717 = vadd.xlane.f32.xlu1 %v6267_v62  ;;  %v6271_v32 = vpop.eup %5026 }
 0x308   : > { %v658_v18 = vpop.xlane.xlu1 %657  ;;  %v660_v29 = vpop.xlane.xlu0 %659 }
 0x309   : > { %5038 = vpow2.f32 %v701_v44  ;;  %v678_v47 = vsub.f32 %v6232_v59, %v658_v18  ;;  %v679_v52 = vsub.f32 %v6235_v60, %v660_v29 }
 0x30a   : > { %v6275_v50 = vpop.eup %5028  ;;  %5040 = vpow2.f32 %v703_v45 }
 0x30b   : > { %v705_v51 = vmul.f32 1.442695, %v678_v47  ;;  %v707_v55 = vmul.f32 1.442695, %v679_v52  ;;  %721 = vadd.xlane.f32.xlu1 %v6271_v32  ;;  %723 = vadd.xlane.f32.xlu0 %v6275_v50 }
 0x30c   : > { %v662_v58 = vpop.xlane.xlu1 %661  ;;  %v664_v63 = vpop.xlane.xlu0 %663 }
 0x30d   : > { %5042 = vpow2.f32 %v705_v51  ;;  %v680_v20 = vsub.f32 %v6243_v22, %v662_v58  ;;  %v681_v31 = vsub.f32 %v6240_v21, %v664_v63 }
 0x30e   : > { %v6281_v33 = vpop.eup %5030  ;;  %5044 = vpow2.f32 %v707_v55 }
 0x30f   : > { %v6283_v59 = vpop.eup %5032  ;;  %v709_v60 = vmul.f32 1.442695, %v680_v20  ;;  %v711_v34 = vmul.f32 1.442695, %v681_v31  ;;  %725 = vadd.xlane.f32.xlu1 %v6281_v33 }
 0x310   : > { %727 = vadd.xlane.f32.xlu0 %v6283_v59  ;;  %v666_v25 = vpop.xlane.xlu1 %665 }
 0x311   : > { %5046 = vpow2.f32 %v709_v60  ;;  %v682_v26 = vsub.f32 %v6248_v24, %v666_v25 }
 0x312   : > { %v6288_v27 = vpop.eup %5034  ;;  %5048 = vpow2.f32 %v711_v34 }
 0x313   : > { %v6290_v22 = vpop.eup %5036  ;;  %v713_v21 = vmul.f32 1.442695, %v682_v26  ;;  %729 = vadd.xlane.f32.xlu1 %v6288_v27 }
 0x314   : > { %731 = vadd.xlane.f32.xlu0 %v6290_v22 }
 0x315   : > { %5050 = vpow2.f32 %v713_v21  ;;  %v4974_v21 = vld [vmem:[%s6316_s29 + $0x28] sm:$0xff]  }
 0x316   : > { %v6294_v30 = vpop.eup %5038 }
 0x317   : > { %v6296_v42 = vpop.eup %5040  ;;  %733 = vadd.xlane.f32.xlu1 %v6294_v30 }
 0x318   : > { %735 = vadd.xlane.f32.xlu0 %v6296_v42 }
 0x31a   : > { %v6300_v24 = vpop.eup %5042 }
 0x31b   : > { %v6302_v54 = vpop.eup %5044  ;;  %737 = vadd.xlane.f32.xlu1 %v6300_v24 }
 0x31c   : > { %739 = vadd.xlane.f32.xlu0 %v6302_v54 }
 0x31e   : > { %v6306_v43 = vpop.eup %5046 }
 0x31f   : > { %v6308_v61 = vpop.eup %5048  ;;  %741 = vadd.xlane.f32.xlu1 %v6306_v43 }
 0x320   : > { %743 = vadd.xlane.f32.xlu0 %v6308_v61 }
 0x322   : > { %v6312_v46 = vpop.eup %5050 }
 0x323   : > { %745 = vadd.xlane.f32.xlu1 %v6312_v46 }
 0x38c   : > { %v716_v48 = vpop.xlane.xlu0 %715 }
 0x38d   : > { %5052 = vrcp.f32 %v716_v48 }
 0x390   : > { %v718_v57 = vpop.xlane.xlu1 %717  ;;  %v720_v19 = vpop.xlane.xlu0 %719 }
 0x391   : > { %5054 = vrcp.f32 %v718_v57 }
 0x392   : > { %5056 = vrcp.f32 %v720_v19 }
 0x394   : > { %v722_v38 = vpop.xlane.xlu1 %721  ;;  %v724_v49 = vpop.xlane.xlu0 %723 }
 0x395   : > { %5058 = vrcp.f32 %v722_v38 }
 0x396   : > { %5060 = vrcp.f32 %v724_v49 }
 0x398   : > { %v726_v53 = vpop.xlane.xlu1 %725 }
 0x399   : > { %5062 = vrcp.f32 %v726_v53  ;;  %v728_v41 = vpop.xlane.xlu0 %727 }
 0x39a   : > { %5064 = vrcp.f32 %v728_v41  ;;  %v5053_v35 = vpop.eup %5052 }
 0x39b   : > { %v779_v40 = vmul.f32 %v5053_v35, %v6260_v56 }
 0x39c   : > { %v730_v37 = vpop.xlane.xlu1 %729 }
 0x39d   : > { %5066 = vrcp.f32 %v730_v37  ;;  %v732_v28 = vpop.xlane.xlu0 %731 }
 0x39e   : > { %v5055_v23 = vpop.eup %5054  ;;  %5068 = vrcp.f32 %v732_v28 }
 0x39f   : > { %v780_v44 = vmul.f32 %v5055_v23, %v6267_v62  ;;  %v5057_v45 = vpop.eup %5056  ;;  %v4973_v62 = vld [vmem:[%s6316_s29 + $0x30] sm:$0xff]  }
 0x3a0   : > { %v734_v18 = vpop.xlane.xlu1 %733  ;;  %v781_v51 = vmul.f32 %v5057_v45, %v6263_v39  ;;  %v4977_v45 = vld [vmem:[%s6316_s29 + $0x10] sm:$0xff]  }
 0x3a1   : > { %5070 = vrcp.f32 %v734_v18  ;;  %v736_v29 = vpop.xlane.xlu0 %735  ;;  %v795_v47 = vpack.c.bf16 %v780_v44, %v779_v40 }
 0x3a2   : > { %v5059_v52 = vpop.eup %5058  ;;  %5072 = vrcp.f32 %v736_v29 }
 0x3a3   : > { %4351 = vmatprep.mubr.bf16.mxu1 %v795_v47  ;;  %v782_v55 = vmul.f32 %v5059_v52, %v6271_v32  ;;  %v5061_v58 = vpop.eup %5060 }
 0x3a4   : > { %v738_v63 = vpop.xlane.xlu1 %737  ;;  %v783_v60 = vmul.f32 %v5061_v58, %v6275_v50  ;;  %v4983_v58 = vld [vmem:[%s6343_s1 + $0x60] ss:$8 sps:$4 sm:$0xff]  }
 0x3a5   : > { %5074 = vrcp.f32 %v738_v63  ;;  %v740_v56 = vpop.xlane.xlu0 %739  ;;  %v796_v20 = vpack.c.bf16 %v782_v55, %v781_v51  ;;  %v4978_v55 = vld [vmem:[%s6316_s29 + $0x8] sm:$0xff]   ;;  %v4988_v63 = vld [vmem:[%s6343_s1 + $0x54] ss:$8 sps:$4 sm:$0xff]  }
 0x3a6   : > { %v5063_v31 = vpop.eup %5062  ;;  %5076 = vrcp.f32 %v740_v56  ;;  %v4986_v56 = vld [vmem:[%s6343_s1 + $0x50] ss:$8 sps:$4 sm:$0xff]  }
 0x3a7   : > { %4352 = vmatmul.mubr.bf16.vlgmr.msra.gmra.mxu1 %v796_v20  ;;  %v784_v34 = vmul.f32 %v5063_v31, %v6281_v33  ;;  %v5065_v25 = vpop.eup %5064  ;;  %v4991_v20 = vld [vmem:[%s6343_s1 + $0x44] ss:$8 sps:$4 sm:$0xff]   ;;  %v4994_v31 = vld [vmem:[%s6343_s1 + $0x34] ss:$8 sps:$4 sm:$0xff]  }
 0x3a8   : > { %v742_v26 = vpop.xlane.xlu1 %741  ;;  %4368 = vmatpush3.bf16.msra.mxu1 %v4972_v36  ;;  %v785_v57 = vmul.f32 %v5065_v25, %v6283_v59  ;;  %v4975_v36 = vld [vmem:[%s6316_s29 + $0x20] sm:$0xff]  }
 0x3a9   : > { %5078 = vrcp.f32 %v742_v26  ;;  %v744_v39 = vpop.xlane.xlu0 %743  ;;  %v797_v32 = vpack.c.bf16 %v784_v34, %v783_v60  ;;  %4369 = vmatprep.subr.bf16.mxu1 %v4973_v62  ;;  %v4992_v60 = vld [vmem:[%s6343_s1 + $0x30] ss:$8 sps:$4 sm:$0xff]   ;;  %v4997_v34 = vld [vmem:[%s6343_s1 + $0x24] ss:$8 sps:$4 sm:$0xff]   ;;  %v4995_v25 = vld [vmem:[%s6343_s1 + $0x20] ss:$8 sps:$4 sm:$0xff]  }
 0x3aa   : > { %v5067_v48 = vpop.eup %5066  ;;  %5080 = vrcp.f32 %v744_v39 }
 0x3ab   : > { %4355 = vmatprep.mubr.bf16.mxu1 %v797_v32  ;;  %v786_v19 = vmul.f32 %v5067_v48, %v6288_v27  ;;  %v5069_v50 = vpop.eup %5068  ;;  %v4976_v27 = vld [vmem:[%s6316_s29 + $0x18] sm:$0xff]  }
 0x3ac   : > { %v746_v38 = vpop.xlane.xlu1 %745  ;;  %4370 = vmatpush3.bf16.msra.mxu1 %v4973_v62  ;;  %v787_v53 = vmul.f32 %v5069_v50, %v6290_v22  ;;  %v4989_v62 = vld [vmem:[%s6343_s1 + $0x40] ss:$8 sps:$4 sm:$0xff]  }
 0x3ad   : > { %5082 = vrcp.f32 %v746_v38  ;;  %v798_v33 = vpack.c.bf16 %v786_v19, %v785_v57  ;;  %4371 = vmatprep.subr.bf16.mxu1 %v4974_v21 }
 0x3ae   : > { %v5071_v49 = vpop.eup %5070 }
 0x3af   : > { %4356 = vmatmul.mubr.bf16.gmra.mxu1 %v798_v33  ;;  %v788_v41 = vmul.f32 %v5071_v49, %v6294_v30  ;;  %v5073_v35 = vpop.eup %5072 }
 0x3b0   : > { %4372 = vmatpush3.bf16.msra.mxu1 %v4974_v21  ;;  %v789_v28 = vmul.f32 %v5073_v35, %v6296_v42 }
 0x3b1   : > { %v799_v59 = vpack.c.bf16 %v788_v41, %v787_v53  ;;  %4373 = vmatprep.subr.bf16.mxu1 %v4975_v36 }
 0x3b2   : > { %v5075_v37 = vpop.eup %5074 }
 0x3b3   : > { %4359 = vmatprep.mubr.bf16.mxu1 %v799_v59  ;;  %v790_v23 = vmul.f32 %v5075_v37, %v6300_v24  ;;  %v5077_v40 = vpop.eup %5076 }
 0x3b4   : > { %4374 = vmatpush3.bf16.msra.mxu1 %v4975_v36  ;;  %v791_v30 = vmul.f32 %v5077_v40, %v6302_v54  ;;  %v4979_v54 = vld [vmem:[%s6316_s29] sm:$0xff]  }
 0x3b5   : > { %v800_v44 = vpack.c.bf16 %v790_v23, %v789_v28  ;;  %4375 = vmatprep.subr.bf16.mxu1 %v4976_v27 }
 0x3b6   : > { %v5079_v22 = vpop.eup %5078 }
 0x3b7   : > { %4360 = vmatmul.mubr.bf16.gmra.mxu1 %v800_v44  ;;  %v792_v18 = vmul.f32 %v5079_v22, %v6306_v43  ;;  %v5081_v29 = vpop.eup %5080  ;;  %v4980_v43 = vld [vmem:[%s6343_s1 + $0x70] ss:$8 sps:$4 sm:$0xff]  }
 0x3b8   : > { %4376 = vmatpush3.bf16.msra.mxu1 %v4976_v27  ;;  %v793_v24 = vmul.f32 %v5081_v29, %v6308_v61  ;;  %v4982_v61 = vld [vmem:[%s6343_s1 + $0x74] ss:$8 sps:$4 sm:$0xff]   ;;  %v5003_v29 = vld [vmem:[%s6343_s1 + $0x4] ss:$8 sps:$4 sm:$0xff]  }
 0x3b9   : > { %v801_v47 = vpack.c.bf16 %v792_v18, %v791_v30  ;;  %4377 = vmatprep.subr.bf16.mxu1 %v4977_v45  ;;  %1203 = vmatprep.subr.bf16.mxu0 %v4982_v61  ;;  %v5000_v30 = vld [vmem:[%s6343_s1 + $0x14] ss:$8 sps:$4 sm:$0xff]   ;;  %v4998_v18 = vld [vmem:[%s6343_s1 + $0x10] ss:$8 sps:$4 sm:$0xff]  }
 0x3ba   : > { %v5083_v42 = vpop.eup %5082  ;;  %1204 = vmatpush1.bf16.msra.mxu0 %v4980_v43 }
 0x3bb   : > { %4363 = vmatprep.mubr.bf16.mxu1 %v801_v47  ;;  %v794_v52 = vmul.f32 %v5083_v42, %v6312_v46  ;;  %v4985_v46 = vld [vmem:[%s6343_s1 + $0x64] ss:$8 sps:$4 sm:$0xff]   ;;  %v5001_v47 = vld [vmem:[%s6343_s1] ss:$8 sps:$4 sm:$0xff]  }
 0x3bc   : > { %4378 = vmatpush3.bf16.msra.mxu1 %v4977_v45  ;;  %1205 = vmatprep.subr.bf16.mxu0 %v4985_v46 }
 0x3bd   : > { %v802_v51 = vpack.c.bf16 %v794_v52, %v793_v24  ;;  %4379 = vmatprep.subr.bf16.mxu1 %v4978_v55 }
 0x3be   : > { %1206 = vmatpush1.bf16.msra.mxu0 %v4983_v58 }
 0x3bf   : > { %4364 = vmatmul.mubr.bf16.gmra.mxu1 %v802_v51  ;;  %1207 = vmatprep.subr.bf16.mxu0 %v4988_v63 }
 0x3c0   : > { %4380 = vmatpush3.bf16.msra.mxu1 %v4978_v55 }
 0x3c1   : > { %4381 = vmatprep.subr.bf16.mxu1 %v4979_v54 }
 0x3c2   : > { %1208 = vmatpush1.bf16.msra.mxu0 %v4986_v56 }
 0x3c3   : > { %1209 = vmatprep.subr.bf16.mxu0 %v4991_v20 }
 0x3c4   : > { %4382 = vmatpush3.bf16.msra.mxu1 %v4979_v54 }
 0x3c6   : > { %1210 = vmatpush1.bf16.msra.mxu0 %v4989_v62 }
 0x3c7   : > { %1211 = vmatprep.subr.bf16.mxu0 %v4994_v31 }
 0x3ca   : > { %1212 = vmatpush1.bf16.msra.mxu0 %v4992_v60 }
 0x3cb   : > { %1213 = vmatprep.subr.bf16.mxu0 %v4997_v34 }
 0x3ce   : > { %1214 = vmatpush1.bf16.msra.mxu0 %v4995_v25 }
 0x3cf   : > { %1215 = vmatprep.subr.bf16.mxu0 %v5000_v30 }
 0x3d2   : > { %1216 = vmatpush1.bf16.msra.mxu0 %v4998_v18 }
 0x3d3   : > { %1217 = vmatprep.subr.bf16.mxu0 %v5003_v29 }
 0x3d6   : > { %1218 = vmatpush1.bf16.msra.mxu0 %v5001_v47 }
 0x467   : > { %v4353_v26 = vpop.f32.mrf.mxu1 }
 0x469   : > { %v845_v39 = vpop.f32.mrf.mxu1 }
 0x46b   : > { %v4354_v32 = vpop.f32.mrf.mxu1 }
 0x46c   : > { %v909_v57 = vpack.c.bf16 %v4354_v32, %v4353_v26 }
 0x46d   : > { %v848_v21 = vpop.f32.mrf.mxu1 }
 0x46e   : > { %v908_v48 = vpack.c.bf16 %v848_v21, %v845_v39 }
 0x46f   : > { %v4357_v19 = vpop.f32.mrf.mxu1 }
 0x470   : > { %4383 = vmatprep.mubr.bf16.mxu1 %v908_v48 }
 0x471   : > { %v861_v50 = vpop.f32.mrf.mxu1  ;;  %4384 = vmatmul.mubr.bf16.vlgmr.msra.gmra.mxu1 %v909_v57 }
 0x473   : > { %v4358_v38 = vpop.f32.mrf.mxu1 }
 0x474   : > { %v911_v49 = vpack.c.bf16 %v4358_v38, %v4357_v19 }
 0x475   : > { %v864_v33 = vpop.f32.mrf.mxu1 }
 0x476   : > { %v910_v36 = vpack.c.bf16 %v864_v33, %v861_v50  ;;  %v5005_v33 = vld [vmem:[%s6352_s7 + $0x38] sm:$0xff]  }
 0x477   : > { %v4361_v53 = vpop.f32.mrf.mxu1 }
 0x478   : > { %4387 = vmatprep.mubr.bf16.mxu1 %v910_v36  ;;  %v5006_v36 = vld [vmem:[%s6352_s7 + $0x70] sm:$0xff]  }
 0x479   : > { %v877_v41 = vpop.f32.mrf.mxu1  ;;  %4388 = vmatmul.mubr.bf16.gmra.mxu1 %v911_v49  ;;  %v5010_v49 = vld [vmem:[%s6352_s7 + $0x60] sm:$0xff]  }
 0x47b   : > { %v4362_v35 = vpop.f32.mrf.mxu1 }
 0x47c   : > { %v913_v37 = vpack.c.bf16 %v4362_v35, %v4361_v53  ;;  %v5011_v53 = vld [vmem:[%s6352_s7 + $0x20] sm:$0xff]   ;;  %v5013_v35 = vld [vmem:[%s6352_s7 + $0x18] sm:$0xff]  }
 0x47d   : > { %v880_v59 = vpop.f32.mrf.mxu1 }
 0x47e   : > { %v912_v27 = vpack.c.bf16 %v880_v59, %v877_v41  ;;  %v5012_v41 = vld [vmem:[%s6352_s7 + $0x58] sm:$0xff]   ;;  %v5014_v59 = vld [vmem:[%s6352_s7 + $0x50] sm:$0xff]  }
 0x47f   : > { %v4365_v28 = vpop.f32.mrf.mxu1 }
 0x480   : > { %4391 = vmatprep.mubr.bf16.mxu1 %v912_v27  ;;  %v5015_v27 = vld [vmem:[%s6352_s7 + $0x10] sm:$0xff]  }
 0x481   : > { %v893_v23 = vpop.f32.mrf.mxu1  ;;  %4392 = vmatmul.mubr.bf16.gmra.mxu1 %v913_v37  ;;  %v5016_v37 = vld [vmem:[%s6352_s7 + $0x48] sm:$0xff]  }
 0x483   : > { %v4366_v40 = vpop.f32.mrf.mxu1 }
 0x484   : > { %v915_v22 = vpack.c.bf16 %v4366_v40, %v4365_v28  ;;  %v5017_v28 = vld [vmem:[%s6352_s7 + $0x8] sm:$0xff]   ;;  %v5019_v40 = vld [vmem:[%s6352_s7] sm:$0xff]  }
 0x485   : > { %v896_v44 = vpop.f32.mrf.mxu1 }
 0x486   : > { %v914_v45 = vpack.c.bf16 %v896_v44, %v893_v23  ;;  %v5018_v23 = vld [vmem:[%s6352_s7 + $0x40] sm:$0xff]  }
 0x488   : > { %4395 = vmatprep.mubr.bf16.mxu1 %v914_v45 }
 0x489   : > { %4396 = vmatmul.mubr.bf16.gmra.mxu1 %v915_v22 }
 0x531   : > { %v4385_v42 = vpop.f32.mrf.mxu1 }
 0x532   : > { %v6376_v56 = vadd.f32 %v5718_v3, %v4385_v42 }
 0x533   : > { %v1017_v24 = vpop.f32.mrf.mxu1 }
 0x534   : > { %v6364_v55 = vadd.f32 %v5726_v1, %v1017_v24 }
 0x535   : > { %v4386_v52 = vpop.f32.mrf.mxu1 }
 0x536   : > { %v6373_v58 = vadd.f32 %v5714_v4, %v4386_v52 }
 0x537   : > { %v1020_v51 = vpop.f32.mrf.mxu1 }
 0x538   : > { %v6367_v54 = vadd.f32 %v5722_v2, %v1020_v51  ;;  %v1097_v1 = vpack.c.bf16 %v6373_v58, %v6376_v56 }
 0x539   : > { %v4389_v43 = vpop.f32.mrf.mxu1 }
 0x53a   : > { %v1096_v61 = vpack.c.bf16 %v6367_v54, %v6364_v55  ;;  %v6394_v25 = vadd.f32 %v5702_v7, %v4389_v43 }
 0x53b   : > { %v1033_v46 = vpop.f32.mrf.mxu1 }
 0x53c   : > { %1236 = vmatmul.mubr.bf16.vlgmr.msra.gmra.mxu0 %v1096_v61  ;;  %v6385_v31 = vadd.f32 %v5710_v5, %v1033_v46 }
 0x53d   : > { %1245 = vmatprep.mubr.bf16.mxu0 %v5874_v17  ;;  %v4390_v63 = vpop.f32.mrf.mxu1 }
 0x53e   : > { %v6391_v3 = vadd.f32 %v5698_v8, %v4390_v63 }
 0x53f   : > { %v1036_v2 = vpop.f32.mrf.mxu1 }
 0x540   : > { %v6382_v20 = vadd.f32 %v5706_v6, %v1036_v2  ;;  %v1099_v6 = vpack.c.bf16 %v6391_v3, %v6394_v25 }
 0x541   : > { %v4393_v62 = vpop.f32.mrf.mxu1 }
 0x542   : > { %v1098_v4 = vpack.c.bf16 %v6382_v20, %v6385_v31 }
 0x543   : > { %v1049_v60 = vpop.f32.mrf.mxu1 }
 0x544   : > { %1246 = vmatmul.mubr.bf16.gmra.mxu0 %v1097_v1  ;;  %v6403_v32 = vadd.f32 %v5694_v9, %v1049_v60 }
 0x545   : > { %1255 = vmatprep.mubr.bf16.mxu0 %v5874_v17  ;;  %v4394_v34 = vpop.f32.mrf.mxu1 }
 0x546   : > { %v6409_v7 = vadd.f32 %v5682_v12, %v4394_v34 }
 0x547   : > { %v1052_v26 = vpop.f32.mrf.mxu1 }
 0x548   : > { %v6400_v5 = vadd.f32 %v5690_v10, %v1052_v26  ;;  %v6412_v10 = vadd.f32 %v5686_v11, %v4393_v62 }
 0x549   : > { %v4397_v39 = vpop.f32.mrf.mxu1 }
 0x54a   : > { %v1100_v8 = vpack.c.bf16 %v6400_v5, %v6403_v32  ;;  %v1101_v9 = vpack.c.bf16 %v6409_v7, %v6412_v10  ;;  %v6430_v38 = vadd.f32 %v5670_v15, %v4397_v39  ;;  %v5009_v15 = vld [vmem:[%s6352_s7 + $0x28] sm:$0xff]  }
 0x54b   : > { %v1065_v21 = vpop.f32.mrf.mxu1 }
 0x54c   : > { %1256 = vmatmul.mubr.bf16.gmra.mxu0 %v1098_v4  ;;  %v6421_v12 = vadd.f32 %v5678_v13, %v1065_v21 }
 0x54d   : > { %1265 = vmatprep.mubr.bf16.mxu0 %v5874_v17  ;;  %v4398_v48 = vpop.f32.mrf.mxu1 }
 0x54e   : > { %v6427_v50 = vadd.f32 %v5666_v16, %v4398_v48  ;;  %v5008_v16 = vld [vmem:[%s6352_s7 + $0x68] sm:$0xff]  }
 0x54f   : > { %v1068_v57 = vpop.f32.mrf.mxu1 }
 0x550   : > { %v6418_v19 = vadd.f32 %v5674_v14, %v1068_v57  ;;  %v1103_v13 = vpack.c.bf16 %v6427_v50, %v6430_v38  ;;  %v5004_v14 = vld [vmem:[%s6352_s7 + $0x78] sm:$0xff]  }
 0x551   : > { %4079 = vmatprep.subr.bf16.mxu1 %v5004_v14 }
 0x552   : > { %v1102_v11 = vpack.c.bf16 %v6418_v19, %v6421_v12  ;;  %4080 = vmatpush3.bf16.msra.mxu1 %v5005_v33 }
 0x553   : > { %4081 = vmatprep.subr.bf16.mxu1 %v5006_v36 }
 0x554   : > { %1266 = vmatmul.mubr.bf16.gmra.mxu0 %v1099_v6 }
 0x555   : > { %1275 = vmatprep.mubr.bf16.mxu0 %v5874_v17 }
 0x55c   : > { %1276 = vmatmul.mubr.bf16.gmra.mxu0 %v1100_v8 }
 0x55d   : > { %1285 = vmatprep.mubr.bf16.mxu0 %v5874_v17 }
 0x564   : > { %1286 = vmatmul.mubr.bf16.gmra.mxu0 %v1101_v9 }
 0x565   : > { %1295 = vmatprep.mubr.bf16.mxu0 %v5874_v17 }
 0x56c   : > { %1296 = vmatmul.mubr.bf16.gmra.mxu0 %v1102_v11 }
 0x56d   : > { %1305 = vmatprep.mubr.bf16.mxu0 %v5874_v17  ;;  %v5007_v17 = vld [vmem:[%s6352_s7 + $0x30] sm:$0xff]  }
 0x56e   : > { %4082 = vmatpush3.bf16.msra.mxu1 %v5007_v17 }
 0x56f   : > { %4083 = vmatprep.subr.bf16.mxu1 %v5008_v16 }
 0x572   : > { %4084 = vmatpush3.bf16.msra.mxu1 %v5009_v15 }
 0x573   : > { %4085 = vmatprep.subr.bf16.mxu1 %v5010_v49 }
 0x574   : > { %1306 = vmatmul.mubr.bf16.gmra.mxu0 %v1103_v13 }
 0x576   : > { %4086 = vmatpush3.bf16.msra.mxu1 %v5011_v53 }
 0x577   : > { %4087 = vmatprep.subr.bf16.mxu1 %v5012_v41 }
 0x57a   : > { %4088 = vmatpush3.bf16.msra.mxu1 %v5013_v35 }
 0x57b   : > { %4089 = vmatprep.subr.bf16.mxu1 %v5014_v59 }
 0x57e   : > { %4090 = vmatpush3.bf16.msra.mxu1 %v5015_v27 }
 0x57f   : > { %4091 = vmatprep.subr.bf16.mxu1 %v5016_v37 }
 0x582   : > { %4092 = vmatpush3.bf16.msra.mxu1 %v5017_v28 }
 0x583   : > { %4093 = vmatprep.subr.bf16.mxu1 %v5018_v23 }
 0x586   : > { %4094 = vmatpush3.bf16.msra.mxu1 %v5019_v40 }
 0x5fc   : > { %v1237_v44 = vpop.f32.mrf.mxu0 }
 0x5fd   : > { %v1348_v45 = vmul.f32 0.044715, %v1237_v44  ;;  %v6450_v27 = vmul.f32 0.5, %v1237_v44 }
 0x5fe   : > { %v1239_v22 = vpop.f32.mrf.mxu0 }
 0x5ff   : > { %v1380_v30 = vmul.f32 %v1348_v45, %v1237_v44  ;;  %v1349_v18 = vmul.f32 0.044715, %v1239_v22 }
 0x600   : > { %v1241_v29 = vpop.f32.mrf.mxu0 }
 0x601   : > { %v1412_v47 = vmul.f32 %v1380_v30, %v1237_v44  ;;  %v1381_v42 = vmul.f32 %v1349_v18, %v1239_v22  ;;  %v1350_v24 = vmul.f32 0.044715, %v1241_v29 }
 0x602   : > { %v1243_v52 = vpop.f32.mrf.mxu0 }
 0x603   : > { %v1444_v51 = vadd.f32 %v1412_v47, %v1237_v44  ;;  %v1413_v43 = vmul.f32 %v1381_v42, %v1239_v22  ;;  %v1382_v61 = vmul.f32 %v1350_v24, %v1241_v29  ;;  %v1351_v46 = vmul.f32 0.044715, %v1243_v52 }
 0x604   : > { %v1247_v63 = vpop.f32.mrf.mxu0  ;;  %v1318_v47 = vmul.f32 0.5, %v1241_v29 }
 0x605   : > { %v1476_v1 = vmul.f32 0.7978846, %v1444_v51  ;;  %v1445_v2 = vadd.f32 %v1413_v43, %v1239_v22  ;;  %v1414_v62 = vmul.f32 %v1382_v61, %v1241_v29  ;;  %v1383_v4 = vmul.f32 %v1351_v46, %v1243_v52 }
 0x606   : > { %v1352_v60 = vmul.f32 0.044715, %v1247_v63  ;;  %v1249_v34 = vpop.f32.mrf.mxu0  ;;  %v6452_v51 = vmul.f32 0.5, %v1239_v22  ;;  %v6454_v43 = vmul.f32 0.5, %v1243_v52 }
 0x607   : > { %v1477_v6 = vmul.f32 0.7978846, %v1445_v2  ;;  %v1446_v26 = vadd.f32 %v1414_v62, %v1241_v29  ;;  %v1415_v39 = vmul.f32 %v1383_v4, %v1243_v52  ;;  %5084 = vtanh.f32 %v1476_v1 }
 0x608   : > { %v1384_v8 = vmul.f32 %v1352_v60, %v1247_v63  ;;  %v1353_v21 = vmul.f32 0.044715, %v1249_v34  ;;  %v1251_v48 = vpop.f32.mrf.mxu0  ;;  %v6458_v4 = vmul.f32 0.5, %v1249_v34  ;;  %v6460_v60 = vmul.f32 0.5, %v1247_v63 }
 0x609   : > { %v1478_v9 = vmul.f32 0.7978846, %v1446_v26  ;;  %v1447_v57 = vadd.f32 %v1415_v39, %v1243_v52  ;;  %v1354_v11 = vmul.f32 0.044715, %v1251_v48  ;;  %5086 = vtanh.f32 %v1477_v6 }
 0x60a   : > { %v1416_v13 = vmul.f32 %v1384_v8, %v1247_v63  ;;  %v1385_v14 = vmul.f32 %v1353_v21, %v1249_v34  ;;  %v1253_v33 = vpop.f32.mrf.mxu0  ;;  %v6465_v8 = vmul.f32 0.5, %v1251_v48 }
 0x60b   : > { %5088 = vtanh.f32 %v1478_v9  ;;  %v1479_v36 = vmul.f32 0.7978846, %v1447_v57  ;;  %v1386_v17 = vmul.f32 %v1354_v11, %v1251_v48  ;;  %v1355_v16 = vmul.f32 0.044715, %v1253_v33 }
 0x60c   : > { %v1448_v15 = vadd.f32 %v1416_v13, %v1247_v63  ;;  %v1417_v49 = vmul.f32 %v1385_v14, %v1249_v34  ;;  %v1257_v53 = vpop.f32.mrf.mxu0 }
 0x60d   : > { %5090 = vtanh.f32 %v1479_v36  ;;  %v1418_v41 = vmul.f32 %v1386_v17, %v1251_v48  ;;  %v1387_v35 = vmul.f32 %v1355_v16, %v1253_v33  ;;  %v1356_v59 = vmul.f32 0.044715, %v1257_v53 }
 0x60e   : > { %v1480_v37 = vmul.f32 0.7978846, %v1448_v15  ;;  %v1449_v28 = vadd.f32 %v1417_v49, %v1249_v34  ;;  %v1259_v23 = vpop.f32.mrf.mxu0  ;;  %v6467_v34 = vmul.f32 0.5, %v1253_v33  ;;  %v6473_v36 = vmul.f32 0.5, %v1257_v53 }
 0x60f   : > { %v1450_v40 = vadd.f32 %v1418_v41, %v1251_v48  ;;  %v1419_v45 = vmul.f32 %v1387_v35, %v1253_v33  ;;  %v1388_v30 = vmul.f32 %v1356_v59, %v1257_v53  ;;  %v1357_v18 = vmul.f32 0.044715, %v1259_v23 }
 0x610   : > { %v1481_v42 = vmul.f32 0.7978846, %v1449_v28  ;;  %v1261_v24 = vpop.f32.mrf.mxu0  ;;  %v6476_v15 = vmul.f32 0.5, %v1259_v23 }
 0x611   : > { %v1482_v61 = vmul.f32 0.7978846, %v1450_v40  ;;  %v1451_v46 = vadd.f32 %v1419_v45, %v1253_v33  ;;  %v1420_v1 = vmul.f32 %v1388_v30, %v1257_v53  ;;  %v1389_v2 = vmul.f32 %v1357_v18, %v1259_v23 }
 0x612   : > { %5092 = vtanh.f32 %v1481_v42  ;;  %v1358_v44 = vmul.f32 0.044715, %v1261_v24  ;;  %v6456_v62 = vpop.f32.mrf.mxu0  ;;  %v6478_v49 = vmul.f32 0.5, %v1261_v24 }
 0x613   : > { %5094 = vtanh.f32 %v1480_v37  ;;  %v1483_v29 = vmul.f32 0.7978846, %v1451_v46  ;;  %v1452_v6 = vadd.f32 %v1420_v1, %v1257_v53  ;;  %v1421_v26 = vmul.f32 %v1389_v2, %v1259_v23 }
 0x614   : > { %5096 = vtanh.f32 %v1482_v61  ;;  %v1390_v22 = vmul.f32 %v1358_v44, %v1261_v24  ;;  %v1359_v52 = vmul.f32 0.044715, %v6456_v62  ;;  %v6463_v39 = vpop.f32.mrf.mxu0  ;;  %v5085_v21 = vpop.eup %5084 }
 0x615   : > { %5098 = vtanh.f32 %v1483_v29  ;;  %v1484_v9 = vmul.f32 0.7978846, %v1452_v6  ;;  %v1453_v57 = vadd.f32 %v1421_v26, %v1259_v23  ;;  %v1360_v13 = vmul.f32 0.044715, %v6463_v39 }
 0x616   : > { %v1422_v63 = vmul.f32 %v1390_v22, %v1261_v24  ;;  %v1391_v11 = vmul.f32 %v1359_v52, %v6456_v62  ;;  %v6471_v14 = vpop.f32.mrf.mxu0  ;;  %v5087_v17 = vpop.eup %5086  ;;  %v1540_v33 = vadd.f32 1.0, %v5085_v21 }
 0x617   : > { %v1485_v16 = vmul.f32 0.7978846, %v1453_v57  ;;  %v1361_v48 = vmul.f32 0.044715, %v6471_v14  ;;  %v1392_v37 = vmul.f32 %v1360_v13, %v6463_v39  ;;  %5100 = vtanh.f32 %v1484_v9 }
 0x618   : > { %v5089_v41 = vpop.eup %5088  ;;  %v1454_v35 = vadd.f32 %v1422_v63, %v1261_v24  ;;  %v1423_v59 = vmul.f32 %v1391_v11, %v6456_v62  ;;  %v6482_v28 = vpop.f32.mrf.mxu0  ;;  %v1541_v24 = vadd.f32 1.0, %v5087_v17  ;;  %v1572_v63 = vmul.f32 %v1540_v33, %v6450_v27 }
 0x619   : > { %v1542_v40 = vadd.f32 1.0, %v5089_v41  ;;  %v1393_v53 = vmul.f32 %v1361_v48, %v6471_v14  ;;  %v1362_v45 = vmul.f32 0.044715, %v6482_v28  ;;  %5102 = vtanh.f32 %v1485_v16 }
 0x61a   : > { %v5091_v30 = vpop.eup %5090  ;;  %v1455_v23 = vadd.f32 %v1423_v59, %v6456_v62  ;;  %v1424_v18 = vmul.f32 %v1392_v37, %v6463_v39  ;;  %v6488_v42 = vpop.f32.mrf.mxu0  ;;  %v1486_v61 = vmul.f32 0.7978846, %v1454_v35 }
 0x61b   : > { %v1425_v46 = vmul.f32 %v1393_v53, %v6471_v14  ;;  %v1394_v1 = vmul.f32 %v1362_v45, %v6482_v28  ;;  %v1363_v2 = vmul.f32 0.044715, %v6488_v42  ;;  %v1574_v44 = vmul.f32 %v1542_v40, %v1318_v47 }
 0x61c   : > { %v1487_v29 = vmul.f32 0.7978846, %v1455_v23  ;;  %v1456_v6 = vadd.f32 %v1424_v18, %v6463_v39  ;;  %v6494_v26 = vpop.f32.mrf.mxu0  ;;  %v1543_v22 = vadd.f32 1.0, %v5091_v30  ;;  %v1573_v47 = vmul.f32 %v1541_v24, %v6452_v51 }
 0x61d   : > { %v1457_v52 = vadd.f32 %v1425_v46, %v6471_v14  ;;  %v1426_v21 = vmul.f32 %v1394_v1, %v6482_v28  ;;  %v1395_v9 = vmul.f32 %v1363_v2, %v6488_v42  ;;  %v1364_v57 = vmul.f32 0.044715, %v6494_v26 }
 0x61e   : > { %5104 = vtanh.f32 %v1487_v29  ;;  %v6501_v11 = vpop.f32.mrf.mxu0  ;;  %v1575_v13 = vmul.f32 %v1543_v22, %v6454_v43  ;;  %v1488_v37 = vmul.f32 0.7978846, %v1456_v6  ;;  %v1604_v45 = vpack.c.bf16 %v1574_v44, %v1572_v63 }
 0x61f   : > { %v5093_v17 = vpop.eup %5092  ;;  %v1489_v16 = vmul.f32 0.7978846, %v1457_v52  ;;  %v1458_v48 = vadd.f32 %v1426_v21, %v6482_v28  ;;  %v1427_v41 = vmul.f32 %v1395_v9, %v6488_v42  ;;  %v1396_v35 = vmul.f32 %v1364_v57, %v6494_v26 }
 0x620   : > { %v5095_v59 = vpop.eup %5094  ;;  %5106 = vtanh.f32 %v1486_v61  ;;  %v1365_v27 = vmul.f32 0.044715, %v6501_v11  ;;  %v6509_v33 = vpop.f32.mrf.mxu0  ;;  %v1605_v40 = vpack.c.bf16 %v1575_v13, %v1573_v47  ;;  %v1545_v30 = vadd.f32 1.0, %v5093_v17 }
 0x621   : > { %v5097_v53 = vpop.eup %5096  ;;  %v1459_v51 = vadd.f32 %v1427_v41, %v6488_v42  ;;  %v1428_v43 = vmul.f32 %v1396_v35, %v6494_v26  ;;  %5108 = vtanh.f32 %v1489_v16  ;;  %v1490_v18 = vmul.f32 0.7978846, %v1458_v48 }
 0x622   : > { %v5099_v23 = vpop.eup %5098  ;;  %v1397_v24 = vmul.f32 %v1365_v27, %v6501_v11  ;;  %v1366_v61 = vmul.f32 0.044715, %v6509_v33  ;;  %1782 = vmatprep.mubr.bf16.mxu1 %v1605_v40  ;;  %v6515_v46 = vpop.f32.mrf.mxu0  ;;  %v1544_v6 = vadd.f32 1.0, %v5095_v59  ;;  %v1546_v9 = vadd.f32 1.0, %v5097_v53 }
 0x623   : > { %v1491_v1 = vmul.f32 0.7978846, %v1459_v51  ;;  %v1460_v2 = vadd.f32 %v1428_v43, %v6494_v26  ;;  %v1367_v29 = vmul.f32 0.044715, %v6515_v46  ;;  %1783 = vmatmul.mubr.bf16.vlgmr.msra.gmra.mxu1 %v1604_v45  ;;  %v1547_v21 = vadd.f32 1.0, %v5099_v23 }
 0x624   : > { %v1429_v44 = vmul.f32 %v1397_v24, %v6501_v11  ;;  %v1398_v22 = vmul.f32 %v1366_v61, %v6509_v33  ;;  %v6521_v52 = vpop.f32.mrf.mxu0  ;;  %v1577_v47 = vmul.f32 %v1545_v30, %v6458_v4  ;;  %v5101_v13 = vpop.eup %5100  ;;  %v1576_v51 = vmul.f32 %v1544_v6, %v6460_v60 }
 0x625   : > { %5110 = vtanh.f32 %v1491_v1  ;;  %v1399_v57 = vmul.f32 %v1367_v29, %v6515_v46  ;;  %v1368_v63 = vmul.f32 0.044715, %v6521_v52  ;;  %v1492_v17 = vmul.f32 0.7978846, %v1460_v2 }
 0x626   : > { %v1461_v16 = vadd.f32 %v1429_v44, %v6501_v11  ;;  %v1430_v48 = vmul.f32 %v1398_v22, %v6509_v33  ;;  %v6528_v41 = vpop.f32.mrf.mxu0  ;;  %v1579_v35 = vmul.f32 %v1547_v21, %v6467_v34  ;;  %v5103_v59 = vpop.eup %5102  ;;  %v1578_v23 = vmul.f32 %v1546_v9, %v6465_v8 }
 0x627   : > { %v1431_v27 = vmul.f32 %v1399_v57, %v6515_v46  ;;  %v1400_v40 = vmul.f32 %v1368_v63, %v6521_v52  ;;  %v1369_v53 = vmul.f32 0.044715, %v6528_v41  ;;  %5112 = vtanh.f32 %v1488_v37 }
 0x628   : > { %v1493_v4 = vmul.f32 0.7978846, %v1461_v16  ;;  %v1462_v43 = vadd.f32 %v1430_v48, %v6509_v33  ;;  %v6536_v45 = vpop.f32.mrf.mxu0  ;;  %v1607_v30 = vpack.c.bf16 %v1579_v35, %v1577_v47  ;;  %5114 = vtanh.f32 %v1490_v18 }
 0x629   : > { %v1463_v34 = vadd.f32 %v1431_v27, %v6515_v46  ;;  %v1401_v24 = vmul.f32 %v1369_v53, %v6528_v41  ;;  %v1370_v61 = vmul.f32 0.044715, %v6536_v45  ;;  %v1606_v60 = vpack.c.bf16 %v1578_v23, %v1576_v51 }
 0x62a   : > { %1790 = vmatprep.mubr.bf16.mxu1 %v1607_v30  ;;  %v6542_v1 = vpop.f32.mrf.mxu0  ;;  %v1327_v2 = vmul.f32 0.5, %v6456_v62  ;;  %v1549_v29 = vadd.f32 1.0, %v5103_v59  ;;  %5116 = vtanh.f32 %v1492_v17  ;;  %v1494_v44 = vmul.f32 0.7978846, %v1462_v43 }
 0x62b   : > { %v5105_v6 = vpop.eup %5104  ;;  %v1433_v8 = vmul.f32 %v1401_v24, %v6528_v41  ;;  %v1402_v37 = vmul.f32 %v1370_v61, %v6536_v45  ;;  %5118 = vtanh.f32 %v1493_v4  ;;  %v1432_v22 = vmul.f32 %v1400_v40, %v6521_v52  ;;  %1791 = vmatmul.mubr.bf16.gmra.mxu1 %v1606_v60 }
 0x62c   : > { %v1371_v21 = vmul.f32 0.044715, %v6542_v1  ;;  %v6549_v18 = vpop.f32.mrf.mxu0  ;;  %v1551_v9 = vadd.f32 1.0, %v5105_v6  ;;  %v1495_v63 = vmul.f32 0.7978846, %v1463_v34  ;;  %v1581_v17 = vmul.f32 %v1549_v29, %v6476_v15 }
 0x62d   : > { %v5107_v57 = vpop.eup %5106  ;;  %v1465_v62 = vadd.f32 %v1433_v8, %v6528_v41  ;;  %v1434_v47 = vmul.f32 %v1402_v37, %v6536_v45  ;;  %v1372_v48 = vmul.f32 0.044715, %v6549_v18  ;;  %v1548_v27 = vadd.f32 1.0, %v5101_v13 }
 0x62e   : > { %v1403_v16 = vmul.f32 %v1371_v21, %v6542_v1  ;;  %v6556_v35 = vpop.f32.mrf.mxu0  ;;  %v1583_v59 = vmul.f32 %v1551_v9, %v1327_v2  ;;  %v5109_v40 = vpop.eup %5108  ;;  %5120 = vtanh.f32 %v1494_v44  ;;  %v1550_v34 = vadd.f32 1.0, %v5107_v57 }
 0x62f   : > { %v1497_v53 = vmul.f32 0.7978846, %v1465_v62  ;;  %v1466_v51 = vadd.f32 %v1434_v47, %v6536_v45  ;;  %v1373_v4 = vmul.f32 0.044715, %v6556_v35  ;;  %v1404_v30 = vmul.f32 %v1372_v48, %v6549_v18 }
 0x630   : > { %v1435_v43 = vmul.f32 %v1403_v16, %v6542_v1  ;;  %v6562_v15 = vpop.f32.mrf.mxu0  ;;  %v1609_v23 = vpack.c.bf16 %v1583_v59, %v1581_v17  ;;  %5122 = vtanh.f32 %v1495_v63  ;;  %v1464_v24 = vadd.f32 %v1432_v22, %v6521_v52 }
 0x631   : > { %v1405_v13 = vmul.f32 %v1373_v4, %v6556_v35  ;;  %v1374_v61 = vmul.f32 0.044715, %v6562_v15  ;;  %v1436_v29 = vmul.f32 %v1404_v30, %v6549_v18  ;;  %v1580_v44 = vmul.f32 %v1548_v27, %v6473_v36 }
 0x632   : > { %v5111_v60 = vpop.eup %5110  ;;  %v1467_v2 = vadd.f32 %v1435_v43, %v6542_v1  ;;  %1798 = vmatprep.mubr.bf16.mxu1 %v1609_v23  ;;  %v6569_v6 = vpop.f32.mrf.mxu0  ;;  %v1582_v8 = vmul.f32 %v1550_v34, %v6478_v49  ;;  %5124 = vtanh.f32 %v1497_v53  ;;  %v1498_v9 = vmul.f32 0.7978846, %v1466_v51 }
 0x633   : > { %v1437_v37 = vmul.f32 %v1405_v13, %v6556_v35  ;;  %v1406_v22 = vmul.f32 %v1374_v61, %v6562_v15  ;;  %v1375_v21 = vmul.f32 0.044715, %v6569_v6  ;;  %v1468_v63 = vadd.f32 %v1436_v29, %v6549_v18 }
 0x634   : > { %v1499_v57 = vmul.f32 0.7978846, %v1467_v2  ;;  %v1608_v62 = vpack.c.bf16 %v1582_v8, %v1580_v44  ;;  %v6577_v47 = vpop.f32.mrf.mxu0  ;;  %v5113_v48 = vpop.eup %5112  ;;  %v1496_v59 = vmul.f32 0.7978846, %v1464_v24  ;;  %v1329_v53 = vmul.f32 0.5, %v6471_v14 }
 0x635   : > { %v1469_v17 = vadd.f32 %v1437_v37, %v6556_v35  ;;  %v1438_v36 = vmul.f32 %v1406_v22, %v6562_v15  ;;  %v1407_v49 = vmul.f32 %v1375_v21, %v6569_v6  ;;  %v1376_v16 = vmul.f32 0.044715, %v6577_v47  ;;  %v5115_v4 = vpop.eup %5114 }
 0x636   : > { %5126 = vtanh.f32 %v1499_v57  ;;  %1799 = vmatmul.mubr.bf16.gmra.mxu1 %v1608_v62  ;;  %v6583_v27 = vpop.f32.mrf.mxu0  ;;  %v1553_v51 = vadd.f32 1.0, %v5109_v40  ;;  %v1331_v24 = vmul.f32 0.5, %v6488_v42  ;;  %v1555_v29 = vadd.f32 1.0, %v5111_v60 }
 0x637   : > { %v1501_v43 = vmul.f32 0.7978846, %v1469_v17  ;;  %v1470_v30 = vadd.f32 %v1438_v36, %v6562_v15  ;;  %v1439_v23 = vmul.f32 %v1407_v49, %v6569_v6  ;;  %v1408_v34 = vmul.f32 %v1376_v16, %v6577_v47  ;;  %v5117_v13 = vpop.eup %5116 }
 0x638   : > { %v1377_v61 = vmul.f32 0.044715, %v6583_v27  ;;  %v6590_v2 = vpop.f32.mrf.mxu0  ;;  %v1328_v44 = vmul.f32 0.5, %v6463_v39  ;;  %v5119_v14 = vpop.eup %5118  ;;  %5128 = vtanh.f32 %v1498_v9  ;;  %v1500_v40 = vmul.f32 0.7978846, %v1468_v63 }
 0x639   : > { %v1471_v8 = vadd.f32 %v1439_v23, %v6569_v6  ;;  %v1585_v37 = vmul.f32 %v1553_v51, %v1329_v53  ;;  %5130 = vtanh.f32 %v1501_v43  ;;  %v1378_v21 = vmul.f32 0.044715, %v6590_v2 }
 0x63a   : > { %v1409_v22 = vmul.f32 %v1377_v61, %v6583_v27  ;;  %v1587_v57 = vmul.f32 %v1555_v29, %v1331_v24  ;;  %v6597_v62 = vpop.f32.mrf.mxu0  ;;  %5132 = vtanh.f32 %v1496_v59  ;;  %v1502_v17 = vmul.f32 0.7978846, %v1470_v30 }
 0x63b   : > { %v1503_v42 = vmul.f32 0.7978846, %v1471_v8  ;;  %v1440_v60 = vmul.f32 %v1408_v34, %v6577_v47  ;;  %v5121_v39 = vpop.eup %5120  ;;  %v1410_v63 = vmul.f32 %v1378_v21, %v6590_v2  ;;  %v1379_v49 = vmul.f32 0.044715, %v6597_v62 }
 0x63c   : > { %v1441_v9 = vmul.f32 %v1409_v22, %v6583_v27  ;;  %v1611_v36 = vpack.c.bf16 %v1587_v57, %v1585_v37  ;;  %v1330_v16 = vmul.f32 0.5, %v6482_v28  ;;  %v1552_v53 = vadd.f32 1.0, %v5113_v48 }
 0x63d   : > { %5134 = vtanh.f32 %v1503_v42  ;;  %v1554_v51 = vadd.f32 1.0, %v5115_v4  ;;  %v5123_v43 = vpop.eup %5122  ;;  %v1442_v30 = vmul.f32 %v1410_v63, %v6590_v2  ;;  %v1411_v23 = vmul.f32 %v1379_v49, %v6597_v62 }
 0x63e   : > { %5136 = vtanh.f32 %v1500_v40  ;;  %v1473_v59 = vadd.f32 %v1441_v9, %v6583_v27  ;;  %1806 = vmatprep.mubr.bf16.mxu1 %v1611_v36  ;;  %v1472_v34 = vadd.f32 %v1440_v60, %v6577_v47  ;;  %v1584_v61 = vmul.f32 %v1552_v53, %v1328_v44 }
 0x63f   : > { %5138 = vtanh.f32 %v1502_v17  ;;  %v1586_v24 = vmul.f32 %v1554_v51, %v1330_v16  ;;  %v5125_v29 = vpop.eup %5124  ;;  %v1474_v28 = vadd.f32 %v1442_v30, %v6590_v2  ;;  %v1443_v48 = vmul.f32 %v1411_v23, %v6597_v62 }
 0x640   : > { %v1505_v8 = vmul.f32 0.7978846, %v1473_v59  ;;  %v1557_v4 = vadd.f32 1.0, %v5119_v14  ;;  %v1333_v37 = vmul.f32 0.5, %v6501_v11  ;;  %v1335_v22 = vmul.f32 0.5, %v6515_v46 }
 0x641   : > { %v1610_v40 = vpack.c.bf16 %v1586_v24, %v1584_v61  ;;  %v1559_v21 = vadd.f32 1.0, %v5123_v43  ;;  %v1475_v57 = vadd.f32 %v1443_v48, %v6597_v62  ;;  %v1332_v17 = vmul.f32 0.5, %v6494_v26 }
 0x642   : > { %5140 = vtanh.f32 %v1505_v8  ;;  %v1334_v44 = vmul.f32 0.5, %v6509_v33  ;;  %v1589_v60 = vmul.f32 %v1557_v4, %v1333_v37  ;;  %v1556_v63 = vadd.f32 1.0, %v5117_v13 }
 0x643   : > { %v5127_v42 = vpop.eup %5126  ;;  %1807 = vmatmul.mubr.bf16.gmra.mxu1 %v1610_v40  ;;  %v1591_v9 = vmul.f32 %v1559_v21, %v1335_v22  ;;  %v1558_v36 = vadd.f32 1.0, %v5121_v39  ;;  %v1506_v14 = vmul.f32 0.7978846, %v1474_v28  ;;  %v1507_v49 = vmul.f32 0.7978846, %v1475_v57 }
 0x644   : > { %v1337_v11 = vmul.f32 0.5, %v6528_v41  ;;  %v1561_v16 = vadd.f32 1.0, %v5125_v29  ;;  %v1339_v51 = vmul.f32 0.5, %v6542_v1  ;;  %v1563_v43 = vadd.f32 1.0, %v5127_v42 }
 0x645   : > { %v1613_v46 = vpack.c.bf16 %v1591_v9, %v1589_v60  ;;  %v1590_v53 = vmul.f32 %v1558_v36, %v1334_v44  ;;  %v5129_v59 = vpop.eup %5128  ;;  %v1504_v26 = vmul.f32 0.7978846, %v1472_v34  ;;  %5142 = vtanh.f32 %v1507_v49 }
 0x646   : > { %v5131_v33 = vpop.eup %5130  ;;  %v1588_v30 = vmul.f32 %v1556_v63, %v1332_v17  ;;  %v1593_v23 = vmul.f32 %v1561_v16, %v1337_v11  ;;  %v1595_v61 = vmul.f32 %v1563_v43, %v1339_v51  ;;  %5144 = vtanh.f32 %v1506_v14 }
 0x647   : > { %1814 = vmatprep.mubr.bf16.mxu1 %v1613_v46  ;;  %v5133_v13 = vpop.eup %5132  ;;  %v1562_v8 = vadd.f32 1.0, %v5129_v59  ;;  %5146 = vtanh.f32 %v1504_v26  ;;  %v1565_v29 = vadd.f32 1.0, %v5131_v33  ;;  %v1338_v1 = vmul.f32 0.5, %v6536_v45 }
 0x648   : > { %v1612_v39 = vpack.c.bf16 %v1590_v53, %v1588_v30  ;;  %v1615_v24 = vpack.c.bf16 %v1595_v61, %v1593_v23  ;;  %v1560_v48 = vadd.f32 1.0, %v5133_v13  ;;  %v1343_v34 = vmul.f32 0.5, %v6569_v6 }
 0x649   : > { %v1341_v37 = vmul.f32 0.5, %v6556_v35  ;;  %v1336_v22 = vmul.f32 0.5, %v6521_v52  ;;  %v1594_v21 = vmul.f32 %v1562_v8, %v1338_v1  ;;  %v1342_v6 = vmul.f32 0.5, %v6562_v15 }
 0x64a   : > { %v5135_v41 = vpop.eup %5134  ;;  %v1347_v49 = vmul.f32 0.5, %v6597_v62  ;;  %v1345_v35 = vmul.f32 0.5, %v6583_v27  ;;  %v1340_v11 = vmul.f32 0.5, %v6549_v18  ;;  %v1346_v15 = vmul.f32 0.5, %v6590_v2 }
 0x64b   : > { %v5137_v28 = vpop.eup %5136  ;;  %1815 = vmatmul.mubr.bf16.gmra.mxu1 %v1612_v39  ;;  %v1567_v4 = vadd.f32 1.0, %v5135_v41  ;;  %v1597_v17 = vmul.f32 %v1565_v29, %v1341_v37  ;;  %v1592_v42 = vmul.f32 %v1560_v48, %v1336_v22  ;;  %v1344_v62 = vmul.f32 0.5, %v6577_v47 }
 0x64c   : > { %v5139_v40 = vpop.eup %5138  ;;  %1822 = vmatprep.mubr.bf16.mxu1 %v1615_v24  ;;  %v1564_v14 = vadd.f32 1.0, %v5137_v28 }
 0x64d   : > { %v1599_v57 = vmul.f32 %v1567_v4, %v1343_v34  ;;  %v1614_v9 = vpack.c.bf16 %v1594_v21, %v1592_v42  ;;  %v1566_v63 = vadd.f32 1.0, %v5139_v40 }
 0x64e   : > { %v1596_v59 = vmul.f32 %v1564_v14, %v1340_v11 }
 0x64f   : > { %v5141_v44 = vpop.eup %5140  ;;  %v1617_v60 = vpack.c.bf16 %v1599_v57, %v1597_v17  ;;  %v1598_v16 = vmul.f32 %v1566_v63, %v1342_v6 }
 0x650   : > { %v1569_v36 = vadd.f32 1.0, %v5141_v44 }
 0x651   : > { %v1616_v33 = vpack.c.bf16 %v1598_v16, %v1596_v59 }
 0x652   : > { %v5143_v45 = vpop.eup %5142  ;;  %v1601_v53 = vmul.f32 %v1569_v36, %v1345_v35 }
 0x653   : > { %1823 = vmatmul.mubr.bf16.gmra.mxu1 %v1614_v9  ;;  %v1571_v52 = vadd.f32 1.0, %v5143_v45  ;;  %v5145_v46 = vpop.eup %5144 }
 0x654   : > { %1830 = vmatprep.mubr.bf16.mxu1 %v1617_v60  ;;  %v5147_v43 = vpop.eup %5146  ;;  %v1570_v30 = vadd.f32 1.0, %v5145_v46 }
 0x655   : > { %v1603_v51 = vmul.f32 %v1571_v52, %v1347_v49  ;;  %v1568_v23 = vadd.f32 1.0, %v5147_v43 }
 0x656   : > { %v1602_v27 = vmul.f32 %v1570_v30, %v1346_v15 }
 0x657   : > { %v1619_v26 = vpack.c.bf16 %v1603_v51, %v1601_v53  ;;  %v1600_v61 = vmul.f32 %v1568_v23, %v1344_v62 }
 0x659   : > { %v1618_v13 = vpack.c.bf16 %v1602_v27, %v1600_v61 }
 0x65b   : > { %1831 = vmatmul.mubr.bf16.gmra.mxu1 %v1616_v33 }
 0x65c   : > { %1838 = vmatprep.mubr.bf16.mxu1 %v1619_v26 }
 0x663   : > { %1839 = vmatmul.mubr.bf16.gmra.mxu1 %v1618_v13 }
 0x6e3   : > { %v4095_v18 = vpop.f32.mrf.mxu1 }
 0x6e5   : > { %v4096_v39 = vpop.f32.mrf.mxu1 }
 0x6e6   : > { %v4097_v24 = vadd.f32 %v4096_v39, %v4095_v18 }
 0x6e7   : > { %v4098_v8 = vpop.f32.mrf.mxu1 }
 0x6e8   : > { %v6628_v1 = vadd.f32 %v4097_v24, %v6364_v55  }
 0x6e9   : > { %v4099_v29 = vpop.f32.mrf.mxu1 }
 0x6ea   : > { %v7652_v41 = vmov %v6628_v1  ;;  %v4100_v28 = vadd.f32 %v4099_v29, %v4098_v8 }
 0x6eb   : > { %v4101_v34 = vpop.f32.mrf.mxu1 }
 0x6ec   : > { %v6631_v2 = vadd.f32 %v4100_v28, %v6367_v54  }
 0x6ed   : > { %v4102_v4 = vpop.f32.mrf.mxu1 }
 0x6ee   : > { %v7653_v48 = vmov %v6631_v2  ;;  %v4103_v40 = vadd.f32 %v4102_v4, %v4101_v34  ;;  %v6720_v34 = vmov (%p6664_p6), 0.0  }
 0x6ef   : > { %v4104_v47 = vpop.f32.mrf.mxu1 }
 0x6f0   : > { %v6634_v37 = vadd.f32 %v4103_v40, %v6376_v56   ;;  %v6722_v40 = vmov (%p6664_p6), 0.0  }
 0x6f1   : > { %v4105_v22 = vpop.f32.mrf.mxu1 }
 0x6f2   : > { %v4106_v21 = vadd.f32 %v4105_v22, %v4104_v47  ;;  %v6724_v47 = vmov (%p6664_p6), 0.0   ;;  %v6726_v22 = vmov (%p6664_p6), 0.0  }
 0x6f4   : > { %v6637_v4 = vadd.f32 %v4106_v21, %v6373_v58   ;;  %v6728_v21 = vmov (%p6664_p6), 0.0  }
 0x6f6   : > { %v7654_v57 = vmov %v6637_v4  ;;  %v4107_v17 = vpop.f32.mrf.mxu1 }
 0x6f7   : > { %v7671_v4 = vmov %v7654_v57 }
 0x6f8   : > { %v4108_v55 = vpop.f32.mrf.mxu1  ;;  %v6738_v4 = vmov (%p6664_p6), 0.0  }
 0x6f9   : > { %v4109_v1 = vadd.f32 %v4108_v55, %v4107_v17  ;;  %v6730_v17 = vmov (%p6664_p6), 0.0   ;;  %v6732_v55 = vmov (%p6664_p6), 0.0  }
 0x6fa   : > { %v4110_v44 = vpop.f32.mrf.mxu1 }
 0x6fb   : > { %v6640_v42 = vadd.f32 %v4109_v1, %v6385_v31   ;;  %v7674_v1 = vmov %v7652_v41 }
 0x6fc   : > { %v4111_v54 = vpop.f32.mrf.mxu1  ;;  %v6740_v1 = vmov (%p6664_p6), 0.0  }
 0x6fd   : > { %v4112_v2 = vadd.f32 %v4111_v54, %v4110_v44  ;;  %v6742_v44 = vmov (%p6664_p6), 0.0   ;;  %v6744_v54 = vmov (%p6664_p6), 0.0  }
 0x6ff   : > { %v6643_v6 = vadd.f32 %v4112_v2, %v6382_v20   ;;  %v7673_v2 = vmov %v7653_v48 }
 0x701   : > { %v7655_v60 = vmov %v6643_v6 }
 0x703   : > { %v4113_v9 = vpop.f32.mrf.mxu1 }
 0x705   : > { %v4114_v56 = vpop.f32.mrf.mxu1 }
 0x706   : > { %v4115_v63 = vadd.f32 %v4114_v56, %v4113_v9 }
 0x707   : > { %v4116_v36 = vpop.f32.mrf.mxu1 }
 0x708   : > { %v6646_v45 = vadd.f32 %v4115_v63, %v6394_v25  }
 0x709   : > { %v4117_v58 = vpop.f32.mrf.mxu1 }
 0x70a   : > { %v4118_v14 = vadd.f32 %v4117_v58, %v4116_v36 }
 0x70b   : > { %v4119_v49 = vpop.f32.mrf.mxu1 }
 0x70c   : > { %v6649_v8 = vadd.f32 %v4118_v14, %v6391_v3  }
 0x70d   : > { %v4120_v31 = vpop.f32.mrf.mxu1 }
 0x70e   : > { %v7656_v35 = vmov %v6649_v8  ;;  %v4121_v52 = vadd.f32 %v4120_v31, %v4119_v49 }
 0x70f   : > { %v4122_v11 = vpop.f32.mrf.mxu1 }
 0x710   : > { %v6652_v9 = vadd.f32 %v4121_v52, %v6403_v32  }
 0x711   : > { %v4123_v6 = vpop.f32.mrf.mxu1 }
 0x712   : > { %v7657_v20 = vmov %v6652_v9  ;;  %v4124_v16 = vadd.f32 %v4123_v6, %v4122_v11  ;;  %v7669_v6 = vmov %v7655_v60 }
 0x713   : > { %v4125_v46 = vpop.f32.mrf.mxu1  ;;  %v7666_v9 = vmov %v7657_v20 }
 0x714   : > { %v6655_v53 = vadd.f32 %v4124_v16, %v6400_v5  }
 0x715   : > { %v4126_v25 = vpop.f32.mrf.mxu1 }
 0x716   : > { %v4127_v51 = vadd.f32 %v4126_v25, %v4125_v46 }
 0x717   : > { %v4128_v43 = vpop.f32.mrf.mxu1 }
 0x718   : > { %v1857_v59 = vadd.f32 %v4127_v51, %v6412_v10  }
 0x719   : > { %v4129_v26 = vpop.f32.mrf.mxu1 }
 0x71a   : > { %v4130_v3 = vadd.f32 %v4129_v26, %v4128_v43  ;;  %v7664_v11 = vmov %v1857_v59 }
 0x71b   : > { %v4131_v33 = vpop.f32.mrf.mxu1 }
 0x71c   : > { %v1858_v30 = vadd.f32 %v4130_v3, %v6409_v7   ;;  %v7668_v7 = vmov %v6646_v45  ;;  %v7672_v3 = vmov %v6634_v37 }
 0x71d   : > { %v4132_v15 = vpop.f32.mrf.mxu1  ;;  %v6734_v7 = vmov (%p6664_p6), 0.0  }
 0x71e   : > { %v4133_v23 = vadd.f32 %v4132_v15, %v4131_v33 }
 0x71f   : > { %v4134_v32 = vpop.f32.mrf.mxu1 }
 0x720   : > { %v1859_v62 = vadd.f32 %v4133_v23, %v6421_v12   ;;  %v7663_v12 = vmov %v1858_v30 }
 0x721   : > { %v4135_v27 = vpop.f32.mrf.mxu1  ;;  %v6736_v12 = vmov (%p6664_p6), 0.0  }
 0x722   : > { %v4136_v61 = vadd.f32 %v4135_v27, %v4134_v32 }
 0x723   : > { %v4137_v13 = vpop.f32.mrf.mxu1 }
 0x724   : > { %v1860_v18 = vadd.f32 %v4136_v61, %v6418_v19   ;;  %v6714_v19 = vmov (%p6664_p6), 0.0  }
 0x725   : > { %v4138_v5 = vpop.f32.mrf.mxu1 }
 0x726   : > { %v4139_v39 = vadd.f32 %v4138_v5, %v4137_v13  ;;  %v7661_v14 = vmov %v1860_v18  ;;  %v7662_v13 = vmov %v1859_v62  ;;  %v7670_v5 = vmov %v6640_v42 }
 0x727   : > { %v4140_v24 = vpop.f32.mrf.mxu1 }
 0x728   : > { %v1861_v29 = vadd.f32 %v4139_v39, %v6430_v38   ;;  %v6718_v38 = vmov (%p6664_p6), 0.0  }
 0x729   : > { %v4141_v10 = vpop.f32.mrf.mxu1 }
 0x72a   : > { %v4142_v8 = vadd.f32 %v4141_v10, %v4140_v24  ;;  %v7660_v15 = vmov %v1861_v29  ;;  %v7665_v10 = vmov %v6655_v53  ;;  %101 = sbr.rel (!%p6664_p6) target bundleno = 61 (0x3d), region = 82 }
 0x72c   : > { %v1862_v28 = vadd.f32 %v4142_v8, %v6427_v50   ;;  %v7667_v8 = vmov %v7656_v35  ;;  %v6716_v50 = vmov (%p6664_p6), 0.0  }
 0x72e   : > { %v7659_v16 = vmov %v1862_v28 }
 0x72f LB: > { %v7675_v0 = vld [vmem:[#allocation15_spill] sm:$0xff]  ;;  %7676 = vst [vmem:[#allocation16_spill] sm:$0xff] %v5734_v19  ;;  %7677 = vst [vmem:[#allocation17_spill] sm:$0xff] %v5738_v50  ;;  %v7647_v2 = vmov 0   ;;  %s4010_s10 = smul.u32 192, %s5862_s9  ;;  %v1901_v9 = vpack.c.bf16 %v5854_v48, %v5858_v41  ;;  %v6914_v3 = vpack.c.bf16 %v5846_v57, %v5850_v37  ;;  %v6920_v33 = vpack.c.bf16 %v5838_v60, %v5842_v42  ;;  %s4011_s12 = sshll.u32 %s5862_s9, 6  ;;  %v5734_v19 = vphi %v6714_v19, %v7716_v19   ;;  %s5862_s9 = sphi %s6788_s9, %s7737_s9   ;;  %v5858_v41 = vphi %v7652_v41, %v7446_v41   ;;  %v5854_v48 = vphi %v7653_v48, %v7453_v48   ;;  %v5850_v37 = vphi %v6634_v37, %v7736_v37   ;;  %v5846_v57 = vphi %v7654_v57, %v7467_v57   ;;  %v5842_v42 = vphi %v6640_v42, %v7735_v42   ;;  %v5838_v60 = vphi %v7655_v60, %v7481_v60   ;;  %v5834_v45 = vphi %v6646_v45, %v7734_v45   ;;  %v5830_v35 = vphi %v7656_v35, %v7495_v35   ;;  %v5826_v20 = vphi %v7657_v20, %v3637_v20   ;;  %v5822_v53 = vphi %v6655_v53, %v7733_v53   ;;  %v5818_v59 = vphi %v1857_v59, %v3639_v59   ;;  %v5814_v30 = vphi %v1858_v30, %v7732_v30   ;;  %v5810_v62 = vphi %v1859_v62, %v3641_v62   ;;  %v5806_v18 = vphi %v1860_v18, %v3642_v18   ;;  %v5802_v29 = vphi %v1861_v29, %v3643_v29   ;;  %v5798_v28 = vphi %v1862_v28, %v3644_v28   ;;  %v5794_v54 = vphi %v6744_v54, %v7731_v54   ;;  %v5790_v44 = vphi %v6742_v44, %v7730_v44   ;;  %v5786_v1 = vphi %v6740_v1, %v7729_v1   ;;  %v5782_v4 = vphi %v6738_v4, %v7728_v4   ;;  %v5778_v12 = vphi %v6736_v12, %v7727_v12   ;;  %v5774_v7 = vphi %v6734_v7, %v7726_v7   ;;  %v5770_v55 = vphi %v6732_v55, %v7725_v55   ;;  %v5766_v17 = vphi %v6730_v17, %v7724_v17   ;;  %v5762_v21 = vphi %v6728_v21, %v7723_v21   ;;  %v5758_v22 = vphi %v6726_v22, %v7722_v22   ;;  %v5754_v47 = vphi %v6724_v47, %v7721_v47   ;;  %v5750_v40 = vphi %v6722_v40, %v7720_v40   ;;  %v5746_v34 = vphi %v6720_v34, %v7719_v34   ;;  %v5742_v38 = vphi %v6718_v38, %v7718_v38   ;;  %v5738_v50 = vphi %v6716_v50, %v7717_v50  }
 0x730   : > { %7678 = vst [vmem:[#allocation18_spill] sm:$0xff] %v5742_v38  ;;  %7679 = vst [vmem:[#allocation19_spill] sm:$0xff] %v5746_v34  ;;  %2104 = vmatprep.mubr.bf16.mxu0 %v7647_v2  ;;  %v6926_v15 = vpack.c.bf16 %v5830_v35, %v5834_v45  ;;  %v6932_v23 = vpack.c.bf16 %v5822_v53, %v5826_v20  ;;  %v6938_v32 = vpack.c.bf16 %v5814_v30, %v5818_v59  ;;  %s7134_s3 = scalar_lea.vmem [#allocation5], %s4011_s12  ;;  %s4012_s15 = sshll.u32 %s5862_s9, 7 }
 0x731   : > { %7680 = vst [vmem:[#allocation20_spill] sm:$0xff] %v5750_v40  ;;  %7681 = vst [vmem:[#allocation21_spill] sm:$0xff] %v5754_v47  ;;  %4415 = vmatprep.mubr.bf16.mxu1 %v1901_v9  ;;  %s6893_s11 = scalar_lea.vmem [#allocation2], %s4010_s10  ;;  %v6944_v27 = vpack.c.bf16 %v5806_v18, %v5810_v62  ;;  %v6950_v61 = vpack.c.bf16 %v5798_v28, %v5802_v29  ;;  %s7161_s16 = scalar_lea.vmem [#allocation7], %s4012_s15 }
 0x732   : > { %7682 = vst [vmem:[#allocation22_spill] sm:$0xff] %v5758_v22  ;;  %7683 = vst [vmem:[#allocation23_spill] sm:$0xff] %v5762_v21  ;;  %v5148_v56 = vld [vmem:[%s6893_s11 + $0xac] ss:$12 sps:$4 sm:$0xff]   ;;  %v5150_v63 = vld [vmem:[%s6893_s11 + $0xa8] ss:$12 sps:$4 sm:$0xff]  }
 0x733   : > { %7684 = vst [vmem:[#allocation24_spill] sm:$0xff] %v5766_v17  ;;  %7685 = vst [vmem:[#allocation25_spill] sm:$0xff] %v5770_v55  ;;  %2072 = vmatprep.subr.bf16.mxu0 %v5148_v56  ;;  %v5151_v36 = vld [vmem:[%s6893_s11 + $0x94] ss:$12 sps:$4 sm:$0xff]   ;;  %v5153_v58 = vld [vmem:[%s6893_s11 + $0x90] ss:$12 sps:$4 sm:$0xff]  }
 0x734   : > { %7686 = vst [vmem:[#allocation26_spill] sm:$0xff] %v5774_v7  ;;  %7687 = vst [vmem:[#allocation27_spill] sm:$0xff] %v5778_v12  ;;  %2073 = vmatpush1.bf16.msra.mxu0 %v5150_v63  ;;  %v5154_v14 = vld [vmem:[%s6893_s11 + $0x7c] ss:$12 sps:$4 sm:$0xff]   ;;  %v5156_v49 = vld [vmem:[%s6893_s11 + $0x78] ss:$12 sps:$4 sm:$0xff]  }
 0x735   : > { %2074 = vmatprep.subr.bf16.mxu0 %v5151_v36  ;;  %v5157_v31 = vld [vmem:[%s6893_s11 + $0x64] ss:$12 sps:$4 sm:$0xff]   ;;  %v5159_v52 = vld [vmem:[%s6893_s11 + $0x60] ss:$12 sps:$4 sm:$0xff]   ;;  %v5162_v6 = vld [vmem:[%s6893_s11 + $0x48] ss:$12 sps:$4 sm:$0xff]  }
 0x736   : > { %v5160_v11 = vld [vmem:[%s6893_s11 + $0x4c] ss:$12 sps:$4 sm:$0xff]   ;;  %v5163_v16 = vld [vmem:[%s6893_s11 + $0x34] ss:$12 sps:$4 sm:$0xff]   ;;  %v5165_v46 = vld [vmem:[%s6893_s11 + $0x30] ss:$12 sps:$4 sm:$0xff]  }
 0x737   : > { %v5166_v25 = vld [vmem:[%s6893_s11 + $0x1c] ss:$12 sps:$4 sm:$0xff]   ;;  %v5168_v51 = vld [vmem:[%s6893_s11 + $0x18] ss:$12 sps:$4 sm:$0xff]   ;;  %v5171_v26 = vld [vmem:[%s6893_s11] ss:$12 sps:$4 sm:$0xff]  }
 0x738   : > { %2075 = vmatpush1.bf16.msra.mxu0 %v5153_v58  ;;  %v5169_v43 = vld [vmem:[%s6893_s11 + $0x4] ss:$12 sps:$4 sm:$0xff]   ;;  %s7170_s2 = scalar_lea.vmem [#allocation8], %s4012_s15  ;;  %s1868_s17 = sadd.s32 1, %s5862_s9  }
 0x739   : > { %2076 = vmatprep.subr.bf16.mxu0 %v5154_v14  ;;  %p7528_p7 = scmp.ge.s32.totalorder %s1868_s17, 12   ;;  %s7737_s9 = smov %s1868_s17 }
 0x73a   :  { %s5876_s19 = smov (%p7528_p7), [#allocation10]  }
 0x73b   :  { %s3682_s20 = sshll.u32 (%p7528_p7), %s5876_s19, 4  ;;  %s3683_s20 = int_to_ptr.vmem [resolvable:$true] %s3682_s20 }
 0x73c   : > { %2077 = vmatpush1.bf16.msra.mxu0 %v5156_v49  ;;  %s5436_s4 = scalar_lea.vmem (%p7528_p7), %s3683_s20, 2048  ;;  %p5441_p9 = scmp.lt.s32.totalorder (%p7528_p7), %s3683_s20, %s3683_s20 }
 0x73d   : > { %2078 = vmatprep.subr.bf16.mxu0 %v5157_v31  ;;  %p5437_p8 = scmp.ne.s32.totalorder (%p7528_p7), %s3683_s20, %s5436_s4  ;;  %p5442_p10 = scmp.lt.s32.totalorder (%p7528_p7), %s5436_s4, %s5436_s4 }
 0x73f   :  { %p5443_p11 = por (%p7528_p7), %p5442_p10, %p5441_p9 }
 0x740   : > { %2079 = vmatpush1.bf16.msra.mxu0 %v5159_v52 }
 0x741   : > { %2080 = vmatprep.subr.bf16.mxu0 %v5160_v11  ;;  %p5444_p12 = pnand (%p7528_p7), %p5443_p11, %p5437_p8 }
 0x744   : > { %2081 = vmatpush1.bf16.msra.mxu0 %v5162_v6 }
 0x745   : > { %2082 = vmatprep.subr.bf16.mxu0 %v5163_v16 }
 0x748   : > { %2083 = vmatpush1.bf16.msra.mxu0 %v5165_v46 }
 0x749   : > { %2084 = vmatprep.subr.bf16.mxu0 %v5166_v25 }
 0x74c   : > { %2085 = vmatpush1.bf16.msra.mxu0 %v5168_v51 }
 0x74d   : > { %2086 = vmatprep.subr.bf16.mxu0 %v5169_v43 }
 0x750   : > { %2087 = vmatpush1.bf16.msra.mxu0 %v5171_v26 }
 0x753   : > { %2105 = vmatmul.mubr.bf16.vlgmr.msra.gmra.mxu0 %v1901_v9 }
 0x754   : > { %2114 = vmatprep.mubr.bf16.mxu0 %v7647_v2 }
 0x75b   : > { %2115 = vmatmul.mubr.bf16.gmra.mxu0 %v6914_v3 }
 0x75c   : > { %2124 = vmatprep.mubr.bf16.mxu0 %v7647_v2 }
 0x763   : > { %2125 = vmatmul.mubr.bf16.gmra.mxu0 %v6920_v33 }
 0x764   : > { %2134 = vmatprep.mubr.bf16.mxu0 %v7647_v2 }
 0x76b   : > { %2135 = vmatmul.mubr.bf16.gmra.mxu0 %v6926_v15 }
 0x76c   : > { %2144 = vmatprep.mubr.bf16.mxu0 %v7647_v2 }
 0x773   : > { %2145 = vmatmul.mubr.bf16.gmra.mxu0 %v6932_v23 }
 0x774   : > { %2154 = vmatprep.mubr.bf16.mxu0 %v7647_v2 }
 0x77b   : > { %2155 = vmatmul.mubr.bf16.gmra.mxu0 %v6938_v32 }
 0x77c   : > { %2164 = vmatprep.mubr.bf16.mxu0 %v7647_v2 }
 0x783   : > { %2165 = vmatmul.mubr.bf16.gmra.mxu0 %v6944_v27 }
 0x784   : > { %2174 = vmatprep.mubr.bf16.mxu0 %v7647_v2 }
 0x78b   : > { %2175 = vmatmul.mubr.bf16.gmra.mxu0 %v6950_v61 }
 0x813   : > { %v2106_v13 = vpop.f32.mrf.mxu0 }
 0x814   : > { %v2282_v24 = vmul.f32 0.088388346, %v2106_v13 }
 0x815   : > { %v2108_v5 = vpop.f32.mrf.mxu0 }
 0x817   : > { %v2110_v39 = vpop.f32.mrf.mxu0 }
 0x818   : > { %v2283_v10 = vmul.f32 0.088388346, %v2110_v39  ;;  %v5172_v39 = vld [vmem:[%s6893_s11 + $0xb0] ss:$12 sps:$4 sm:$0xff]  }
 0x819   : > { %v2112_v8 = vpop.f32.mrf.mxu0  ;;  %4399 = vmatprep.subr.bf16.mxu1 %v5172_v39 }
 0x81a   : > { %v2298_v9 = vpack.c.bf16 %v2283_v10, %v2282_v24  ;;  %v6953_v56 = vpack.c.bf16 %v2112_v8, %v2108_v5  ;;  %v5173_v24 = vld [vmem:[%s6893_s11 + $0x98] ss:$12 sps:$4 sm:$0xff]   ;;  %4400 = vmatpush3.bf16.msra.mxu1 %v5172_v39 }
 0x81b   : > { %v2116_v63 = vpop.f32.mrf.mxu0  ;;  %4401 = vmatprep.subr.bf16.mxu1 %v5173_v24 }
 0x81c   : > { %4447 = vmatprep.mubr.bf16.mxu0 %v2298_v9  ;;  %v6955_v14 = vmul.f32 0.088388346, %v2116_v63 }
 0x81d   : > { %v2118_v36 = vpop.f32.mrf.mxu0 }
 0x81e   : > { %4402 = vmatpush3.bf16.msra.mxu1 %v5173_v24 }
 0x81f   : > { %v2120_v58 = vpop.f32.mrf.mxu0 }
 0x820   : > { %v6957_v49 = vmul.f32 0.088388346, %v2120_v58 }
 0x821   : > { %v2122_v31 = vpop.f32.mrf.mxu0 }
 0x822   : > { %v6961_v11 = vpack.c.bf16 %v2122_v31, %v2118_v36  ;;  %v5174_v36 = vld [vmem:[%s6893_s11 + $0x80] ss:$12 sps:$4 sm:$0xff]  }
 0x823   : > { %v2126_v6 = vpop.f32.mrf.mxu0  ;;  %4403 = vmatprep.subr.bf16.mxu1 %v5174_v36 }
 0x824   : > { %v6963_v25 = vmul.f32 0.088388346, %v2126_v6  ;;  %4404 = vmatpush3.bf16.msra.mxu1 %v5174_v36 }
 0x825   : > { %v2128_v16 = vpop.f32.mrf.mxu0 }
 0x827   : > { %v2130_v46 = vpop.f32.mrf.mxu0 }
 0x828   : > { %v6965_v51 = vmul.f32 0.088388346, %v2130_v46 }
 0x829   : > { %v2132_v43 = vpop.f32.mrf.mxu0 }
 0x82a   : > { %v6969_v13 = vpack.c.bf16 %v2132_v43, %v2128_v16  ;;  %v5175_v16 = vld [vmem:[%s6893_s11 + $0x68] ss:$12 sps:$4 sm:$0xff]  }
 0x82b   : > { %v2136_v5 = vpop.f32.mrf.mxu0  ;;  %4405 = vmatprep.subr.bf16.mxu1 %v5175_v16 }
 0x82c   : > { %v6973_v9 = vmul.f32 0.088388346, %v2136_v5  ;;  %v5176_v5 = vld [vmem:[%s6893_s11 + $0x50] ss:$12 sps:$4 sm:$0xff]   ;;  %4406 = vmatpush3.bf16.msra.mxu1 %v5175_v16 }
 0x82d   : > { %v2138_v10 = vpop.f32.mrf.mxu0  ;;  %4407 = vmatprep.subr.bf16.mxu1 %v5176_v5 }
 0x82f   : > { %v2140_v8 = vpop.f32.mrf.mxu0 }
 0x830   : > { %v6975_v63 = vmul.f32 0.088388346, %v2140_v8  ;;  %4408 = vmatpush3.bf16.msra.mxu1 %v5176_v5 }
 0x831   : > { %v2142_v58 = vpop.f32.mrf.mxu0 }
 0x832   : > { %v2301_v31 = vpack.c.bf16 %v6975_v63, %v6973_v9 }
 0x833   : > { %v2146_v6 = vpop.f32.mrf.mxu0 }
 0x834   : > { %v2290_v2 = vmul.f32 0.088388346, %v2146_v6 }
 0x835   : > { %v2148_v46 = vpop.f32.mrf.mxu0 }
 0x837   : > { %v2150_v43 = vpop.f32.mrf.mxu0 }
 0x838   : > { %v2291_v39 = vmul.f32 0.088388346, %v2150_v43 }
 0x839   : > { %v2152_v26 = vpop.f32.mrf.mxu0 }
 0x83a   : > { %v2302_v8 = vpack.c.bf16 %v2291_v39, %v2290_v2 }
 0x83b   : > { %v2156_v52 = vpop.f32.mrf.mxu0 }
 0x83c   : > { %v2292_v9 = vmul.f32 0.088388346, %v2156_v52  ;;  %v2310_v52 = vpack.c.bf16 %v2152_v26, %v2148_v46 }
 0x83d   : > { %v2158_v19 = vpop.f32.mrf.mxu0 }
 0x83f   : > { %v2160_v50 = vpop.f32.mrf.mxu0 }
 0x840   : > { %v2293_v63 = vmul.f32 0.088388346, %v2160_v50 }
 0x841   : > { %v2162_v24 = vpop.f32.mrf.mxu0 }
 0x842   : > { %v2303_v38 = vpack.c.bf16 %v2293_v63, %v2292_v9  ;;  %v2311_v50 = vpack.c.bf16 %v2162_v24, %v2158_v19  ;;  %v7688_v19 = vpack.c.bf16 %v6957_v49, %v6955_v14 }
 0x843   : > { %v2166_v34 = vpop.f32.mrf.mxu0 }
 0x844   : > { %v2294_v36 = vmul.f32 0.088388346, %v2166_v34  ;;  %v2309_v34 = vpack.c.bf16 %v2142_v58, %v2138_v10 }
 0x845   : > { %v2168_v40 = vpop.f32.mrf.mxu0 }
 0x847   : > { %v2170_v47 = vpop.f32.mrf.mxu0 }
 0x848   : > { %v2295_v6 = vmul.f32 0.088388346, %v2170_v47  ;;  %v7690_v47 = vmov 0  }
 0x849   : > { %v2172_v43 = vpop.f32.mrf.mxu0 }
 0x84a   : > { %v2304_v22 = vpack.c.bf16 %v2295_v6, %v2294_v36  ;;  %v2312_v5 = vpack.c.bf16 %v2172_v43, %v2168_v40  ;;  %v7689_v40 = vpack.c.bf16 %v6965_v51, %v6963_v25 }
 0x84b   : > { %v2176_v21 = vpop.f32.mrf.mxu0 }
 0x84c   : > { %v2296_v39 = vmul.f32 0.088388346, %v2176_v21  ;;  %v5177_v21 = vld [vmem:[%s6893_s11 + $0x38] ss:$12 sps:$4 sm:$0xff]  }
 0x84d   : > { %v2178_v17 = vpop.f32.mrf.mxu0  ;;  %4409 = vmatprep.subr.bf16.mxu1 %v5177_v21 }
 0x84e   : > { %4410 = vmatpush3.bf16.msra.mxu1 %v5177_v21 }
 0x84f   : > { %v2180_v2 = vpop.f32.mrf.mxu0 }
 0x850   : > { %v2297_v16 = vmul.f32 0.088388346, %v2180_v2 }
 0x851   : > { %v2182_v55 = vpop.f32.mrf.mxu0 }
 0x852   : > { %v2305_v7 = vpack.c.bf16 %v2297_v16, %v2296_v39  ;;  %v2313_v12 = vpack.c.bf16 %v2182_v55, %v2178_v17  ;;  %v5178_v17 = vld [vmem:[%s6893_s11 + $0x20] ss:$12 sps:$4 sm:$0xff]   ;;  %v5179_v55 = vld [vmem:[%s6893_s11 + $0x8] ss:$12 sps:$4 sm:$0xff]  }
 0x853   : > { %4411 = vmatprep.subr.bf16.mxu1 %v5178_v17 }
 0x854   : > { %4431 = vmatprep.subr.bf16.mxu0 %v2313_v12  ;;  %4412 = vmatpush3.bf16.msra.mxu1 %v5178_v17 }
 0x855   : > { %4432 = vmatpush3.bf16.xpose.msra.mxu0 %v2313_v12  ;;  %4413 = vmatprep.subr.bf16.mxu1 %v5179_v55 }
 0x856   : > { %4433 = vmatprep.subr.bf16.mxu0 %v2312_v5 }
 0x858   : > { %4414 = vmatpush3.bf16.msra.mxu1 %v5179_v55 }
 0x85b   : > { %4416 = vmatmul.mubr.bf16.vlgmr.msra.gmra.mxu1 %v6914_v3 }
 0x85c   : > { %4419 = vmatprep.mubr.bf16.mxu1 %v6920_v33 }
 0x85d   : > { %4434 = vmatpush3.bf16.xpose.msra.mxu0 %v2312_v5 }
 0x85e   : > { %4435 = vmatprep.subr.bf16.mxu0 %v2311_v50 }
 0x863   : > { %4420 = vmatmul.mubr.bf16.gmra.mxu1 %v6926_v15 }
 0x864   : > { %4423 = vmatprep.mubr.bf16.mxu1 %v6932_v23 }
 0x865   : > { %4436 = vmatpush3.bf16.xpose.msra.mxu0 %v2311_v50 }
 0x866   : > { %4437 = vmatprep.subr.bf16.mxu0 %v2310_v52 }
 0x86b   : > { %4424 = vmatmul.mubr.bf16.gmra.mxu1 %v6938_v32 }
 0x86c   : > { %4427 = vmatprep.mubr.bf16.mxu1 %v6944_v27 }
 0x86d   : > { %4438 = vmatpush3.bf16.xpose.msra.mxu0 %v2310_v52 }
 0x86e   : > { %4439 = vmatprep.subr.bf16.mxu0 %v2309_v34 }
 0x873   : > { %4428 = vmatmul.mubr.bf16.gmra.mxu1 %v6950_v61 }
 0x875   : > { %4440 = vmatpush3.bf16.xpose.msra.mxu0 %v2309_v34 }
 0x876   : > { %4441 = vmatprep.subr.bf16.mxu0 %v6969_v13 }
 0x87d   : > { %4442 = vmatpush3.bf16.xpose.msra.mxu0 %v6969_v13 }
 0x87e   : > { %4443 = vmatprep.subr.bf16.mxu0 %v6961_v11 }
 0x885   : > { %4444 = vmatpush3.bf16.xpose.msra.mxu0 %v6961_v11 }
 0x886   : > { %4445 = vmatprep.subr.bf16.mxu0 %v6953_v56 }
 0x88d   : > { %4446 = vmatpush3.bf16.xpose.msra.mxu0 %v6953_v56 }
 0x894   : > { %4448 = vmatmul.mubr.bf16.vlgmr.msra.gmra.mxu0 %v7688_v19 }
 0x895   : > { %4451 = vmatprep.mubr.bf16.mxu0 %v7689_v40 }
 0x89c   : > { %4452 = vmatmul.mubr.bf16.gmra.mxu0 %v2301_v31 }
 0x89d   : > { %4455 = vmatprep.mubr.bf16.mxu0 %v2302_v8 }
 0x8a4   : > { %4456 = vmatmul.mubr.bf16.gmra.mxu0 %v2303_v38 }
 0x8a5   : > { %4459 = vmatprep.mubr.bf16.mxu0 %v2304_v22 }
 0x8ac   : > { %4460 = vmatmul.mubr.bf16.gmra.mxu0 %v2305_v7 }
 0x8ad   : > { %3017 = vmatprep.mubr.bf16.mxu0 %v7690_v47 }
 0x91b   : > { %v4417_v16 = vpop.f32.mrf.mxu1 }
 0x91d   : > { %v2219_v5 = vpop.f32.mrf.mxu1 }
 0x91f   : > { %v4418_v50 = vpop.f32.mrf.mxu1 }
 0x921   : > { %v2222_v52 = vpop.f32.mrf.mxu1 }
 0x923   : > { %v4421_v34 = vpop.f32.mrf.mxu1 }
 0x925   : > { %v2235_v19 = vpop.f32.mrf.mxu1 }
 0x927   : > { %v4422_v40 = vpop.f32.mrf.mxu1 }
 0x929   : > { %v2238_v21 = vpop.f32.mrf.mxu1 }
 0x92b   : > { %v4425_v17 = vpop.f32.mrf.mxu1 }
 0x92d   : > { %v2251_v55 = vpop.f32.mrf.mxu1 }
 0x954   : > { %v4449_v38 = vpop.f32.mrf.mxu0 }
 0x955   : > { %v7006_v22 = vadd.f32 %v4449_v38, %v7675_v0  ;;  %v4426_v38 = vpop.f32.mrf.mxu1 }
 0x956   : > { %v2354_v7 = vpop.f32.mrf.mxu0 }
 0x957   : > { %v7009_v12 = vadd.f32 %v7675_v0, %v2354_v7  ;;  %2421 = vmax.xlane.f32.xlu1 %v7006_v22  ;;  %v2254_v7 = vpop.f32.mrf.mxu1 }
 0x958   : > { %v4450_v3 = vpop.f32.mrf.mxu0 }
 0x959   : > { %v7013_v33 = vadd.f32 %v4450_v3, %v7675_v0  ;;  %2417 = vmax.xlane.f32.xlu0 %v7009_v12  ;;  %v4429_v3 = vpop.f32.mrf.mxu1 }
 0x95a   : > { %v2357_v15 = vpop.f32.mrf.mxu0 }
 0x95b   : > { %v7017_v23 = vadd.f32 %v7675_v0, %v2357_v15  ;;  %2423 = vmax.xlane.f32.xlu1 %v7013_v33  ;;  %v2267_v15 = vpop.f32.mrf.mxu1 }
 0x95c   : > { %v4453_v32 = vpop.f32.mrf.mxu0 }
 0x95d   : > { %2419 = vmax.xlane.f32.xlu0 %v7017_v23  ;;  %v7026_v49 = vadd.f32 %v4453_v32, %v7675_v0  ;;  %v4430_v32 = vpop.f32.mrf.mxu1 }
 0x95e   : > { %v2370_v27 = vpop.f32.mrf.mxu0 }
 0x95f   : > { %v7022_v61 = vadd.f32 %v7675_v0, %v2370_v27  ;;  %v2592_v27 = vpack.c.bf16 %v4430_v32, %v4429_v3 }
 0x960   : > { %v4454_v56 = vpop.f32.mrf.mxu0 }
 0x961   : > { %2425 = vmax.xlane.f32.xlu0 %v7022_v61  ;;  %v7034_v26 = vadd.f32 %v4454_v56, %v7675_v0  ;;  %v2270_v56 = vpop.f32.mrf.mxu1  ;;  %4463 = vmatprep.subr.bf16.mxu1 %v2592_v27 }
 0x962   : > { %v2373_v14 = vpop.f32.mrf.mxu0  ;;  %4464 = vmatpush3.bf16.msra.mxu1 %v2592_v27 }
 0x963   : > { %v7029_v11 = vadd.f32 %v7675_v0, %v2373_v14  ;;  %v2591_v14 = vpack.c.bf16 %v2270_v56, %v2267_v15 }
 0x964   : > { %v4457_v25 = vpop.f32.mrf.mxu0 }
 0x965   : > { %2427 = vmax.xlane.f32.xlu1 %v7029_v11  ;;  %2429 = vmax.xlane.f32.xlu0 %v7026_v49  ;;  %v7042_v31 = vadd.f32 %v4457_v25, %v7675_v0  ;;  %v2590_v25 = vpack.c.bf16 %v4426_v38, %v4425_v17 }
 0x966   : > { %v2386_v51 = vpop.f32.mrf.mxu0  ;;  %4465 = vmatprep.subr.bf16.mxu1 %v2591_v14 }
 0x967   : > { %v7037_v13 = vadd.f32 %v7675_v0, %v2386_v51  ;;  %4466 = vmatpush3.bf16.msra.mxu1 %v2591_v14  ;;  %v2589_v51 = vpack.c.bf16 %v2254_v7, %v2251_v55 }
 0x968   : > { %v4458_v10 = vpop.f32.mrf.mxu0  ;;  %4467 = vmatprep.subr.bf16.mxu1 %v2590_v25 }
 0x969   : > { %2431 = vmax.xlane.f32.xlu1 %v7034_v26  ;;  %2433 = vmax.xlane.f32.xlu0 %v7037_v13  ;;  %v7050_v63 = vadd.f32 %v4458_v10, %v7675_v0  ;;  %v2588_v10 = vpack.c.bf16 %v4422_v40, %v4421_v34 }
 0x96a   : > { %v2389_v58 = vpop.f32.mrf.mxu0 }
 0x96b   : > { %v7045_v46 = vadd.f32 %v7675_v0, %v2389_v58  ;;  %4468 = vmatpush3.bf16.msra.mxu1 %v2590_v25  ;;  %v2587_v58 = vpack.c.bf16 %v2238_v21, %v2235_v19 }
 0x96c   : > { %v4461_v8 = vpop.f32.mrf.mxu0  ;;  %4469 = vmatprep.subr.bf16.mxu1 %v2589_v51 }
 0x96d   : > { %2435 = vmax.xlane.f32.xlu1 %v7045_v46  ;;  %2437 = vmax.xlane.f32.xlu0 %v7042_v31  ;;  %v7058_v43 = vadd.f32 %v4461_v8, %v7675_v0  ;;  %v2586_v8 = vpack.c.bf16 %v4418_v50, %v4417_v16 }
 0x96e   : > { %v2402_v9 = vpop.f32.mrf.mxu0 }
 0x96f   : > { %v7053_v24 = vadd.f32 %v7675_v0, %v2402_v9  ;;  %4470 = vmatpush3.bf16.msra.mxu1 %v2589_v51  ;;  %v2585_v9 = vpack.c.bf16 %v2222_v52, %v2219_v5 }
 0x970   : > { %v4462_v36 = vpop.f32.mrf.mxu0  ;;  %4471 = vmatprep.subr.bf16.mxu1 %v2588_v10 }
 0x971   : > { %2439 = vmax.xlane.f32.xlu1 %v7050_v63  ;;  %2441 = vmax.xlane.f32.xlu0 %v7053_v24  ;;  %v7066_v39 = vadd.f32 %v4462_v36, %v7675_v0 }
 0x972   : > { %v2405_v6 = vpop.f32.mrf.mxu0 }
 0x973   : > { %v7061_v2 = vadd.f32 %v7675_v0, %v2405_v6  ;;  %4472 = vmatpush3.bf16.msra.mxu1 %v2588_v10 }
 0x974   : > { %4473 = vmatprep.subr.bf16.mxu1 %v2587_v58 }
 0x975   : > { %2443 = vmax.xlane.f32.xlu1 %v7061_v2  ;;  %2445 = vmax.xlane.f32.xlu0 %v7058_v43 }
 0x977   : > { %4474 = vmatpush3.bf16.msra.mxu1 %v2587_v58 }
 0x978   : > { %4475 = vmatprep.subr.bf16.mxu1 %v2586_v8 }
 0x979   : > { %2447 = vmax.xlane.f32.xlu1 %v7066_v39 }
 0x97b   : > { %4476 = vmatpush3.bf16.msra.mxu1 %v2586_v8 }
 0x97c   : > { %4477 = vmatprep.subr.bf16.mxu1 %v2585_v9 }
 0x97f   : > { %4478 = vmatpush3.bf16.msra.mxu1 %v2585_v9 }
 0x9e0   : > { %v2422_v36 = vpop.xlane.xlu1 %2421 }
 0x9e1   : > { %v2451_v6 = vsub.f32 %v7006_v22, %v2422_v36 }
 0x9e2   : > { %v2418_v17 = vpop.xlane.xlu0 %2417 }
 0x9e3   : > { %v2449_v55 = vsub.f32 %v7009_v12, %v2418_v17  ;;  %v2469_v38 = vmul.f32 1.442695, %v2451_v6 }
 0x9e4   : > { %v2424_v34 = vpop.xlane.xlu1 %2423 }
 0x9e5   : > { %v2465_v40 = vmul.f32 1.442695, %v2449_v55  ;;  %v2452_v19 = vsub.f32 %v7013_v33, %v2424_v34 }
 0x9e6   : > { %v2420_v21 = vpop.xlane.xlu0 %2419 }
 0x9e7   : > { %5228 = vpow2.f32 %v2465_v40  ;;  %v2450_v16 = vsub.f32 %v7017_v23, %v2420_v21  ;;  %v2471_v50 = vmul.f32 1.442695, %v2452_v19 }
 0x9e8   : > { %5230 = vpow2.f32 %v2469_v38 }
 0x9e9   : > { %v2467_v5 = vmul.f32 1.442695, %v2450_v16 }
 0x9ea   : > { %v2426_v52 = vpop.xlane.xlu0 %2425 }
 0x9eb   : > { %5232 = vpow2.f32 %v2467_v5  ;;  %v2453_v7 = vsub.f32 %v7022_v61, %v2426_v52 }
 0x9ec   : > { %5234 = vpow2.f32 %v2471_v50 }
 0x9ed   : > { %v2473_v22 = vmul.f32 1.442695, %v2453_v7 }
 0x9ee   : > { %v2428_v3 = vpop.xlane.xlu1 %2427  ;;  %v2430_v12 = vpop.xlane.xlu0 %2429 }
 0x9ef   : > { %5236 = vpow2.f32 %v2473_v22  ;;  %v2454_v15 = vsub.f32 %v7029_v11, %v2428_v3  ;;  %v2455_v33 = vsub.f32 %v7026_v49, %v2430_v12 }
 0x9f1   : > { %v2475_v32 = vmul.f32 1.442695, %v2454_v15  ;;  %v2477_v27 = vmul.f32 1.442695, %v2455_v33 }
 0x9f2   : > { %v2432_v56 = vpop.xlane.xlu1 %2431  ;;  %v2434_v23 = vpop.xlane.xlu0 %2433 }
 0x9f3   : > { %5238 = vpow2.f32 %v2475_v32  ;;  %v2456_v14 = vsub.f32 %v7034_v26, %v2432_v56  ;;  %v2457_v25 = vsub.f32 %v7037_v13, %v2434_v23  ;;  %v5180_v23 = vld [vmem:[%s7134_s3 + $0x38] sm:$0xff]  }
 0x9f4   : > { %v7078_v51 = vpop.eup %5228  ;;  %5240 = vpow2.f32 %v2477_v27  ;;  %4495 = vmatprep.subr.bf16.mxu1 %v5180_v23 }
 0x9f5   : > { %v2479_v61 = vmul.f32 1.442695, %v2456_v14  ;;  %v2481_v10 = vmul.f32 1.442695, %v2457_v25  ;;  %2497 = vadd.xlane.f32.xlu0 %v7078_v51  ;;  %v7081_v8 = vpop.eup %5230 }
 0x9f6   : > { %v2436_v58 = vpop.xlane.xlu1 %2435  ;;  %v2438_v11 = vpop.xlane.xlu0 %2437 }
 0x9f7   : > { %5242 = vpow2.f32 %v2479_v61  ;;  %v2458_v49 = vsub.f32 %v7045_v46, %v2436_v58  ;;  %v2459_v9 = vsub.f32 %v7042_v31, %v2438_v11 }
 0x9f8   : > { %v7085_v36 = vpop.eup %5232  ;;  %5244 = vpow2.f32 %v2481_v10 }
 0x9f9   : > { %v2483_v26 = vmul.f32 1.442695, %v2458_v49  ;;  %v2485_v13 = vmul.f32 1.442695, %v2459_v9  ;;  %2501 = vadd.xlane.f32.xlu0 %v7081_v8  ;;  %2499 = vadd.xlane.f32.xlu1 %v7085_v36  ;;  %v7089_v55 = vpop.eup %5234 }
 0x9fa   : > { %v2440_v6 = vpop.xlane.xlu1 %2439  ;;  %v2442_v17 = vpop.xlane.xlu0 %2441 }
 0x9fb   : > { %5246 = vpow2.f32 %v2483_v26  ;;  %v2460_v34 = vsub.f32 %v7050_v63, %v2440_v6  ;;  %v2461_v46 = vsub.f32 %v7053_v24, %v2442_v17 }
 0x9fc   : > { %v7093_v40 = vpop.eup %5236  ;;  %5248 = vpow2.f32 %v2485_v13 }
 0x9fd   : > { %v2487_v31 = vmul.f32 1.442695, %v2460_v34  ;;  %v2489_v38 = vmul.f32 1.442695, %v2461_v46  ;;  %2503 = vadd.xlane.f32.xlu1 %v7089_v55  ;;  %2505 = vadd.xlane.f32.xlu0 %v7093_v40 }
 0x9fe   : > { %v2444_v19 = vpop.xlane.xlu1 %2443  ;;  %v2446_v21 = vpop.xlane.xlu0 %2445 }
 0x9ff   : > { %5250 = vpow2.f32 %v2487_v31  ;;  %v2462_v16 = vsub.f32 %v7061_v2, %v2444_v19  ;;  %v2463_v5 = vsub.f32 %v7058_v43, %v2446_v21 }
 0xa00   : > { %v7099_v50 = vpop.eup %5238  ;;  %5252 = vpow2.f32 %v2489_v38 }
 0xa01   : > { %v7101_v63 = vpop.eup %5240  ;;  %v2491_v24 = vmul.f32 1.442695, %v2462_v16  ;;  %v2493_v52 = vmul.f32 1.442695, %v2463_v5  ;;  %2507 = vadd.xlane.f32.xlu1 %v7099_v50 }
 0xa02   : > { %2509 = vadd.xlane.f32.xlu0 %v7101_v63  ;;  %v2448_v7 = vpop.xlane.xlu1 %2447 }
 0xa03   : > { %5254 = vpow2.f32 %v2491_v24  ;;  %v2464_v22 = vsub.f32 %v7066_v39, %v2448_v7 }
 0xa04   : > { %v7106_v3 = vpop.eup %5242  ;;  %5256 = vpow2.f32 %v2493_v52 }
 0xa05   : > { %v7108_v2 = vpop.eup %5244  ;;  %v2495_v43 = vmul.f32 1.442695, %v2464_v22  ;;  %2511 = vadd.xlane.f32.xlu1 %v7106_v3 }
 0xa06   : > { %2513 = vadd.xlane.f32.xlu0 %v7108_v2 }
 0xa07   : > { %5258 = vpow2.f32 %v2495_v43 }
 0xa08   : > { %v7112_v12 = vpop.eup %5246 }
 0xa09   : > { %v7114_v15 = vpop.eup %5248  ;;  %2515 = vadd.xlane.f32.xlu1 %v7112_v12 }
 0xa0a   : > { %2517 = vadd.xlane.f32.xlu0 %v7114_v15 }
 0xa0c   : > { %v7118_v39 = vpop.eup %5250 }
 0xa0d   : > { %v7120_v33 = vpop.eup %5252  ;;  %2519 = vadd.xlane.f32.xlu1 %v7118_v39 }
 0xa0e   : > { %2521 = vadd.xlane.f32.xlu0 %v7120_v33 }
 0xa10   : > { %v7124_v32 = vpop.eup %5254 }
 0xa11   : > { %v7126_v27 = vpop.eup %5256  ;;  %2523 = vadd.xlane.f32.xlu1 %v7124_v32 }
 0xa12   : > { %2525 = vadd.xlane.f32.xlu0 %v7126_v27 }
 0xa14   : > { %v7130_v56 = vpop.eup %5258 }
 0xa15   : > { %2527 = vadd.xlane.f32.xlu1 %v7130_v56 }
 0xa7e   : > { %v2498_v14 = vpop.xlane.xlu0 %2497 }
 0xa7f   : > { %5260 = vrcp.f32 %v2498_v14 }
 0xa82   : > { %v2500_v25 = vpop.xlane.xlu1 %2499  ;;  %v2502_v61 = vpop.xlane.xlu0 %2501 }
 0xa83   : > { %5262 = vrcp.f32 %v2500_v25 }
 0xa84   : > { %5264 = vrcp.f32 %v2502_v61 }
 0xa86   : > { %v2504_v10 = vpop.xlane.xlu1 %2503  ;;  %v2506_v58 = vpop.xlane.xlu0 %2505 }
 0xa87   : > { %5266 = vrcp.f32 %v2504_v10  ;;  %v5182_v10 = vld [vmem:[%s7134_s3 + $0x28] sm:$0xff]  }
 0xa88   : > { %5268 = vrcp.f32 %v2506_v58 }
 0xa8a   : > { %v2508_v11 = vpop.xlane.xlu1 %2507 }
 0xa8b   : > { %5270 = vrcp.f32 %v2508_v11  ;;  %v2510_v49 = vpop.xlane.xlu0 %2509 }
 0xa8c   : > { %5272 = vrcp.f32 %v2510_v49  ;;  %v5261_v9 = vpop.eup %5260 }
 0xa8d   : > { %v2561_v17 = vmul.f32 %v5261_v9, %v7078_v51 }
 0xa8e   : > { %v2512_v26 = vpop.xlane.xlu1 %2511 }
 0xa8f   : > { %5274 = vrcp.f32 %v2512_v26  ;;  %v2514_v13 = vpop.xlane.xlu0 %2513 }
 0xa90   : > { %v5263_v6 = vpop.eup %5262  ;;  %5276 = vrcp.f32 %v2514_v13 }
 0xa91   : > { %v2562_v34 = vmul.f32 %v5263_v6, %v7085_v36  ;;  %v5265_v46 = vpop.eup %5264  ;;  %v5181_v36 = vld [vmem:[%s7134_s3 + $0x30] sm:$0xff]  }
 0xa92   : > { %v2516_v31 = vpop.xlane.xlu1 %2515  ;;  %v2563_v16 = vmul.f32 %v5265_v46, %v7081_v8 }
 0xa93   : > { %5278 = vrcp.f32 %v2516_v31  ;;  %v2518_v38 = vpop.xlane.xlu0 %2517  ;;  %v2577_v19 = vpack.c.bf16 %v2562_v34, %v2561_v17 }
 0xa94   : > { %v5267_v21 = vpop.eup %5266  ;;  %5280 = vrcp.f32 %v2518_v38 }
 0xa95   : > { %4479 = vmatprep.mubr.bf16.mxu1 %v2577_v19  ;;  %v2564_v5 = vmul.f32 %v5267_v21, %v7089_v55  ;;  %v5269_v24 = vpop.eup %5268  ;;  %v5185_v21 = vld [vmem:[%s7134_s3 + $0x10] sm:$0xff]  }
 0xa96   : > { %v2520_v52 = vpop.xlane.xlu1 %2519  ;;  %v2565_v43 = vmul.f32 %v5269_v24, %v7093_v40 }
 0xa97   : > { %5282 = vrcp.f32 %v2520_v52  ;;  %v2522_v51 = vpop.xlane.xlu0 %2521  ;;  %v2578_v7 = vpack.c.bf16 %v2564_v5, %v2563_v16 }
 0xa98   : > { %v5271_v22 = vpop.eup %5270  ;;  %5284 = vrcp.f32 %v2522_v51 }
 0xa99   : > { %4480 = vmatmul.mubr.bf16.vlgmr.msra.gmra.mxu1 %v2578_v7  ;;  %v2566_v14 = vmul.f32 %v5271_v22, %v7099_v50  ;;  %v5273_v25 = vpop.eup %5272  ;;  %v5186_v7 = vld [vmem:[%s7134_s3 + $0x8] sm:$0xff]   ;;  %v5196_v22 = vld [vmem:[%s7161_s16 + $0x54] ss:$8 sps:$4 sm:$0xff]  }
 0xa9a   : > { %v2524_v61 = vpop.xlane.xlu1 %2523  ;;  %4496 = vmatpush3.bf16.msra.mxu1 %v5180_v23  ;;  %v2567_v11 = vmul.f32 %v5273_v25, %v7101_v63  ;;  %v5183_v23 = vld [vmem:[%s7134_s3 + $0x20] sm:$0xff]  }
 0xa9b   : > { %5286 = vrcp.f32 %v2524_v61  ;;  %v2526_v8 = vpop.xlane.xlu0 %2525  ;;  %v2579_v55 = vpack.c.bf16 %v2566_v14, %v2565_v43  ;;  %4497 = vmatprep.subr.bf16.mxu1 %v5181_v36  ;;  %v5194_v43 = vld [vmem:[%s7161_s16 + $0x50] ss:$8 sps:$4 sm:$0xff]   ;;  %v5199_v14 = vld [vmem:[%s7161_s16 + $0x44] ss:$8 sps:$4 sm:$0xff]   ;;  %v5197_v25 = vld [vmem:[%s7161_s16 + $0x40] ss:$8 sps:$4 sm:$0xff]  }
 0xa9c   : > { %v5275_v58 = vpop.eup %5274  ;;  %5288 = vrcp.f32 %v2526_v8  ;;  %v5202_v61 = vld [vmem:[%s7161_s16 + $0x34] ss:$8 sps:$4 sm:$0xff]   ;;  %v5200_v8 = vld [vmem:[%s7161_s16 + $0x30] ss:$8 sps:$4 sm:$0xff]  }
 0xa9d   : > { %4483 = vmatprep.mubr.bf16.mxu1 %v2579_v55  ;;  %v2568_v49 = vmul.f32 %v5275_v58, %v7106_v3  ;;  %v5277_v40 = vpop.eup %5276  ;;  %v5184_v3 = vld [vmem:[%s7134_s3 + $0x18] sm:$0xff]   ;;  %v5205_v55 = vld [vmem:[%s7161_s16 + $0x24] ss:$8 sps:$4 sm:$0xff]  }
 0xa9e   : > { %v2528_v9 = vpop.xlane.xlu1 %2527  ;;  %4498 = vmatpush3.bf16.msra.mxu1 %v5181_v36  ;;  %v2569_v13 = vmul.f32 %v5277_v40, %v7108_v2  ;;  %v5191_v36 = vld [vmem:[%s7161_s16 + $0x60] ss:$8 sps:$4 sm:$0xff]  }
 0xa9f   : > { %5290 = vrcp.f32 %v2528_v9  ;;  %v2580_v50 = vpack.c.bf16 %v2568_v49, %v2567_v11  ;;  %4499 = vmatprep.subr.bf16.mxu1 %v5182_v10 }
 0xaa0   : > { %v5279_v26 = vpop.eup %5278 }
 0xaa1   : > { %4484 = vmatmul.mubr.bf16.gmra.mxu1 %v2580_v50  ;;  %v2570_v6 = vmul.f32 %v5279_v26, %v7112_v12  ;;  %v5281_v17 = vpop.eup %5280 }
 0xaa2   : > { %4500 = vmatpush3.bf16.msra.mxu1 %v5182_v10  ;;  %v2571_v46 = vmul.f32 %v5281_v17, %v7114_v15  ;;  %v5203_v10 = vld [vmem:[%s7161_s16 + $0x20] ss:$8 sps:$4 sm:$0xff]  }
 0xaa3   : > { %v2581_v63 = vpack.c.bf16 %v2570_v6, %v2569_v13  ;;  %4501 = vmatprep.subr.bf16.mxu1 %v5183_v23 }
 0xaa4   : > { %v5283_v34 = vpop.eup %5282 }
 0xaa5   : > { %4487 = vmatprep.mubr.bf16.mxu1 %v2581_v63  ;;  %v2572_v31 = vmul.f32 %v5283_v34, %v7118_v39  ;;  %v5285_v38 = vpop.eup %5284 }
 0xaa6   : > { %4502 = vmatpush3.bf16.msra.mxu1 %v5183_v23  ;;  %v2573_v12 = vmul.f32 %v5285_v38, %v7120_v33  ;;  %v5187_v33 = vld [vmem:[%s7134_s3] sm:$0xff]  }
 0xaa7   : > { %v2582_v19 = vpack.c.bf16 %v2572_v31, %v2571_v46  ;;  %4503 = vmatprep.subr.bf16.mxu1 %v5184_v3 }
 0xaa8   : > { %v5287_v2 = vpop.eup %5286 }
 0xaa9   : > { %4488 = vmatmul.mubr.bf16.gmra.mxu1 %v2582_v19  ;;  %v2574_v16 = vmul.f32 %v5287_v2, %v7124_v32  ;;  %v5289_v5 = vpop.eup %5288  ;;  %v5188_v32 = vld [vmem:[%s7161_s16 + $0x70] ss:$8 sps:$4 sm:$0xff]  }
 0xaaa   : > { %4504 = vmatpush3.bf16.msra.mxu1 %v5184_v3  ;;  %v2575_v39 = vmul.f32 %v5289_v5, %v7126_v27  ;;  %v5190_v27 = vld [vmem:[%s7161_s16 + $0x74] ss:$8 sps:$4 sm:$0xff]  }
 0xaab   : > { %v2583_v24 = vpack.c.bf16 %v2574_v16, %v2573_v12  ;;  %4505 = vmatprep.subr.bf16.mxu1 %v5185_v21  ;;  %2985 = vmatprep.subr.bf16.mxu0 %v5190_v27 }
 0xaac   : > { %v5291_v15 = vpop.eup %5290  ;;  %2986 = vmatpush1.bf16.msra.mxu0 %v5188_v32 }
 0xaad   : > { %4491 = vmatprep.mubr.bf16.mxu1 %v2583_v24  ;;  %v2576_v52 = vmul.f32 %v5291_v15, %v7130_v56  ;;  %v5193_v56 = vld [vmem:[%s7161_s16 + $0x64] ss:$8 sps:$4 sm:$0xff]   ;;  %v5208_v15 = vld [vmem:[%s7161_s16 + $0x14] ss:$8 sps:$4 sm:$0xff]  }
 0xaae   : > { %4506 = vmatpush3.bf16.msra.mxu1 %v5185_v21  ;;  %2987 = vmatprep.subr.bf16.mxu0 %v5193_v56 }
 0xaaf   : > { %v2584_v51 = vpack.c.bf16 %v2576_v52, %v2575_v39  ;;  %4507 = vmatprep.subr.bf16.mxu1 %v5186_v7  ;;  %v5206_v39 = vld [vmem:[%s7161_s16 + $0x10] ss:$8 sps:$4 sm:$0xff]   ;;  %v5211_v52 = vld [vmem:[%s7161_s16 + $0x4] ss:$8 sps:$4 sm:$0xff]  }
 0xab0   : > { %2988 = vmatpush1.bf16.msra.mxu0 %v5191_v36 }
 0xab1   : > { %4492 = vmatmul.mubr.bf16.gmra.mxu1 %v2584_v51  ;;  %2989 = vmatprep.subr.bf16.mxu0 %v5196_v22  ;;  %v5209_v51 = vld [vmem:[%s7161_s16] ss:$8 sps:$4 sm:$0xff]  }
 0xab2   : > { %4508 = vmatpush3.bf16.msra.mxu1 %v5186_v7 }
 0xab3   : > { %4509 = vmatprep.subr.bf16.mxu1 %v5187_v33 }
 0xab4   : > { %2990 = vmatpush1.bf16.msra.mxu0 %v5194_v43 }
 0xab5   : > { %2991 = vmatprep.subr.bf16.mxu0 %v5199_v14 }
 0xab6   : > { %4510 = vmatpush3.bf16.msra.mxu1 %v5187_v33 }
 0xab8   : > { %2992 = vmatpush1.bf16.msra.mxu0 %v5197_v25 }
 0xab9   : > { %2993 = vmatprep.subr.bf16.mxu0 %v5202_v61 }
 0xabc   : > { %2994 = vmatpush1.bf16.msra.mxu0 %v5200_v8 }
 0xabd   : > { %2995 = vmatprep.subr.bf16.mxu0 %v5205_v55 }
 0xac0   : > { %2996 = vmatpush1.bf16.msra.mxu0 %v5203_v10 }
 0xac1   : > { %2997 = vmatprep.subr.bf16.mxu0 %v5208_v15  ;;  %v5227_v15 = vld [vmem:[%s7170_s2] sm:$0xff]  }
 0xac4   : > { %2998 = vmatpush1.bf16.msra.mxu0 %v5206_v39 }
 0xac5   : > { %2999 = vmatprep.subr.bf16.mxu0 %v5211_v52 }
 0xac8   : > { %3000 = vmatpush1.bf16.msra.mxu0 %v5209_v51 }
 0xb59   : > { %v4481_v58 = vpop.f32.mrf.mxu1 }
 0xb5b   : > { %v2627_v11 = vpop.f32.mrf.mxu1 }
 0xb5d   : > { %v4482_v49 = vpop.f32.mrf.mxu1 }
 0xb5e   : > { %v2691_v50 = vpack.c.bf16 %v4482_v49, %v4481_v58 }
 0xb5f   : > { %v2630_v40 = vpop.f32.mrf.mxu1 }
 0xb60   : > { %v2690_v9 = vpack.c.bf16 %v2630_v40, %v2627_v11 }
 0xb61   : > { %v4485_v23 = vpop.f32.mrf.mxu1 }
 0xb62   : > { %4511 = vmatprep.mubr.bf16.mxu1 %v2690_v9 }
 0xb63   : > { %v2643_v26 = vpop.f32.mrf.mxu1  ;;  %4512 = vmatmul.mubr.bf16.vlgmr.msra.gmra.mxu1 %v2691_v50 }
 0xb65   : > { %v4486_v13 = vpop.f32.mrf.mxu1 }
 0xb66   : > { %v2693_v63 = vpack.c.bf16 %v4486_v13, %v4485_v23 }
 0xb67   : > { %v2646_v6 = vpop.f32.mrf.mxu1 }
 0xb68   : > { %v2692_v17 = vpack.c.bf16 %v2646_v6, %v2643_v26 }
 0xb69   : > { %v4489_v3 = vpop.f32.mrf.mxu1 }
 0xb6a   : > { %4515 = vmatprep.mubr.bf16.mxu1 %v2692_v17 }
 0xb6b   : > { %v2659_v34 = vpop.f32.mrf.mxu1  ;;  %4516 = vmatmul.mubr.bf16.gmra.mxu1 %v2693_v63 }
 0xb6d   : > { %v4490_v46 = vpop.f32.mrf.mxu1 }
 0xb6e   : > { %v2695_v19 = vpack.c.bf16 %v4490_v46, %v4489_v3  ;;  %v5214_v46 = vld [vmem:[%s7170_s2 + $0x70] sm:$0xff]  }
 0xb6f   : > { %v2662_v31 = vpop.f32.mrf.mxu1 }
 0xb70   : > { %v2694_v38 = vpack.c.bf16 %v2662_v31, %v2659_v34  ;;  %v5213_v34 = vld [vmem:[%s7170_s2 + $0x38] sm:$0xff]   ;;  %v5218_v31 = vld [vmem:[%s7170_s2 + $0x60] sm:$0xff]  }
 0xb71   : > { %v4493_v21 = vpop.f32.mrf.mxu1 }
 0xb72   : > { %4519 = vmatprep.mubr.bf16.mxu1 %v2694_v38  ;;  %v5219_v38 = vld [vmem:[%s7170_s2 + $0x20] sm:$0xff]  }
 0xb73   : > { %v2675_v2 = vpop.f32.mrf.mxu1  ;;  %4520 = vmatmul.mubr.bf16.gmra.mxu1 %v2695_v19  ;;  %v5220_v19 = vld [vmem:[%s7170_s2 + $0x58] sm:$0xff]  }
 0xb75   : > { %v4494_v12 = vpop.f32.mrf.mxu1 }
 0xb76   : > { %v2697_v24 = vpack.c.bf16 %v4494_v12, %v4493_v21  ;;  %v5221_v21 = vld [vmem:[%s7170_s2 + $0x18] sm:$0xff]   ;;  %v5223_v12 = vld [vmem:[%s7170_s2 + $0x10] sm:$0xff]  }
 0xb77   : > { %v2678_v16 = vpop.f32.mrf.mxu1 }
 0xb78   : > { %v2696_v5 = vpack.c.bf16 %v2678_v16, %v2675_v2  ;;  %v5222_v2 = vld [vmem:[%s7170_s2 + $0x50] sm:$0xff]   ;;  %v5224_v16 = vld [vmem:[%s7170_s2 + $0x48] sm:$0xff]  }
 0xb7a   : > { %4523 = vmatprep.mubr.bf16.mxu1 %v2696_v5  ;;  %v5225_v5 = vld [vmem:[%s7170_s2 + $0x8] sm:$0xff]  }
 0xb7b   : > { %4524 = vmatmul.mubr.bf16.gmra.mxu1 %v2697_v24  ;;  %v5226_v24 = vld [vmem:[%s7170_s2 + $0x40] sm:$0xff]  }
 0xc23   : > { %v4513_v7 = vpop.f32.mrf.mxu1 }
 0xc24   : > { %v7194_v8 = vadd.f32 %v5850_v37, %v4513_v7 }
 0xc25   : > { %v2799_v33 = vpop.f32.mrf.mxu1 }
 0xc26   : > { %v7182_v56 = vadd.f32 %v5858_v41, %v2799_v33 }
 0xc27   : > { %v4514_v32 = vpop.f32.mrf.mxu1 }
 0xc28   : > { %v7191_v25 = vadd.f32 %v5846_v57, %v4514_v32 }
 0xc29   : > { %v2802_v27 = vpop.f32.mrf.mxu1 }
 0xc2a   : > { %v7185_v36 = vadd.f32 %v5854_v48, %v2802_v27  ;;  %v2879_v41 = vpack.c.bf16 %v7191_v25, %v7194_v8 }
 0xc2b   : > { %v4517_v22 = vpop.f32.mrf.mxu1 }
 0xc2c   : > { %v2878_v43 = vpack.c.bf16 %v7185_v36, %v7182_v56  ;;  %v7212_v40 = vadd.f32 %v5834_v45, %v4517_v22 }
 0xc2d   : > { %v2815_v14 = vpop.f32.mrf.mxu1 }
 0xc2e   : > { %3018 = vmatmul.mubr.bf16.vlgmr.msra.gmra.mxu0 %v2878_v43  ;;  %v7203_v58 = vadd.f32 %v5842_v42, %v2815_v14 }
 0xc2f   : > { %3027 = vmatprep.mubr.bf16.mxu0 %v7690_v47  ;;  %v4518_v61 = vpop.f32.mrf.mxu1 }
 0xc30   : > { %v7209_v37 = vadd.f32 %v5830_v35, %v4518_v61 }
 0xc31   : > { %v2818_v48 = vpop.f32.mrf.mxu1 }
 0xc32   : > { %v7200_v55 = vadd.f32 %v5838_v60, %v2818_v48  ;;  %v2881_v60 = vpack.c.bf16 %v7209_v37, %v7212_v40 }
 0xc33   : > { %v4521_v10 = vpop.f32.mrf.mxu1 }
 0xc34   : > { %v2880_v57 = vpack.c.bf16 %v7200_v55, %v7203_v58 }
 0xc35   : > { %v2831_v11 = vpop.f32.mrf.mxu1 }
 0xc36   : > { %3028 = vmatmul.mubr.bf16.gmra.mxu0 %v2879_v41  ;;  %v7221_v23 = vadd.f32 %v5826_v20, %v2831_v11 }
 0xc37   : > { %3037 = vmatprep.mubr.bf16.mxu0 %v7690_v47  ;;  %v4522_v49 = vpop.f32.mrf.mxu1 }
 0xc38   : > { %v7227_v45 = vadd.f32 %v5814_v30, %v4522_v49 }
 0xc39   : > { %v2834_v9 = vpop.f32.mrf.mxu1 }
 0xc3a   : > { %v7218_v42 = vadd.f32 %v5822_v53, %v2834_v9  ;;  %v7230_v53 = vadd.f32 %v5818_v59, %v4521_v10 }
 0xc3b   : > { %v4525_v50 = vpop.f32.mrf.mxu1 }
 0xc3c   : > { %v2882_v35 = vpack.c.bf16 %v7218_v42, %v7221_v23  ;;  %v2883_v20 = vpack.c.bf16 %v7227_v45, %v7230_v53  ;;  %v7248_v3 = vadd.f32 %v5802_v29, %v4525_v50  ;;  %v5217_v29 = vld [vmem:[%s7170_s2 + $0x28] sm:$0xff]  }
 0xc3d   : > { %v2847_v26 = vpop.f32.mrf.mxu1 }
 0xc3e   : > { %3038 = vmatmul.mubr.bf16.gmra.mxu0 %v2880_v57  ;;  %v7239_v30 = vadd.f32 %v5810_v62, %v2847_v26 }
 0xc3f   : > { %3047 = vmatprep.mubr.bf16.mxu0 %v7690_v47  ;;  %v4526_v13 = vpop.f32.mrf.mxu1 }
 0xc40   : > { %v7245_v63 = vadd.f32 %v5798_v28, %v4526_v13  ;;  %v5216_v28 = vld [vmem:[%s7170_s2 + $0x68] sm:$0xff]  }
 0xc41   : > { %v2850_v6 = vpop.f32.mrf.mxu1 }
 0xc42   : > { %v7236_v17 = vadd.f32 %v5806_v18, %v2850_v6  ;;  %v2885_v62 = vpack.c.bf16 %v7245_v63, %v7248_v3  ;;  %v5212_v18 = vld [vmem:[%s7170_s2 + $0x78] sm:$0xff]  }
 0xc43   : > { %4207 = vmatprep.subr.bf16.mxu1 %v5212_v18 }
 0xc44   : > { %v2884_v59 = vpack.c.bf16 %v7236_v17, %v7239_v30  ;;  %4208 = vmatpush3.bf16.msra.mxu1 %v5213_v34 }
 0xc45   : > { %4209 = vmatprep.subr.bf16.mxu1 %v5214_v46 }
 0xc46   : > { %3048 = vmatmul.mubr.bf16.gmra.mxu0 %v2881_v60 }
 0xc47   : > { %3057 = vmatprep.mubr.bf16.mxu0 %v7690_v47 }
 0xc4e   : > { %3058 = vmatmul.mubr.bf16.gmra.mxu0 %v2882_v35 }
 0xc4f   : > { %3067 = vmatprep.mubr.bf16.mxu0 %v7690_v47 }
 0xc56   : > { %3068 = vmatmul.mubr.bf16.gmra.mxu0 %v2883_v20 }
 0xc57   : > { %3077 = vmatprep.mubr.bf16.mxu0 %v7690_v47 }
 0xc5e   : > { %3078 = vmatmul.mubr.bf16.gmra.mxu0 %v2884_v59 }
 0xc5f   : > { %3087 = vmatprep.mubr.bf16.mxu0 %v7690_v47  ;;  %v5215_v47 = vld [vmem:[%s7170_s2 + $0x30] sm:$0xff]  }
 0xc60   : > { %4210 = vmatpush3.bf16.msra.mxu1 %v5215_v47 }
 0xc61   : > { %4211 = vmatprep.subr.bf16.mxu1 %v5216_v28 }
 0xc64   : > { %4212 = vmatpush3.bf16.msra.mxu1 %v5217_v29 }
 0xc65   : > { %4213 = vmatprep.subr.bf16.mxu1 %v5218_v31 }
 0xc66   : > { %3088 = vmatmul.mubr.bf16.gmra.mxu0 %v2885_v62 }
 0xc68   : > { %4214 = vmatpush3.bf16.msra.mxu1 %v5219_v38 }
 0xc69   : > { %4215 = vmatprep.subr.bf16.mxu1 %v5220_v19 }
 0xc6c   : > { %4216 = vmatpush3.bf16.msra.mxu1 %v5221_v21 }
 0xc6d   : > { %4217 = vmatprep.subr.bf16.mxu1 %v5222_v2 }
 0xc70   : > { %4218 = vmatpush3.bf16.msra.mxu1 %v5223_v12 }
 0xc71   : > { %4219 = vmatprep.subr.bf16.mxu1 %v5224_v16 }
 0xc74   : > { %4220 = vmatpush3.bf16.msra.mxu1 %v5225_v5 }
 0xc75   : > { %4221 = vmatprep.subr.bf16.mxu1 %v5226_v24 }
 0xc78   : > { %4222 = vmatpush3.bf16.msra.mxu1 %v5227_v15 }
 0xcee   : > { %v3019_v39 = vpop.f32.mrf.mxu0 }
 0xcef   : > { %v3130_v52 = vmul.f32 0.044715, %v3019_v39  ;;  %v7268_v15 = vmul.f32 0.5, %v3019_v39 }
 0xcf0   : > { %v3021_v51 = vpop.f32.mrf.mxu0 }
 0xcf1   : > { %v3162_v7 = vmul.f32 %v3130_v52, %v3019_v39  ;;  %v3131_v33 = vmul.f32 0.044715, %v3021_v51 }
 0xcf2   : > { %v3023_v32 = vpop.f32.mrf.mxu0 }
 0xcf3   : > { %v3194_v27 = vmul.f32 %v3162_v7, %v3019_v39  ;;  %v3163_v22 = vmul.f32 %v3131_v33, %v3021_v51  ;;  %v3132_v43 = vmul.f32 0.044715, %v3023_v32 }
 0xcf4   : > { %v3025_v14 = vpop.f32.mrf.mxu0 }
 0xcf5   : > { %v3226_v61 = vadd.f32 %v3194_v27, %v3019_v39  ;;  %v3195_v41 = vmul.f32 %v3163_v22, %v3021_v51  ;;  %v3164_v48 = vmul.f32 %v3132_v43, %v3023_v32  ;;  %v3133_v10 = vmul.f32 0.044715, %v3025_v14 }
 0xcf6   : > { %v3029_v57 = vpop.f32.mrf.mxu0 }
 0xcf7   : > { %v3258_v11 = vmul.f32 0.7978846, %v3226_v61  ;;  %v3227_v49 = vadd.f32 %v3195_v41, %v3021_v51  ;;  %v3196_v60 = vmul.f32 %v3164_v48, %v3023_v32  ;;  %v3165_v9 = vmul.f32 %v3133_v10, %v3025_v14 }
 0xcf8   : > { %v3134_v50 = vmul.f32 0.044715, %v3029_v57  ;;  %v3031_v35 = vpop.f32.mrf.mxu0  ;;  %v3100_v41 = vmul.f32 0.5, %v3023_v32 }
 0xcf9   : > { %v3259_v26 = vmul.f32 0.7978846, %v3227_v49  ;;  %v3228_v13 = vadd.f32 %v3196_v60, %v3023_v32  ;;  %v3197_v20 = vmul.f32 %v3165_v9, %v3025_v14  ;;  %5292 = vtanh.f32 %v3258_v11 }
 0xcfa   : > { %v3166_v6 = vmul.f32 %v3134_v50, %v3029_v57  ;;  %v3135_v59 = vmul.f32 0.044715, %v3031_v35  ;;  %v3033_v62 = vpop.f32.mrf.mxu0  ;;  %v7270_v11 = vmul.f32 0.5, %v3021_v51  ;;  %v7272_v49 = vmul.f32 0.5, %v3025_v14 }
 0xcfb   : > { %v3260_v18 = vmul.f32 0.7978846, %v3228_v13  ;;  %v3229_v34 = vadd.f32 %v3197_v20, %v3025_v14  ;;  %v3136_v46 = vmul.f32 0.044715, %v3033_v62  ;;  %5294 = vtanh.f32 %v3259_v26 }
 0xcfc   : > { %v3198_v47 = vmul.f32 %v3166_v6, %v3029_v57  ;;  %v3167_v28 = vmul.f32 %v3135_v59, %v3031_v35  ;;  %v3035_v29 = vpop.f32.mrf.mxu0  ;;  %v7276_v20 = vmul.f32 0.5, %v3031_v35  ;;  %v7278_v6 = vmul.f32 0.5, %v3029_v57 }
 0xcfd   : > { %5296 = vtanh.f32 %v3260_v18  ;;  %v3261_v31 = vmul.f32 0.7978846, %v3229_v34  ;;  %v3168_v38 = vmul.f32 %v3136_v46, %v3033_v62  ;;  %v3137_v19 = vmul.f32 0.044715, %v3035_v29 }
 0xcfe   : > { %v3230_v21 = vadd.f32 %v3198_v47, %v3029_v57  ;;  %v3199_v2 = vmul.f32 %v3167_v28, %v3031_v35  ;;  %v3039_v12 = vpop.f32.mrf.mxu0  ;;  %v7283_v46 = vmul.f32 0.5, %v3033_v62 }
 0xcff   : > { %5298 = vtanh.f32 %v3261_v31  ;;  %v3200_v16 = vmul.f32 %v3168_v38, %v3033_v62  ;;  %v3169_v5 = vmul.f32 %v3137_v19, %v3035_v29  ;;  %v3138_v24 = vmul.f32 0.044715, %v3039_v12 }
 0xd00   : > { %v3262_v52 = vmul.f32 0.7978846, %v3230_v21  ;;  %v3231_v7 = vadd.f32 %v3199_v2, %v3031_v35  ;;  %v3041_v33 = vpop.f32.mrf.mxu0  ;;  %v7285_v35 = vmul.f32 0.5, %v3035_v29  ;;  %v7291_v2 = vmul.f32 0.5, %v3039_v12 }
 0xd01   : > { %v3232_v27 = vadd.f32 %v3200_v16, %v3033_v62  ;;  %v3201_v22 = vmul.f32 %v3169_v5, %v3035_v29  ;;  %v3170_v43 = vmul.f32 %v3138_v24, %v3039_v12  ;;  %v3139_v61 = vmul.f32 0.044715, %v3041_v33 }
 0xd02   : > { %v3263_v48 = vmul.f32 0.7978846, %v3231_v7  ;;  %v3043_v10 = vpop.f32.mrf.mxu0  ;;  %v7294_v24 = vmul.f32 0.5, %v3041_v33 }
 0xd03   : > { %v3264_v60 = vmul.f32 0.7978846, %v3232_v27  ;;  %v3233_v9 = vadd.f32 %v3201_v22, %v3035_v29  ;;  %v3202_v50 = vmul.f32 %v3170_v43, %v3039_v12  ;;  %v3171_v26 = vmul.f32 %v3139_v61, %v3041_v33 }
 0xd04   : > { %5300 = vtanh.f32 %v3263_v48  ;;  %v3140_v39 = vmul.f32 0.044715, %v3043_v10  ;;  %v7274_v13 = vpop.f32.mrf.mxu0 }
 0xd05   : > { %5302 = vtanh.f32 %v3262_v52  ;;  %v3265_v32 = vmul.f32 0.7978846, %v3233_v9  ;;  %v3234_v59 = vadd.f32 %v3202_v50, %v3039_v12  ;;  %v3203_v18 = vmul.f32 %v3171_v26, %v3041_v33 }
 0xd06   : > { %5304 = vtanh.f32 %v3264_v60  ;;  %v3172_v51 = vmul.f32 %v3140_v39, %v3043_v10  ;;  %v3141_v14 = vmul.f32 0.044715, %v7274_v13  ;;  %v7281_v34 = vpop.f32.mrf.mxu0  ;;  %v5293_v47 = vpop.eup %5292  ;;  %v7296_v52 = vmul.f32 0.5, %v3043_v10 }
 0xd07   : > { %5306 = vtanh.f32 %v3265_v32  ;;  %v3266_v28 = vmul.f32 0.7978846, %v3234_v59  ;;  %v3235_v31 = vadd.f32 %v3203_v18, %v3041_v33  ;;  %v3142_v19 = vmul.f32 0.044715, %v7281_v34 }
 0xd08   : > { %v3204_v57 = vmul.f32 %v3172_v51, %v3043_v10  ;;  %v3173_v38 = vmul.f32 %v3141_v14, %v7274_v13  ;;  %v7289_v21 = vpop.f32.mrf.mxu0  ;;  %v5295_v16 = vpop.eup %5294  ;;  %v3322_v29 = vadd.f32 1.0, %v5293_v47 }
 0xd09   : > { %v3267_v5 = vmul.f32 0.7978846, %v3235_v31  ;;  %v3143_v62 = vmul.f32 0.044715, %v7289_v21  ;;  %v3174_v43 = vmul.f32 %v3142_v19, %v7281_v34  ;;  %5308 = vtanh.f32 %v3266_v28 }
 0xd0a   : > { %v5297_v7 = vpop.eup %5296  ;;  %v3236_v27 = vadd.f32 %v3204_v57, %v3043_v10  ;;  %v3205_v22 = vmul.f32 %v3173_v38, %v7274_v13  ;;  %v7300_v61 = vpop.f32.mrf.mxu0  ;;  %v3323_v10 = vadd.f32 1.0, %v5295_v16 }
 0xd0b   : > { %v3324_v48 = vadd.f32 1.0, %v5297_v7  ;;  %v3175_v12 = vmul.f32 %v3143_v62, %v7289_v21  ;;  %v3144_v60 = vmul.f32 0.044715, %v7300_v61  ;;  %5310 = vtanh.f32 %v3267_v5 }
 0xd0c   : > { %v5299_v9 = vpop.eup %5298  ;;  %v3237_v33 = vadd.f32 %v3205_v22, %v7274_v13  ;;  %v3206_v50 = vmul.f32 %v3174_v43, %v7281_v34  ;;  %v7306_v26 = vpop.f32.mrf.mxu0  ;;  %v3268_v39 = vmul.f32 0.7978846, %v3236_v27  ;;  %v3354_v5 = vmul.f32 %v3322_v29, %v7268_v15 }
 0xd0d   : > { %v3207_v32 = vmul.f32 %v3175_v12, %v7289_v21  ;;  %v3176_v59 = vmul.f32 %v3144_v60, %v7300_v61  ;;  %v3145_v18 = vmul.f32 0.044715, %v7306_v26  ;;  %v3356_v51 = vmul.f32 %v3324_v48, %v3100_v41 }
 0xd0e   : > { %v3269_v14 = vmul.f32 0.7978846, %v3237_v33  ;;  %v3238_v47 = vadd.f32 %v3206_v50, %v7281_v34  ;;  %v7312_v28 = vpop.f32.mrf.mxu0  ;;  %v3325_v31 = vadd.f32 1.0, %v5299_v9  ;;  %v3355_v41 = vmul.f32 %v3323_v10, %v7270_v11 }
 0xd0f   : > { %v3239_v57 = vadd.f32 %v3207_v32, %v7289_v21  ;;  %v3208_v38 = vmul.f32 %v3176_v59, %v7300_v61  ;;  %v3177_v19 = vmul.f32 %v3145_v18, %v7306_v26  ;;  %v3146_v16 = vmul.f32 0.044715, %v7312_v28 }
 0xd10   : > { %5312 = vtanh.f32 %v3269_v14  ;;  %v7319_v62 = vpop.f32.mrf.mxu0  ;;  %v3357_v7 = vmul.f32 %v3325_v31, %v7272_v49  ;;  %v3270_v9 = vmul.f32 0.7978846, %v3238_v47  ;;  %v3386_v10 = vpack.c.bf16 %v3356_v51, %v3354_v5 }
 0xd11   : > { %v5301_v27 = vpop.eup %5300  ;;  %v3271_v22 = vmul.f32 0.7978846, %v3239_v57  ;;  %v3240_v43 = vadd.f32 %v3208_v38, %v7300_v61  ;;  %v3209_v48 = vmul.f32 %v3177_v19, %v7306_v26  ;;  %v3178_v12 = vmul.f32 %v3146_v16, %v7312_v28 }
 0xd12   : > { %v5303_v60 = vpop.eup %5302  ;;  %5314 = vtanh.f32 %v3268_v39  ;;  %v3147_v15 = vmul.f32 0.044715, %v7319_v62  ;;  %v7327_v29 = vpop.f32.mrf.mxu0  ;;  %v3387_v33 = vpack.c.bf16 %v3357_v7, %v3355_v41  ;;  %v3327_v32 = vadd.f32 1.0, %v5301_v27 }
 0xd13   : > { %v5305_v50 = vpop.eup %5304  ;;  %v3241_v11 = vadd.f32 %v3209_v48, %v7306_v26  ;;  %v3210_v49 = vmul.f32 %v3178_v12, %v7312_v28  ;;  %5316 = vtanh.f32 %v3271_v22  ;;  %v3272_v18 = vmul.f32 0.7978846, %v3240_v43 }
 0xd14   : > { %v5307_v59 = vpop.eup %5306  ;;  %v3179_v14 = vmul.f32 %v3147_v15, %v7319_v62  ;;  %v3148_v39 = vmul.f32 0.044715, %v7327_v29  ;;  %3564 = vmatprep.mubr.bf16.mxu1 %v3387_v33  ;;  %v7333_v47 = vpop.f32.mrf.mxu0  ;;  %v3326_v19 = vadd.f32 1.0, %v5303_v60  ;;  %v3328_v7 = vadd.f32 1.0, %v5305_v50 }
 0xd15   : > { %v3273_v31 = vmul.f32 0.7978846, %v3241_v11  ;;  %v3242_v57 = vadd.f32 %v3210_v49, %v7312_v28  ;;  %v3149_v38 = vmul.f32 0.044715, %v7333_v47  ;;  %3565 = vmatmul.mubr.bf16.vlgmr.msra.gmra.mxu1 %v3386_v10  ;;  %v3329_v41 = vadd.f32 1.0, %v5307_v59 }
 0xd16   : > { %v3211_v51 = vmul.f32 %v3179_v14, %v7319_v62  ;;  %v3180_v16 = vmul.f32 %v3148_v39, %v7327_v29  ;;  %v7339_v5 = vpop.f32.mrf.mxu0  ;;  %v3359_v43 = vmul.f32 %v3327_v32, %v7276_v20  ;;  %v5309_v48 = vpop.eup %5308  ;;  %v3358_v14 = vmul.f32 %v3326_v19, %v7278_v6 }
 0xd17   : > { %5318 = vtanh.f32 %v3273_v31  ;;  %v3181_v27 = vmul.f32 %v3149_v38, %v7333_v47  ;;  %v3150_v22 = vmul.f32 0.044715, %v7339_v5  ;;  %v3274_v12 = vmul.f32 0.7978846, %v3242_v57 }
 0xd18   : > { %v3243_v15 = vadd.f32 %v3211_v51, %v7319_v62  ;;  %v3212_v60 = vmul.f32 %v3180_v16, %v7327_v29  ;;  %v7346_v33 = vpop.f32.mrf.mxu0  ;;  %v3361_v11 = vmul.f32 %v3329_v41, %v7285_v35  ;;  %v5311_v49 = vpop.eup %5310  ;;  %v3360_v57 = vmul.f32 %v3328_v7, %v7283_v46 }
 0xd19   : > { %v3213_v50 = vmul.f32 %v3181_v27, %v7333_v47  ;;  %v3182_v10 = vmul.f32 %v3150_v22, %v7339_v5  ;;  %v3151_v59 = vmul.f32 0.044715, %v7346_v33  ;;  %5320 = vtanh.f32 %v3270_v9 }
 0xd1a   : > { %v3275_v20 = vmul.f32 0.7978846, %v3243_v15  ;;  %v3244_v32 = vadd.f32 %v3212_v60, %v7327_v29  ;;  %v7354_v39 = vpop.f32.mrf.mxu0  ;;  %v3389_v31 = vpack.c.bf16 %v3361_v11, %v3359_v43  ;;  %5322 = vtanh.f32 %v3272_v18 }
 0xd1b   : > { %v3245_v35 = vadd.f32 %v3213_v50, %v7333_v47  ;;  %v3183_v38 = vmul.f32 %v3151_v59, %v7346_v33  ;;  %v3152_v51 = vmul.f32 0.044715, %v7354_v39  ;;  %v3388_v6 = vpack.c.bf16 %v3360_v57, %v3358_v14 }
 0xd1c   : > { %3572 = vmatprep.mubr.bf16.mxu1 %v3389_v31  ;;  %v7360_v16 = vpop.f32.mrf.mxu0  ;;  %v3109_v19 = vmul.f32 0.5, %v7274_v13  ;;  %v3331_v41 = vadd.f32 1.0, %v5311_v49  ;;  %5324 = vtanh.f32 %v3274_v12  ;;  %v3276_v22 = vmul.f32 0.7978846, %v3244_v32 }
 0xd1d   : > { %v5313_v27 = vpop.eup %5312  ;;  %v3215_v46 = vmul.f32 %v3183_v38, %v7346_v33  ;;  %v3184_v9 = vmul.f32 %v3152_v51, %v7354_v39  ;;  %5326 = vtanh.f32 %v3275_v20  ;;  %v3214_v7 = vmul.f32 %v3182_v10, %v7339_v5  ;;  %3573 = vmatmul.mubr.bf16.gmra.mxu1 %v3388_v6 }
 0xd1e   : > { %v3153_v43 = vmul.f32 0.044715, %v7360_v16  ;;  %v7367_v18 = vpop.f32.mrf.mxu0  ;;  %v3333_v15 = vadd.f32 1.0, %v5313_v27  ;;  %v3277_v11 = vmul.f32 0.7978846, %v3245_v35  ;;  %v3363_v49 = vmul.f32 %v3331_v41, %v7294_v24 }
 0xd1f   : > { %v5315_v60 = vpop.eup %5314  ;;  %v3247_v13 = vadd.f32 %v3215_v46, %v7346_v33  ;;  %v3216_v12 = vmul.f32 %v3184_v9, %v7354_v39  ;;  %v3154_v59 = vmul.f32 0.044715, %v7367_v18  ;;  %v3330_v20 = vadd.f32 1.0, %v5309_v48 }
 0xd20   : > { %v3185_v50 = vmul.f32 %v3153_v43, %v7360_v16  ;;  %v7374_v14 = vpop.f32.mrf.mxu0  ;;  %v3365_v10 = vmul.f32 %v3333_v15, %v3109_v19  ;;  %v5317_v32 = vpop.eup %5316  ;;  %5328 = vtanh.f32 %v3276_v22  ;;  %v3332_v41 = vadd.f32 1.0, %v5315_v60 }
 0xd21   : > { %v3279_v31 = vmul.f32 0.7978846, %v3247_v13  ;;  %v3248_v57 = vadd.f32 %v3216_v12, %v7354_v39  ;;  %v3155_v35 = vmul.f32 0.044715, %v7374_v14  ;;  %v3186_v51 = vmul.f32 %v3154_v59, %v7367_v18 }
 0xd22   : > { %v3217_v38 = vmul.f32 %v3185_v50, %v7360_v16  ;;  %v7380_v24 = vpop.f32.mrf.mxu0  ;;  %v3391_v6 = vpack.c.bf16 %v3365_v10, %v3363_v49  ;;  %5330 = vtanh.f32 %v3277_v11  ;;  %v3246_v27 = vadd.f32 %v3214_v7, %v7339_v5 }
 0xd23   : > { %v3187_v48 = vmul.f32 %v3155_v35, %v7374_v14  ;;  %v3156_v19 = vmul.f32 0.044715, %v7380_v24  ;;  %v3218_v9 = vmul.f32 %v3186_v51, %v7367_v18  ;;  %v3362_v15 = vmul.f32 %v3330_v20, %v7291_v2 }
 0xd24   : > { %v5319_v22 = vpop.eup %5318  ;;  %v3249_v46 = vadd.f32 %v3217_v38, %v7360_v16  ;;  %3580 = vmatprep.mubr.bf16.mxu1 %v3391_v6  ;;  %v7387_v43 = vpop.f32.mrf.mxu0  ;;  %v3364_v13 = vmul.f32 %v3332_v41, %v7296_v52  ;;  %5332 = vtanh.f32 %v3279_v31  ;;  %v3280_v12 = vmul.f32 0.7978846, %v3248_v57 }
 0xd25   : > { %v3219_v60 = vmul.f32 %v3187_v48, %v7374_v14  ;;  %v3188_v7 = vmul.f32 %v3156_v19, %v7380_v24  ;;  %v3157_v11 = vmul.f32 0.044715, %v7387_v43  ;;  %v3250_v50 = vadd.f32 %v3218_v9, %v7367_v18 }
 0xd26   : > { %v3281_v49 = vmul.f32 0.7978846, %v3249_v46  ;;  %v3390_v59 = vpack.c.bf16 %v3364_v13, %v3362_v15  ;;  %v7395_v10 = vpop.f32.mrf.mxu0  ;;  %v5321_v31 = vpop.eup %5320  ;;  %v3278_v38 = vmul.f32 0.7978846, %v3246_v27  ;;  %v3111_v57 = vmul.f32 0.5, %v7289_v21 }
 0xd27   : > { %v3251_v35 = vadd.f32 %v3219_v60, %v7374_v14  ;;  %v3220_v2 = vmul.f32 %v3188_v7, %v7380_v24  ;;  %v3189_v52 = vmul.f32 %v3157_v11, %v7387_v43  ;;  %v3158_v20 = vmul.f32 0.044715, %v7395_v10  ;;  %v5323_v41 = vpop.eup %5322 }
 0xd28   : > { %5334 = vtanh.f32 %v3281_v49  ;;  %3581 = vmatmul.mubr.bf16.gmra.mxu1 %v3390_v59  ;;  %v7401_v51 = vpop.f32.mrf.mxu0  ;;  %v3335_v6 = vadd.f32 1.0, %v5317_v32  ;;  %v3113_v27 = vmul.f32 0.5, %v7306_v26  ;;  %v3337_v7 = vadd.f32 1.0, %v5319_v22 }
 0xd29   : > { %v3283_v48 = vmul.f32 0.7978846, %v3251_v35  ;;  %v3252_v19 = vadd.f32 %v3220_v2, %v7380_v24  ;;  %v3221_v46 = vmul.f32 %v3189_v52, %v7387_v43  ;;  %v3190_v9 = vmul.f32 %v3158_v20, %v7395_v10  ;;  %v5325_v15 = vpop.eup %5324 }
 0xd2a   : > { %v3159_v13 = vmul.f32 0.044715, %v7401_v51  ;;  %v7408_v60 = vpop.f32.mrf.mxu0  ;;  %v3110_v11 = vmul.f32 0.5, %v7281_v34  ;;  %v5327_v21 = vpop.eup %5326  ;;  %5336 = vtanh.f32 %v3280_v12  ;;  %v3282_v32 = vmul.f32 0.7978846, %v3250_v50 }
 0xd2b   : > { %v3253_v49 = vadd.f32 %v3221_v46, %v7387_v43  ;;  %v3367_v59 = vmul.f32 %v3335_v6, %v3111_v57  ;;  %5338 = vtanh.f32 %v3283_v48  ;;  %v3160_v2 = vmul.f32 0.044715, %v7408_v60 }
 0xd2c   : > { %v3191_v35 = vmul.f32 %v3159_v13, %v7401_v51  ;;  %v3369_v52 = vmul.f32 %v3337_v7, %v3113_v27  ;;  %v7415_v20 = vpop.f32.mrf.mxu0  ;;  %5340 = vtanh.f32 %v3278_v38  ;;  %v3284_v0 = vmul.f32 0.7978846, %v3252_v19 }
 0xd2d   : > { %v3285_v26 = vmul.f32 0.7978846, %v3253_v49  ;;  %v3222_v22 = vmul.f32 %v3190_v9, %v7395_v10  ;;  %v5329_v34 = vpop.eup %5328  ;;  %v3192_v50 = vmul.f32 %v3160_v2, %v7408_v60  ;;  %v3161_v57 = vmul.f32 0.044715, %v7415_v20 }
 0xd2e   : > { %v3223_v12 = vmul.f32 %v3191_v35, %v7401_v51  ;;  %v3393_v46 = vpack.c.bf16 %v3369_v52, %v3367_v59  ;;  %v3112_v6 = vmul.f32 0.5, %v7300_v61  ;;  %v3334_v48 = vadd.f32 1.0, %v5321_v31 }
 0xd2f   : > { %5342 = vtanh.f32 %v3285_v26  ;;  %v3336_v13 = vadd.f32 1.0, %v5323_v41  ;;  %v5331_v27 = vpop.eup %5330  ;;  %v3224_v19 = vmul.f32 %v3192_v50, %v7408_v60  ;;  %v3193_v9 = vmul.f32 %v3161_v57, %v7415_v20 }
 0xd30   : > { %5344 = vtanh.f32 %v3282_v32  ;;  %v3255_v38 = vadd.f32 %v3223_v12, %v7401_v51  ;;  %3588 = vmatprep.mubr.bf16.mxu1 %v3393_v46  ;;  %v3254_v7 = vadd.f32 %v3222_v22, %v7395_v10  ;;  %v3366_v49 = vmul.f32 %v3334_v48, %v3110_v11 }
 0xd31   : > { %5346 = vtanh.f32 %v3284_v0  ;;  %v3368_v59 = vmul.f32 %v3336_v13, %v3112_v6  ;;  %v5333_v35 = vpop.eup %5332  ;;  %v3256_v61 = vadd.f32 %v3224_v19, %v7408_v60  ;;  %v3225_v31 = vmul.f32 %v3193_v9, %v7415_v20 }
 0xd32   : > { %v3287_v2 = vmul.f32 0.7978846, %v3255_v38  ;;  %v3339_v41 = vadd.f32 1.0, %v5327_v21  ;;  %v3115_v52 = vmul.f32 0.5, %v7319_v62  ;;  %v3117_v26 = vmul.f32 0.5, %v7333_v47 }
 0xd33   : > { %v3392_v32 = vpack.c.bf16 %v3368_v59, %v3366_v49  ;;  %v3341_v12 = vadd.f32 1.0, %v5331_v27  ;;  %v3257_v0 = vadd.f32 %v3225_v31, %v7415_v20  ;;  %v3114_v22 = vmul.f32 0.5, %v7312_v28 }
 0xd34   : > { %5348 = vtanh.f32 %v3287_v2  ;;  %v3116_v11 = vmul.f32 0.5, %v7327_v29  ;;  %v3371_v46 = vmul.f32 %v3339_v41, %v3115_v52  ;;  %v3338_v6 = vadd.f32 1.0, %v5325_v15 }
 0xd35   : > { %v5335_v50 = vpop.eup %5334  ;;  %3589 = vmatmul.mubr.bf16.gmra.mxu1 %v3392_v32  ;;  %v3373_v57 = vmul.f32 %v3341_v12, %v3117_v26  ;;  %v3340_v48 = vadd.f32 1.0, %v5329_v34  ;;  %v3288_v21 = vmul.f32 0.7978846, %v3256_v61  ;;  %v3289_v13 = vmul.f32 0.7978846, %v3257_v0 }
 0xd36   : > { %v3119_v62 = vmul.f32 0.5, %v7346_v33  ;;  %v3343_v38 = vadd.f32 1.0, %v5333_v35  ;;  %v3121_v19 = vmul.f32 0.5, %v7360_v16  ;;  %v3345_v9 = vadd.f32 1.0, %v5335_v50 }
 0xd37   : > { %v3395_v47 = vpack.c.bf16 %v3373_v57, %v3371_v46  ;;  %v3372_v27 = vmul.f32 %v3340_v48, %v3116_v11  ;;  %v5337_v49 = vpop.eup %5336  ;;  %v3286_v28 = vmul.f32 0.7978846, %v3254_v7  ;;  %5350 = vtanh.f32 %v3289_v13 }
 0xd38   : > { %v5339_v29 = vpop.eup %5338  ;;  %v3370_v59 = vmul.f32 %v3338_v6, %v3114_v22  ;;  %v3375_v2 = vmul.f32 %v3343_v38, %v3119_v62  ;;  %v3377_v31 = vmul.f32 %v3345_v9, %v3121_v19  ;;  %5352 = vtanh.f32 %v3288_v21 }
 0xd39   : > { %3596 = vmatprep.mubr.bf16.mxu1 %v3395_v47  ;;  %v5341_v15 = vpop.eup %5340  ;;  %v3344_v41 = vadd.f32 1.0, %v5337_v49  ;;  %5354 = vtanh.f32 %v3286_v28  ;;  %v3347_v35 = vadd.f32 1.0, %v5339_v29  ;;  %v3120_v16 = vmul.f32 0.5, %v7354_v39 }
 0xd3a   : > { %v3394_v34 = vpack.c.bf16 %v3372_v27, %v3370_v59  ;;  %v3397_v61 = vpack.c.bf16 %v3377_v31, %v3375_v2  ;;  %v3342_v52 = vadd.f32 1.0, %v5341_v15  ;;  %v3125_v7 = vmul.f32 0.5, %v7387_v43 }
 0xd3b   : > { %v3123_v0 = vmul.f32 0.5, %v7374_v14  ;;  %v3118_v22 = vmul.f32 0.5, %v7339_v5  ;;  %v3376_v11 = vmul.f32 %v3344_v41, %v3120_v16  ;;  %v3124_v43 = vmul.f32 0.5, %v7380_v24 }
 0xd3c   : > { %v5343_v33 = vpop.eup %5342  ;;  %v3129_v47 = vmul.f32 0.5, %v7415_v20  ;;  %v3127_v14 = vmul.f32 0.5, %v7401_v51  ;;  %v3122_v27 = vmul.f32 0.5, %v7367_v18  ;;  %v3128_v24 = vmul.f32 0.5, %v7408_v60 }
 0xd3d   : > { %v5345_v32 = vpop.eup %5344  ;;  %3597 = vmatmul.mubr.bf16.gmra.mxu1 %v3394_v34  ;;  %v3349_v26 = vadd.f32 1.0, %v5343_v33  ;;  %v3379_v46 = vmul.f32 %v3347_v35, %v3123_v0  ;;  %v3374_v6 = vmul.f32 %v3342_v52, %v3118_v22  ;;  %v3126_v20 = vmul.f32 0.5, %v7395_v10 }
 0xd3e   : > { %v5347_v12 = vpop.eup %5346  ;;  %3604 = vmatprep.mubr.bf16.mxu1 %v3397_v61  ;;  %v3346_v38 = vadd.f32 1.0, %v5345_v32 }
 0xd3f   : > { %v3381_v50 = vmul.f32 %v3349_v26, %v3125_v7  ;;  %v3396_v21 = vpack.c.bf16 %v3376_v11, %v3374_v6  ;;  %v3348_v13 = vadd.f32 1.0, %v5347_v12 }
 0xd40   : > { %v3378_v59 = vmul.f32 %v3346_v38, %v3122_v27 }
 0xd41   : > { %v5349_v57 = vpop.eup %5348  ;;  %v3399_v48 = vpack.c.bf16 %v3381_v50, %v3379_v46  ;;  %v3380_v19 = vmul.f32 %v3348_v13, %v3124_v43  ;;  %v7695_v13 = vld [vmem:[#allocation27_spill] sm:$0xff] }
 0xd42   : > { %v3351_v62 = vadd.f32 1.0, %v5349_v57 }
 0xd43   : > { %v3398_v31 = vpack.c.bf16 %v3380_v19, %v3378_v59 }
 0xd44   : > { %v5351_v39 = vpop.eup %5350  ;;  %v3383_v49 = vmul.f32 %v3351_v62, %v3127_v14 }
 0xd45   : > { %3605 = vmatmul.mubr.bf16.gmra.mxu1 %v3396_v21  ;;  %v3353_v5 = vadd.f32 1.0, %v5351_v39  ;;  %v5353_v9 = vpop.eup %5352 }
 0xd46   : > { %3612 = vmatprep.mubr.bf16.mxu1 %v3399_v48  ;;  %v5355_v29 = vpop.eup %5354  ;;  %v3352_v15 = vadd.f32 1.0, %v5353_v9 }
 0xd47   : > { %v3385_v28 = vmul.f32 %v3353_v5, %v3129_v47  ;;  %v3350_v34 = vadd.f32 1.0, %v5355_v29  ;;  %v7699_v5 = vld [vmem:[#allocation25_spill] sm:$0xff] }
 0xd48   : > { %v3384_v51 = vmul.f32 %v3352_v15, %v3128_v24  ;;  %v7703_v15 = vld [vmem:[#allocation23_spill] sm:$0xff] }
 0xd49   : > { %v3401_v2 = vpack.c.bf16 %v3385_v28, %v3383_v49  ;;  %v3382_v61 = vmul.f32 %v3350_v34, %v3126_v20  ;;  %v7701_v28 = vld [vmem:[#allocation24_spill] sm:$0xff] }
 0xd4b   : > { %v3400_v41 = vpack.c.bf16 %v3384_v51, %v3382_v61 }
 0xd4d   : > { %3613 = vmatmul.mubr.bf16.gmra.mxu1 %v3398_v31 }
 0xd4e   : > { %3620 = vmatprep.mubr.bf16.mxu1 %v3401_v2 }
 0xd55   : > { %3621 = vmatmul.mubr.bf16.gmra.mxu1 %v3400_v41 }
 0xdd5   : > { %v4223_v18 = vpop.f32.mrf.mxu1 }
 0xdd7   : > { %v4224_v33 = vpop.f32.mrf.mxu1 }
 0xdd8   : > { %v4225_v35 = vadd.f32 %v4224_v33, %v4223_v18 }
 0xdd9   : > { %v4226_v32 = vpop.f32.mrf.mxu1 }
 0xdda   : > { %v7446_v41 = vadd.f32 %v4225_v35, %v7182_v56  }
 0xddb   : > { %v4227_v16 = vpop.f32.mrf.mxu1 }
 0xddc   : > { %v7450_v54 = vadd.f32 %v5794_v54, %v7446_v41   ;;  %v4228_v60 = vadd.f32 %v4227_v16, %v4226_v32 }
 0xddd   : > { %v4229_v10 = vpop.f32.mrf.mxu1 }
 0xdde   : > { %v7691_v52 = vmov %v7450_v54  ;;  %v7453_v48 = vadd.f32 %v4228_v60, %v7185_v36  }
 0xddf   : > { %v4230_v7 = vpop.f32.mrf.mxu1  ;;  %3661 = vst [vmem:[#allocation10] sm:$0xff] (%p7528_p7), %v7691_v52 }
 0xde0   : > { %v7457_v44 = vadd.f32 %v5790_v44, %v7453_v48   ;;  %v4231_v12 = vadd.f32 %v4230_v7, %v4229_v10  ;;  %v7707_v10 = vld [vmem:[#allocation21_spill] sm:$0xff] }
 0xde1   : > { %v4232_v0 = vpop.f32.mrf.mxu1 }
 0xde2   : > { %v7692_v26 = vmov %v7457_v44  ;;  %v7460_v56 = vadd.f32 %v4231_v12, %v7194_v8  }
 0xde3   : > { %v4233_v22 = vpop.f32.mrf.mxu1  ;;  %3662 = vst [vmem:[#allocation10 + $0x8] sm:$0xff] (%p7528_p7), %v7692_v26 }
 0xde4   : > { %v7464_v1 = vadd.f32 %v5786_v1, %v7460_v56   ;;  %v4234_v54 = vadd.f32 %v4233_v22, %v4232_v0 }
 0xde6   : > { %v7693_v11 = vmov %v7464_v1  ;;  %v7467_v57 = vadd.f32 %v4234_v54, %v7191_v25   ;;  %v7697_v25 = vld [vmem:[#allocation26_spill] sm:$0xff] }
 0xde7   :  { %3663 = vst [vmem:[#allocation10 + $0x10] sm:$0xff] (%p7528_p7), %v7693_v11 }
 0xde8   : > { %v4235_v36 = vpop.f32.mrf.mxu1  ;;  %v7471_v4 = vadd.f32 %v5782_v4, %v7467_v57  }
 0xdea   : > { %v7694_v46 = vmov %v7471_v4  ;;  %v4236_v44 = vpop.f32.mrf.mxu1 }
 0xdeb   : > { %v4237_v50 = vadd.f32 %v4236_v44, %v4235_v36  ;;  %v7709_v36 = vld [vmem:[#allocation20_spill] sm:$0xff]  ;;  %3664 = vst [vmem:[#allocation10 + $0x18] sm:$0xff] (%p7528_p7), %v7694_v46 }
 0xdec   : > { %v4238_v6 = vpop.f32.mrf.mxu1 }
 0xded   : > { %v7474_v8 = vadd.f32 %v4237_v50, %v7203_v58   ;;  %v7711_v50 = vld [vmem:[#allocation19_spill] sm:$0xff] }
 0xdee   : > { %v4239_v21 = vpop.f32.mrf.mxu1 }
 0xdef   : > { %v7478_v12 = vadd.f32 %v7695_v13, %v7474_v8   ;;  %v4240_v1 = vadd.f32 %v4239_v21, %v4238_v6 }
 0xdf1   : > { %v7696_v39 = vmov %v7478_v12  ;;  %v7481_v60 = vadd.f32 %v4240_v1, %v7200_v55  }
 0xdf2   :  { %3665 = vst [vmem:[#allocation10 + $0x20] sm:$0xff] (%p7528_p7), %v7696_v39 }
 0xdf3   : > { %v7485_v7 = vadd.f32 %v7697_v25, %v7481_v60   ;;  %v7712_v25 = vld [vmem:[#allocation18_spill] sm:$0xff] }
 0xdf5   : > { %v7698_v43 = vmov %v7485_v7  ;;  %v4241_v4 = vpop.f32.mrf.mxu1 }
 0xdf6   :  { %3666 = vst [vmem:[#allocation10 + $0x28] sm:$0xff] (%p7528_p7), %v7698_v43 }
 0xdf7   : > { %v4242_v62 = vpop.f32.mrf.mxu1 }
 0xdf8   : > { %v4243_v38 = vadd.f32 %v4242_v62, %v4241_v4 }
 0xdf9   : > { %v4244_v47 = vpop.f32.mrf.mxu1 }
 0xdfa   : > { %v7488_v58 = vadd.f32 %v4243_v38, %v7212_v40  }
 0xdfb   : > { %v4245_v14 = vpop.f32.mrf.mxu1 }
 0xdfc   : > { %v7492_v55 = vadd.f32 %v7699_v5, %v7488_v58   ;;  %v4246_v19 = vadd.f32 %v4245_v14, %v4244_v47 }
 0xdfd   : > { %v4247_v9 = vpop.f32.mrf.mxu1 }
 0xdfe   : > { %v7700_v27 = vmov %v7492_v55  ;;  %v7495_v35 = vadd.f32 %v4246_v19, %v7209_v37   ;;  %v7705_v37 = vld [vmem:[#allocation22_spill] sm:$0xff] }
 0xdff   : > { %v4248_v49 = vpop.f32.mrf.mxu1  ;;  %3667 = vst [vmem:[#allocation10 + $0x30] sm:$0xff] (%p7528_p7), %v7700_v27 }
 0xe00   : > { %v7499_v29 = vadd.f32 %v7701_v28, %v7495_v35   ;;  %v4249_v59 = vadd.f32 %v4248_v49, %v4247_v9 }
 0xe01   : > { %v4250_v31 = vpop.f32.mrf.mxu1 }
 0xe02   : > { %v7702_v2 = vmov %v7499_v29  ;;  %v3637_v20 = vadd.f32 %v4249_v59, %v7221_v23  }
 0xe03   : > { %v4251_v40 = vpop.f32.mrf.mxu1  ;;  %3668 = vst [vmem:[#allocation10 + $0x38] sm:$0xff] (%p7528_p7), %v7702_v2 }
 0xe04   : > { %v7503_v21 = vadd.f32 %v7703_v15, %v3637_v20   ;;  %v4252_v34 = vadd.f32 %v4251_v40, %v4250_v31 }
 0xe05   : > { %v4253_v55 = vpop.f32.mrf.mxu1 }
 0xe06   : > { %v7704_v24 = vmov %v7503_v21  ;;  %v3638_v51 = vadd.f32 %v4252_v34, %v7218_v42  }
 0xe07   : > { %v4254_v61 = vpop.f32.mrf.mxu1  ;;  %3669 = vst [vmem:[#allocation10 + $0x40] sm:$0xff] (%p7528_p7), %v7704_v24 }
 0xe08   : > { %v7507_v22 = vadd.f32 %v7705_v37, %v3638_v51   ;;  %v4255_v18 = vadd.f32 %v4254_v61, %v4253_v55  ;;  %v7725_v55 = vmov %v7700_v27  ;;  %v7736_v37 = vmov %v7460_v56 }
 0xe09   : > { %v4256_v32 = vpop.f32.mrf.mxu1 }
 0xe0a   : > { %v7706_v33 = vmov %v7507_v22  ;;  %v3639_v59 = vadd.f32 %v4255_v18, %v7230_v53  }
 0xe0b   : > { %v4257_v16 = vpop.f32.mrf.mxu1  ;;  %3670 = vst [vmem:[#allocation10 + $0x48] sm:$0xff] (%p7528_p7), %v7706_v33 }
 0xe0c   : > { %v7511_v47 = vadd.f32 %v7707_v10, %v3639_v59   ;;  %v4258_v7 = vadd.f32 %v4257_v16, %v4256_v32 }
 0xe0d   : > { %v4259_v12 = vpop.f32.mrf.mxu1 }
 0xe0e   : > { %v7708_v23 = vmov %v7511_v47  ;;  %v3640_v0 = vadd.f32 %v4258_v7, %v7227_v45   ;;  %v7713_v47 = vld [vmem:[#allocation17_spill] sm:$0xff]  ;;  %v7726_v7 = vmov %v7698_v43 }
 0xe0f   : > { %v4260_v54 = vpop.f32.mrf.mxu1  ;;  %3671 = vst [vmem:[#allocation10 + $0x50] sm:$0xff] (%p7528_p7), %v7708_v23 }
 0xe10   : > { %v7515_v40 = vadd.f32 %v7709_v36, %v3640_v0   ;;  %v4261_v42 = vadd.f32 %v4260_v54, %v4259_v12  ;;  %v7727_v12 = vmov %v7696_v39  ;;  %v7731_v54 = vmov %v7691_v52 }
 0xe11   : > { %v4262_v44 = vpop.f32.mrf.mxu1 }
 0xe12   : > { %v7710_v6 = vmov %v7515_v40  ;;  %v3641_v62 = vadd.f32 %v4261_v42, %v7239_v30   ;;  %v7714_v30 = vld [vmem:[#allocation16_spill] sm:$0xff]  ;;  %v7735_v42 = vmov %v7474_v8 }
 0xe13   : > { %v4263_v22 = vpop.f32.mrf.mxu1  ;;  %v7720_v40 = vmov %v7710_v6  ;;  %3672 = vst [vmem:[#allocation10 + $0x58] sm:$0xff] (%p7528_p7), %v7710_v6 }
 0xe14   : > { %v3657_v13 = vadd.f32 %v7711_v50, %v3641_v62   ;;  %v4264_v53 = vadd.f32 %v4263_v22, %v4262_v44  ;;  %v7722_v22 = vmov %v7706_v33  ;;  %v7730_v44 = vmov %v7692_v26 }
 0xe15   : > { %v4265_v21 = vpop.f32.mrf.mxu1 }
 0xe16   : > { %v3642_v18 = vadd.f32 %v4264_v53, %v7236_v17   ;;  %v7719_v34 = vmov %v3657_v13  ;;  %v7724_v17 = vmov %v7702_v2  ;;  %v7733_v53 = vmov %v3638_v51  ;;  %3673 = vst [vmem:[#allocation10 + $0x60] sm:$0xff] (%p7528_p7), %v3657_v13 }
 0xe17   : > { %v4266_v1 = vpop.f32.mrf.mxu1 }
 0xe18   : > { %v3658_v14 = vadd.f32 %v7712_v25, %v3642_v18   ;;  %v4267_v4 = vadd.f32 %v4266_v1, %v4265_v21  ;;  %v7723_v21 = vmov %v7704_v24  ;;  %v7729_v1 = vmov %v7693_v11 }
 0xe19   : > { %v4268_v45 = vpop.f32.mrf.mxu1 }
 0xe1a   : > { %v3643_v29 = vadd.f32 %v4267_v4, %v7248_v3   ;;  %v7728_v4 = vmov %v7694_v46  ;;  %3674 = vst [vmem:[#allocation10 + $0x68] sm:$0xff] (%p7528_p7), %v3658_v14 }
 0xe1b   : > { %v4269_v38 = vpop.f32.mrf.mxu1 }
 0xe1c   : > { %v3659_v5 = vadd.f32 %v7713_v47, %v3643_v29   ;;  %v4270_v19 = vadd.f32 %v4269_v38, %v4268_v45  ;;  %v7718_v38 = vmov %v3658_v14  ;;  %v7721_v47 = vmov %v7708_v23 }
 0xe1d   : > { %v7734_v45 = vmov %v7488_v58 }
 0xe1e   : > { %v3644_v28 = vadd.f32 %v4270_v19, %v7245_v63   ;;  %v7717_v50 = vmov %v3659_v5  ;;  %1867 = sbr.rel (!%p7528_p7) target bundleno = 1839 (0x72f), region = 93  ;;  %3675 = vst [vmem:[#allocation10 + $0x70] sm:$0xff] (%p7528_p7), %v3659_v5 }
 0xe20   : > { %v3660_v9 = vadd.f32 %v7714_v30, %v3644_v28   ;;  %v7732_v30 = vmov %v3640_v0 }
 0xe22   : > { %v7716_v19 = vmov %v3660_v9  ;;  %3676 = vst [vmem:[#allocation10 + $0x78] sm:$0xff] (%p7528_p7), %v3660_v9 }
 0xe23   :  { %5447 = shalt.err (!%p5444_p12)
}
 0xe24   :  { %3688 = dma.vmem_to_hbm [thread:$0]  %s3683_s20, 2048, %s7646_s6, [#allocation4], %s5871_s13, %s5871_s13, %s5872_s14  }
 0xe25   :  { %5662 = dma.done.wait [#allocation4], 2048  }
 0xe26   :  { %5663 = vsyncadd [#allocation4], 4294965248 }
 0xe27   :  { %3692 = vsyncpa [#allocation3], 1 }
 0xe28   :  { %3693 = vsyncpa [#allocation6], 1 }
 0xe29   :  { %3694 = vsyncpa [#allocation9], 1 }
 0xe2a   :  { %3695 = vsyncpa [#allocation4], 1 }

</bundles_post_ra>
